<compile_context>
chip_gen: v6e
topology: v6e:2x2x1
jax: 0.10.0
libtpu: 0.0.40
codegen_flags: <defaults>
</compile_context>

<pallas_src>
import functools

import jax
import jax.numpy as jnp
from jax.experimental import pallas as pl
from jax.experimental.pallas import tpu as pltpu

# weight-stack indices (PyTorch nn.Linear weights, stacked in this order)
_WQ_SELF, _WK_SELF, _WV_SELF, _W0_SELF, _W0_ATT, _WQ_ATT, _W1_MLP, _W2_MLP = range(8)
_LN_EPS = 1e-5


def _decoder_layer_kernel(h_ref, katt_ref, vatt_ref, w_ref, b_ref, ln_ref,
                          o_ref, *, num_heads, matmul_dtype):
    bt, n, d = h_ref.shape
    hd = d // num_heads
    scale = 1.0 / (hd ** 0.5)
    m = bt * n

    gamma = ln_ref[0]          # (1, D) -- hoisted once
    beta = ln_ref[1]           # (1, D)

    # All row-wise math on one (Bt*N, D) tile -> each linear is a single
    # MXU matmul over Bt*N rows instead of Bt tiny ones.
    h2 = h_ref[...].reshape(m, d)
    katt = katt_ref[...]       # (Bt, N, D)
    vatt = vatt_ref[...]

    def matmul(x2, w):         # x2:(M,D) @ w:(D,D); w is pre-transposed W.T
        return jnp.dot(x2.astype(matmul_dtype), w.astype(matmul_dtype),
                       preferred_element_type=jnp.float32)

    def linear(x2, i):
        return matmul(x2, w_ref[i]) + b_ref[i]

    def layernorm(x2):         # PyTorch LayerNorm: biased var, eps in sqrt
        mu = jnp.mean(x2, axis=-1, keepdims=True)
        var = jnp.mean((x2 - mu) ** 2, axis=-1, keepdims=True)
        return (x2 - mu) * jax.lax.rsqrt(var + _LN_EPS) * gamma + beta

    def mha_w0(q2, k3, v3, w0_idx):
        """Multi-head attention + W0 output projection with the head concat
        fused into W0:  out = sum_h o_h @ W0T[h*hd:(h+1)*hd, :]  + b0."""
        q3 = q2.reshape(bt, n, d)
        w0 = w_ref[w0_idx]                      # (D, D), pre-transposed
        out2 = jnp.zeros((m, d), jnp.float32)
        for h in range(num_heads):              # static unroll, H is small
            sl = slice(h * hd, (h + 1) * hd)
            qs = q3[:, :, sl].astype(matmul_dtype)
            ks = (k3[:, :, sl] * scale).astype(matmul_dtype)  # scale folded in K
            vs = v3[:, :, sl].astype(matmul_dtype)
            s = jnp.einsum("bqe,bke->bqk", qs, ks,
                           preferred_element_type=jnp.float32)
            s = s - jnp.max(s, axis=-1, keepdims=True)
            e = jnp.exp(s)
            p = e * pl.reciprocal(jnp.sum(e, axis=-1, keepdims=True),
                                  approx=True)
            oh = jnp.einsum("bqk,bke->bqe", p.astype(matmul_dtype), vs,
                            preferred_element_type=jnp.float32)   # (Bt,N,hd)
            out2 = out2 + jnp.dot(oh.reshape(m, hd).astype(matmul_dtype),
                                  w0[sl, :].astype(matmul_dtype),
                                  preferred_element_type=jnp.float32)
        return out2 + b_ref[w0_idx]

    # --- self-attention block ---
    q2 = linear(h2, _WQ_SELF)
    k2 = linear(h2, _WK_SELF)
    v2 = linear(h2, _WV_SELF)
    h2 = h2 + mha_w0(q2, k2.reshape(bt, n, d), v2.reshape(bt, n, d), _W0_SELF)
    h2 = layernorm(h2)

    # --- cross-attention block (K_att / V_att precomputed outside) ---
    q2 = linear(h2, _WQ_ATT)
    h2 = h2 + mha_w0(q2, katt, vatt, _W0_ATT)
    h2 = layernorm(h2)

    # --- MLP block ---
    h2 = h2 + linear(jnp.maximum(linear(h2, _W1_MLP), 0.0), _W2_MLP)
    h2 = layernorm(h2)

    o_ref[...] = h2.reshape(bt, n, d).astype(o_ref.dtype)


def _pick_block_b(batch, cap=16):
    bt = min(batch, cap)
    while batch % bt:
        bt -= 1
    return bt


def transformer_decoder_layer(h_t, k_att, v_att, w_stack, b_stack, ln_stack,
                              num_heads, *, matmul_dtype=jnp.float32,
                              block_b=None):
    """h_t, k_att, v_att : (B, N, D) float32
       w_stack           : (8, D, D) float32, PyTorch (out, in) convention
       b_stack           : (8, 1, D) float32
       ln_stack          : (2, 1, D) float32 (gamma, beta)"""
    B, N, D = h_t.shape
    assert D % num_heads == 0
    bt = _pick_block_b(B) if block_b is None else block_b
    assert B % bt == 0

    # Pre-transpose weights once so the kernel contracts on their leading dim
    # (no in-kernel .T); cast here so the DMA'd weight block is already narrow
    # on the bf16 path.
    w_t = jnp.transpose(w_stack, (0, 2, 1)).astype(matmul_dtype)

    kernel = functools.partial(_decoder_layer_kernel, num_heads=num_heads,
                               matmul_dtype=matmul_dtype)
    act_spec = pl.BlockSpec((bt, N, D), lambda b: (b, 0, 0))
    return pl.pallas_call(
        kernel,
        out_shape=jax.ShapeDtypeStruct((B, N, D), jnp.float32),
        grid_spec=pltpu.PrefetchScalarGridSpec(
            num_scalar_prefetch=0,
            grid=(B // bt,),
            in_specs=[
                act_spec,                                      # h_t
                act_spec,                                      # K_att
                act_spec,                                      # V_att
                pl.BlockSpec((8, D, D), lambda b: (0, 0, 0)),  # weights (W.T)
                pl.BlockSpec((8, 1, D), lambda b: (0, 0, 0)),  # biases
                pl.BlockSpec((2, 1, D), lambda b: (0, 0, 0)),  # LN gamma/beta
            ],
            out_specs=pl.BlockSpec((bt, N, D), lambda b: (b, 0, 0)),
        ),
        compiler_params=pltpu.CompilerParams(
            dimension_semantics=("parallel",),
            vmem_limit_bytes=32 * 1024 * 1024),
    )(h_t, k_att, v_att, w_t, b_stack, ln_stack)


# ----------------------- pure-JAX reference ------------------------------
def _reference(h_t, k_att, v_att, w_stack, b_stack, ln_stack, num_heads):
    gamma, beta = ln_stack[0, 0], ln_stack[1, 0]

    def linear(x, i):
        return jnp.einsum("bnd,ed->bne", x, w_stack[i]) + b_stack[i, 0]

    def mha(q, k, v):
        B, N, D = q.shape
        hd = D // num_heads
        qh = q.reshape(B, N, num_heads, hd).transpose(0, 2, 1, 3)
        kh = k.reshape(B, N, num_heads, hd).transpose(0, 2, 1, 3)
        vh = v.reshape(B, N, num_heads, hd).transpose(0, 2, 1, 3)
        s = jnp.einsum("bhnd,bhmd->bhnm", qh, kh) / (hd ** 0.5)
        w = jax.nn.softmax(s, axis=-1)
        o = jnp.einsum("bhnm,bhmd->bhnd", w, vh)
        return o.transpose(0, 2, 1, 3).reshape(B, N, D)

    def ln(x):
        mu = x.mean(-1, keepdims=True)
        var = ((x - mu) ** 2).mean(-1, keepdims=True)
        return (x - mu) / jnp.sqrt(var + _LN_EPS) * gamma + beta

    h = h_t
    h = h + linear(mha(linear(h, _WQ_SELF), linear(h, _WK_SELF),
                       linear(h, _WV_SELF)), _W0_SELF)
    h = ln(h)
    h = h + linear(mha(linear(h, _WQ_ATT), k_att, v_att), _W0_ATT)
    h = ln(h)
    h = h + linear(jax.nn.relu(linear(h, _W1_MLP)), _W2_MLP)
    h = ln(h)
    return h


if __name__ == "__main__":
    B, N, D, H = 8, 8, 32, 4   # batch, nodes+1, num_dim, num_heads

    key = jax.random.PRNGKey(0)
    keys = jax.random.split(key, 5)

    h_t = jax.random.normal(keys[0], (B, N, D), dtype=jnp.float32)
    k_att = jax.random.normal(keys[1], (B, N, D), dtype=jnp.float32)
    v_att = jax.random.normal(keys[2], (B, N, D), dtype=jnp.float32)

    # deterministic synthetic parameters (8 Linear layers + shared LayerNorm)
    w_stack = 0.1 * jax.random.normal(keys[3], (8, D, D), dtype=jnp.float32)
    b_stack = 0.05 * jax.random.normal(keys[4], (8, 1, D), dtype=jnp.float32)
    ln_stack = jnp.stack([
        jnp.ones((1, D), jnp.float32),      # gamma
        jnp.zeros((1, D), jnp.float32),     # beta
    ])

    ref = _reference(h_t, k_att, v_att, w_stack, b_stack, ln_stack, H)

    # f32 MXU operands; block_b=4 -> 2 grid steps (exercises batch tiling).
    out = transformer_decoder_layer(h_t, k_att, v_att, w_stack, b_stack,
                                    ln_stack, H, block_b=4)
    out = jax.block_until_ready(out)
    assert out.shape == (B, N, D)
    assert jnp.allclose(out, ref, rtol=5e-3, atol=5e-3), (
        float(jnp.max(jnp.abs(out - ref))))

    # bf16 MXU operands (v6e/v7x fast path), f32 accumulation; looser tol.
    out_bf16 = transformer_decoder_layer(h_t, k_att, v_att, w_stack, b_stack,
                                         ln_stack, H,
                                         matmul_dtype=jnp.bfloat16)
    out_bf16 = jax.block_until_ready(out_bf16)
    assert jnp.allclose(out_bf16, ref, rtol=5e-2, atol=5e-2), (
        float(jnp.max(jnp.abs(out_bf16 - ref))))

    print("KERNEL_OK")
</pallas_src>

<mosaic_0001>
module attributes {stable_mosaic.version = 11 : i64} {
  func.func @_decoder_layer_kernel(%arg0: i32, %arg1: memref<4x8x32xf32, #tpu.memory_space<vmem>>, %arg2: memref<4x8x32xf32, #tpu.memory_space<vmem>>, %arg3: memref<4x8x32xf32, #tpu.memory_space<vmem>>, %arg4: memref<8x32x32xf32, #tpu.memory_space<vmem>>, %arg5: memref<8x1x32xf32, #tpu.memory_space<vmem>>, %arg6: memref<2x1x32xf32, #tpu.memory_space<vmem>>, %arg7: memref<4x8x32xf32, #tpu.memory_space<vmem>>) attributes {dimension_semantics = [#tpu.dimension_semantics<parallel>], iteration_bounds = array<i64: 2>, scalar_prefetch = 0 : i64, scratch_operands = 0 : i64, tpu.core_type = #tpu.core_type<tc>, window_params = [{transform_indices = @transform_0, window_bounds = array<i64: 4, 8, 32>}, {transform_indices = @transform_1, window_bounds = array<i64: 4, 8, 32>}, {transform_indices = @transform_2, window_bounds = array<i64: 4, 8, 32>}, {pipeline_mode = #tpu.pipeline_mode<synchronous>, transform_indices = @transform_3, window_bounds = array<i64: 8, 32, 32>}, {pipeline_mode = #tpu.pipeline_mode<synchronous>, transform_indices = @transform_4, window_bounds = array<i64: 8, 1, 32>}, {pipeline_mode = #tpu.pipeline_mode<synchronous>, transform_indices = @transform_5, window_bounds = array<i64: 2, 1, 32>}, {transform_indices = @transform_6, window_bounds = array<i64: 4, 8, 32>}]} {
    %c0 = arith.constant 0 : index
    %c0_0 = arith.constant 0 : index
    %c0_1 = arith.constant 0 : index
    %0 = vector.load %arg6[%c0, %c0_0, %c0_1] : memref<2x1x32xf32, #tpu.memory_space<vmem>>, vector<1x1x32xf32>
    %1 = vector.shape_cast %0 : vector<1x1x32xf32> to vector<1x32xf32>
    %c1 = arith.constant 1 : index
    %c0_2 = arith.constant 0 : index
    %c0_3 = arith.constant 0 : index
    %2 = vector.load %arg6[%c1, %c0_2, %c0_3] : memref<2x1x32xf32, #tpu.memory_space<vmem>>, vector<1x1x32xf32>
    %3 = vector.shape_cast %2 : vector<1x1x32xf32> to vector<1x32xf32>
    %c0_4 = arith.constant 0 : index
    %c0_5 = arith.constant 0 : index
    %c0_6 = arith.constant 0 : index
    %4 = vector.load %arg1[%c0_4, %c0_5, %c0_6] : memref<4x8x32xf32, #tpu.memory_space<vmem>>, vector<4x8x32xf32>
    %5 = vector.shape_cast %4 : vector<4x8x32xf32> to vector<32x32xf32>
    %c0_7 = arith.constant 0 : index
    %c0_8 = arith.constant 0 : index
    %c0_9 = arith.constant 0 : index
    %6 = vector.load %arg2[%c0_7, %c0_8, %c0_9] : memref<4x8x32xf32, #tpu.memory_space<vmem>>, vector<4x8x32xf32>
    %c0_10 = arith.constant 0 : index
    %c0_11 = arith.constant 0 : index
    %c0_12 = arith.constant 0 : index
    %7 = vector.load %arg3[%c0_10, %c0_11, %c0_12] : memref<4x8x32xf32, #tpu.memory_space<vmem>>, vector<4x8x32xf32>
    %c0_13 = arith.constant 0 : index
    %c0_14 = arith.constant 0 : index
    %c0_15 = arith.constant 0 : index
    %8 = vector.load %arg4[%c0_13, %c0_14, %c0_15] : memref<8x32x32xf32, #tpu.memory_space<vmem>>, vector<1x32x32xf32>
    %9 = vector.shape_cast %8 : vector<1x32x32xf32> to vector<32x32xf32>
    %cst = arith.constant dense<0.000000e+00> : vector<32x32xf32>
    %10 = tpu.matmul %5, %9, %cst {dimension_numbers = #tpu.dot_dimension_numbers<[1], [0], [0], [1], [0, 0, 1, 1], [], []>} : vector<32x32xf32>, vector<32x32xf32>, vector<32x32xf32> -> vector<32x32xf32>
    %c0_16 = arith.constant 0 : index
    %c0_17 = arith.constant 0 : index
    %c0_18 = arith.constant 0 : index
    %11 = vector.load %arg5[%c0_16, %c0_17, %c0_18] : memref<8x1x32xf32, #tpu.memory_space<vmem>>, vector<1x1x32xf32>
    %12 = vector.shape_cast %11 : vector<1x1x32xf32> to vector<1x32xf32>
    %13 = vector.broadcast %12 : vector<1x32xf32> to vector<32x32xf32>
    %14 = arith.addf %10, %13 : vector<32x32xf32>
    %c1_19 = arith.constant 1 : index
    %c0_20 = arith.constant 0 : index
    %c0_21 = arith.constant 0 : index
    %15 = vector.load %arg4[%c1_19, %c0_20, %c0_21] : memref<8x32x32xf32, #tpu.memory_space<vmem>>, vector<1x32x32xf32>
    %16 = vector.shape_cast %15 : vector<1x32x32xf32> to vector<32x32xf32>
    %cst_22 = arith.constant dense<0.000000e+00> : vector<32x32xf32>
    %17 = tpu.matmul %5, %16, %cst_22 {dimension_numbers = #tpu.dot_dimension_numbers<[1], [0], [0], [1], [0, 0, 1, 1], [], []>} : vector<32x32xf32>, vector<32x32xf32>, vector<32x32xf32> -> vector<32x32xf32>
    %c1_23 = arith.constant 1 : index
    %c0_24 = arith.constant 0 : index
    %c0_25 = arith.constant 0 : index
    %18 = vector.load %arg5[%c1_23, %c0_24, %c0_25] : memref<8x1x32xf32, #tpu.memory_space<vmem>>, vector<1x1x32xf32>
    %19 = vector.shape_cast %18 : vector<1x1x32xf32> to vector<1x32xf32>
    %20 = vector.broadcast %19 : vector<1x32xf32> to vector<32x32xf32>
    %21 = arith.addf %17, %20 : vector<32x32xf32>
    %c2 = arith.constant 2 : index
    %c0_26 = arith.constant 0 : index
    %c0_27 = arith.constant 0 : index
    %22 = vector.load %arg4[%c2, %c0_26, %c0_27] : memref<8x32x32xf32, #tpu.memory_space<vmem>>, vector<1x32x32xf32>
    %23 = vector.shape_cast %22 : vector<1x32x32xf32> to vector<32x32xf32>
    %cst_28 = arith.constant dense<0.000000e+00> : vector<32x32xf32>
    %24 = tpu.matmul %5, %23, %cst_28 {dimension_numbers = #tpu.dot_dimension_numbers<[1], [0], [0], [1], [0, 0, 1, 1], [], []>} : vector<32x32xf32>, vector<32x32xf32>, vector<32x32xf32> -> vector<32x32xf32>
    %c2_29 = arith.constant 2 : index
    %c0_30 = arith.constant 0 : index
    %c0_31 = arith.constant 0 : index
    %25 = vector.load %arg5[%c2_29, %c0_30, %c0_31] : memref<8x1x32xf32, #tpu.memory_space<vmem>>, vector<1x1x32xf32>
    %26 = vector.shape_cast %25 : vector<1x1x32xf32> to vector<1x32xf32>
    %27 = vector.broadcast %26 : vector<1x32xf32> to vector<32x32xf32>
    %28 = arith.addf %24, %27 : vector<32x32xf32>
    %29 = vector.shape_cast %21 : vector<32x32xf32> to vector<4x8x32xf32>
    %30 = vector.shape_cast %28 : vector<32x32xf32> to vector<4x8x32xf32>
    %31 = vector.shape_cast %14 : vector<32x32xf32> to vector<4x8x32xf32>
    %c3 = arith.constant 3 : index
    %c0_32 = arith.constant 0 : index
    %c0_33 = arith.constant 0 : index
    %32 = vector.load %arg4[%c3, %c0_32, %c0_33] : memref<8x32x32xf32, #tpu.memory_space<vmem>>, vector<1x32x32xf32>
    %33 = vector.shape_cast %32 : vector<1x32x32xf32> to vector<32x32xf32>
    %cst_34 = arith.constant 0.000000e+00 : f32
    %34 = vector.broadcast %cst_34 : f32 to vector<32x32xf32>
    %35 = vector.extract_strided_slice %31 {offsets = [0, 0, 0], sizes = [4, 8, 8], strides = [1, 1, 1]} : vector<4x8x32xf32> to vector<4x8x8xf32>
    %36 = vector.extract_strided_slice %29 {offsets = [0, 0, 0], sizes = [4, 8, 8], strides = [1, 1, 1]} : vector<4x8x32xf32> to vector<4x8x8xf32>
    %cst_35 = arith.constant 0.353553385 : f32
    %37 = vector.broadcast %cst_35 : f32 to vector<4x8x8xf32>
    %38 = arith.mulf %36, %37 : vector<4x8x8xf32>
    %39 = vector.extract_strided_slice %30 {offsets = [0, 0, 0], sizes = [4, 8, 8], strides = [1, 1, 1]} : vector<4x8x32xf32> to vector<4x8x8xf32>
    "tpu.trace_start"() <{level = 10 : i32, message = "bqe,bke->bqk"}> : () -> ()
    %cst_36 = arith.constant dense<0.000000e+00> : vector<4x8x8xf32>
    %40 = tpu.matmul %35, %38, %cst_36 {dimension_numbers = #tpu.dot_dimension_numbers<[2], [2], [1], [1], [0, 0, 0, 1, 1, 1], [0], [0]>} : vector<4x8x8xf32>, vector<4x8x8xf32>, vector<4x8x8xf32> -> vector<4x8x8xf32>
    "tpu.trace_stop"() : () -> ()
    %cst_37 = arith.constant dense<0xFF800000> : vector<4x8xf32>
    %41 = vector.multi_reduction <maximumf>, %40, %cst_37 [2] : vector<4x8x8xf32> to vector<4x8xf32>
    %42 = vector.shape_cast %41 : vector<4x8xf32> to vector<4x8x1xf32>
    %43 = vector.broadcast %42 : vector<4x8x1xf32> to vector<4x8x8xf32>
    %44 = arith.subf %40, %43 : vector<4x8x8xf32>
    %45 = math.exp %44 : vector<4x8x8xf32>
    %cst_38 = arith.constant dense<0.000000e+00> : vector<4x8xf32>
    %46 = vector.multi_reduction <add>, %45, %cst_38 [2] : vector<4x8x8xf32> to vector<4x8xf32>
    %47 = vector.shape_cast %46 : vector<4x8xf32> to vector<4x8x1xf32>
    %48 = tpu.reciprocal %47 {approx = true} : vector<4x8x1xf32> -> vector<4x8x1xf32>
    %49 = vector.broadcast %48 : vector<4x8x1xf32> to vector<4x8x8xf32>
    %50 = arith.mulf %45, %49 : vector<4x8x8xf32>
    "tpu.trace_start"() <{level = 10 : i32, message = "bqk,bke->bqe"}> : () -> ()
    %cst_39 = arith.constant dense<0.000000e+00> : vector<4x8x8xf32>
    %51 = tpu.matmul %50, %39, %cst_39 {dimension_numbers = #tpu.dot_dimension_numbers<[2], [1], [1], [2], [0, 0, 0, 1, 1, 2], [0], [0]>} : vector<4x8x8xf32>, vector<4x8x8xf32>, vector<4x8x8xf32> -> vector<4x8x8xf32>
    "tpu.trace_stop"() : () -> ()
    %52 = vector.shape_cast %51 : vector<4x8x8xf32> to vector<32x8xf32>
    %53 = vector.extract_strided_slice %33 {offsets = [0, 0], sizes = [8, 32], strides = [1, 1]} : vector<32x32xf32> to vector<8x32xf32>
    %cst_40 = arith.constant dense<0.000000e+00> : vector<32x32xf32>
    %54 = tpu.matmul %52, %53, %cst_40 {dimension_numbers = #tpu.dot_dimension_numbers<[1], [0], [0], [1], [0, 0, 1, 1], [], []>} : vector<32x8xf32>, vector<8x32xf32>, vector<32x32xf32> -> vector<32x32xf32>
    %55 = arith.addf %34, %54 : vector<32x32xf32>
    %56 = vector.extract_strided_slice %31 {offsets = [0, 0, 8], sizes = [4, 8, 8], strides = [1, 1, 1]} : vector<4x8x32xf32> to vector<4x8x8xf32>
    %57 = vector.extract_strided_slice %29 {offsets = [0, 0, 8], sizes = [4, 8, 8], strides = [1, 1, 1]} : vector<4x8x32xf32> to vector<4x8x8xf32>
    %cst_41 = arith.constant 0.353553385 : f32
    %58 = vector.broadcast %cst_41 : f32 to vector<4x8x8xf32>
    %59 = arith.mulf %57, %58 : vector<4x8x8xf32>
    %60 = vector.extract_strided_slice %30 {offsets = [0, 0, 8], sizes = [4, 8, 8], strides = [1, 1, 1]} : vector<4x8x32xf32> to vector<4x8x8xf32>
    "tpu.trace_start"() <{level = 10 : i32, message = "bqe,bke->bqk"}> : () -> ()
    %cst_42 = arith.constant dense<0.000000e+00> : vector<4x8x8xf32>
    %61 = tpu.matmul %56, %59, %cst_42 {dimension_numbers = #tpu.dot_dimension_numbers<[2], [2], [1], [1], [0, 0, 0, 1, 1, 1], [0], [0]>} : vector<4x8x8xf32>, vector<4x8x8xf32>, vector<4x8x8xf32> -> vector<4x8x8xf32>
    "tpu.trace_stop"() : () -> ()
    %cst_43 = arith.constant dense<0xFF800000> : vector<4x8xf32>
    %62 = vector.multi_reduction <maximumf>, %61, %cst_43 [2] : vector<4x8x8xf32> to vector<4x8xf32>
    %63 = vector.shape_cast %62 : vector<4x8xf32> to vector<4x8x1xf32>
    %64 = vector.broadcast %63 : vector<4x8x1xf32> to vector<4x8x8xf32>
    %65 = arith.subf %61, %64 : vector<4x8x8xf32>
    %66 = math.exp %65 : vector<4x8x8xf32>
    %cst_44 = arith.constant dense<0.000000e+00> : vector<4x8xf32>
    %67 = vector.multi_reduction <add>, %66, %cst_44 [2] : vector<4x8x8xf32> to vector<4x8xf32>
    %68 = vector.shape_cast %67 : vector<4x8xf32> to vector<4x8x1xf32>
    %69 = tpu.reciprocal %68 {approx = true} : vector<4x8x1xf32> -> vector<4x8x1xf32>
    %70 = vector.broadcast %69 : vector<4x8x1xf32> to vector<4x8x8xf32>
    %71 = arith.mulf %66, %70 : vector<4x8x8xf32>
    "tpu.trace_start"() <{level = 10 : i32, message = "bqk,bke->bqe"}> : () -> ()
    %cst_45 = arith.constant dense<0.000000e+00> : vector<4x8x8xf32>
    %72 = tpu.matmul %71, %60, %cst_45 {dimension_numbers = #tpu.dot_dimension_numbers<[2], [1], [1], [2], [0, 0, 0, 1, 1, 2], [0], [0]>} : vector<4x8x8xf32>, vector<4x8x8xf32>, vector<4x8x8xf32> -> vector<4x8x8xf32>
    "tpu.trace_stop"() : () -> ()
    %73 = vector.shape_cast %72 : vector<4x8x8xf32> to vector<32x8xf32>
    %74 = vector.extract_strided_slice %33 {offsets = [8, 0], sizes = [8, 32], strides = [1, 1]} : vector<32x32xf32> to vector<8x32xf32>
    %cst_46 = arith.constant dense<0.000000e+00> : vector<32x32xf32>
    %75 = tpu.matmul %73, %74, %cst_46 {dimension_numbers = #tpu.dot_dimension_numbers<[1], [0], [0], [1], [0, 0, 1, 1], [], []>} : vector<32x8xf32>, vector<8x32xf32>, vector<32x32xf32> -> vector<32x32xf32>
    %76 = arith.addf %55, %75 : vector<32x32xf32>
    %77 = vector.extract_strided_slice %31 {offsets = [0, 0, 16], sizes = [4, 8, 8], strides = [1, 1, 1]} : vector<4x8x32xf32> to vector<4x8x8xf32>
    %78 = vector.extract_strided_slice %29 {offsets = [0, 0, 16], sizes = [4, 8, 8], strides = [1, 1, 1]} : vector<4x8x32xf32> to vector<4x8x8xf32>
    %cst_47 = arith.constant 0.353553385 : f32
    %79 = vector.broadcast %cst_47 : f32 to vector<4x8x8xf32>
    %80 = arith.mulf %78, %79 : vector<4x8x8xf32>
    %81 = vector.extract_strided_slice %30 {offsets = [0, 0, 16], sizes = [4, 8, 8], strides = [1, 1, 1]} : vector<4x8x32xf32> to vector<4x8x8xf32>
    "tpu.trace_start"() <{level = 10 : i32, message = "bqe,bke->bqk"}> : () -> ()
    %cst_48 = arith.constant dense<0.000000e+00> : vector<4x8x8xf32>
    %82 = tpu.matmul %77, %80, %cst_48 {dimension_numbers = #tpu.dot_dimension_numbers<[2], [2], [1], [1], [0, 0, 0, 1, 1, 1], [0], [0]>} : vector<4x8x8xf32>, vector<4x8x8xf32>, vector<4x8x8xf32> -> vector<4x8x8xf32>
    "tpu.trace_stop"() : () -> ()
    %cst_49 = arith.constant dense<0xFF800000> : vector<4x8xf32>
    %83 = vector.multi_reduction <maximumf>, %82, %cst_49 [2] : vector<4x8x8xf32> to vector<4x8xf32>
    %84 = vector.shape_cast %83 : vector<4x8xf32> to vector<4x8x1xf32>
    %85 = vector.broadcast %84 : vector<4x8x1xf32> to vector<4x8x8xf32>
    %86 = arith.subf %82, %85 : vector<4x8x8xf32>
    %87 = math.exp %86 : vector<4x8x8xf32>
    %cst_50 = arith.constant dense<0.000000e+00> : vector<4x8xf32>
    %88 = vector.multi_reduction <add>, %87, %cst_50 [2] : vector<4x8x8xf32> to vector<4x8xf32>
    %89 = vector.shape_cast %88 : vector<4x8xf32> to vector<4x8x1xf32>
    %90 = tpu.reciprocal %89 {approx = true} : vector<4x8x1xf32> -> vector<4x8x1xf32>
    %91 = vector.broadcast %90 : vector<4x8x1xf32> to vector<4x8x8xf32>
    %92 = arith.mulf %87, %91 : vector<4x8x8xf32>
    "tpu.trace_start"() <{level = 10 : i32, message = "bqk,bke->bqe"}> : () -> ()
    %cst_51 = arith.constant dense<0.000000e+00> : vector<4x8x8xf32>
    %93 = tpu.matmul %92, %81, %cst_51 {dimension_numbers = #tpu.dot_dimension_numbers<[2], [1], [1], [2], [0, 0, 0, 1, 1, 2], [0], [0]>} : vector<4x8x8xf32>, vector<4x8x8xf32>, vector<4x8x8xf32> -> vector<4x8x8xf32>
    "tpu.trace_stop"() : () -> ()
    %94 = vector.shape_cast %93 : vector<4x8x8xf32> to vector<32x8xf32>
    %95 = vector.extract_strided_slice %33 {offsets = [16, 0], sizes = [8, 32], strides = [1, 1]} : vector<32x32xf32> to vector<8x32xf32>
    %cst_52 = arith.constant dense<0.000000e+00> : vector<32x32xf32>
    %96 = tpu.matmul %94, %95, %cst_52 {dimension_numbers = #tpu.dot_dimension_numbers<[1], [0], [0], [1], [0, 0, 1, 1], [], []>} : vector<32x8xf32>, vector<8x32xf32>, vector<32x32xf32> -> vector<32x32xf32>
    %97 = arith.addf %76, %96 : vector<32x32xf32>
    %98 = vector.extract_strided_slice %31 {offsets = [0, 0, 24], sizes = [4, 8, 8], strides = [1, 1, 1]} : vector<4x8x32xf32> to vector<4x8x8xf32>
    %99 = vector.extract_strided_slice %29 {offsets = [0, 0, 24], sizes = [4, 8, 8], strides = [1, 1, 1]} : vector<4x8x32xf32> to vector<4x8x8xf32>
    %cst_53 = arith.constant 0.353553385 : f32
    %100 = vector.broadcast %cst_53 : f32 to vector<4x8x8xf32>
    %101 = arith.mulf %99, %100 : vector<4x8x8xf32>
    %102 = vector.extract_strided_slice %30 {offsets = [0, 0, 24], sizes = [4, 8, 8], strides = [1, 1, 1]} : vector<4x8x32xf32> to vector<4x8x8xf32>
    "tpu.trace_start"() <{level = 10 : i32, message = "bqe,bke->bqk"}> : () -> ()
    %cst_54 = arith.constant dense<0.000000e+00> : vector<4x8x8xf32>
    %103 = tpu.matmul %98, %101, %cst_54 {dimension_numbers = #tpu.dot_dimension_numbers<[2], [2], [1], [1], [0, 0, 0, 1, 1, 1], [0], [0]>} : vector<4x8x8xf32>, vector<4x8x8xf32>, vector<4x8x8xf32> -> vector<4x8x8xf32>
    "tpu.trace_stop"() : () -> ()
    %cst_55 = arith.constant dense<0xFF800000> : vector<4x8xf32>
    %104 = vector.multi_reduction <maximumf>, %103, %cst_55 [2] : vector<4x8x8xf32> to vector<4x8xf32>
    %105 = vector.shape_cast %104 : vector<4x8xf32> to vector<4x8x1xf32>
    %106 = vector.broadcast %105 : vector<4x8x1xf32> to vector<4x8x8xf32>
    %107 = arith.subf %103, %106 : vector<4x8x8xf32>
    %108 = math.exp %107 : vector<4x8x8xf32>
    %cst_56 = arith.constant dense<0.000000e+00> : vector<4x8xf32>
    %109 = vector.multi_reduction <add>, %108, %cst_56 [2] : vector<4x8x8xf32> to vector<4x8xf32>
    %110 = vector.shape_cast %109 : vector<4x8xf32> to vector<4x8x1xf32>
    %111 = tpu.reciprocal %110 {approx = true} : vector<4x8x1xf32> -> vector<4x8x1xf32>
    %112 = vector.broadcast %111 : vector<4x8x1xf32> to vector<4x8x8xf32>
    %113 = arith.mulf %108, %112 : vector<4x8x8xf32>
    "tpu.trace_start"() <{level = 10 : i32, message = "bqk,bke->bqe"}> : () -> ()
    %cst_57 = arith.constant dense<0.000000e+00> : vector<4x8x8xf32>
    %114 = tpu.matmul %113, %102, %cst_57 {dimension_numbers = #tpu.dot_dimension_numbers<[2], [1], [1], [2], [0, 0, 0, 1, 1, 2], [0], [0]>} : vector<4x8x8xf32>, vector<4x8x8xf32>, vector<4x8x8xf32> -> vector<4x8x8xf32>
    "tpu.trace_stop"() : () -> ()
    %115 = vector.shape_cast %114 : vector<4x8x8xf32> to vector<32x8xf32>
    %116 = vector.extract_strided_slice %33 {offsets = [24, 0], sizes = [8, 32], strides = [1, 1]} : vector<32x32xf32> to vector<8x32xf32>
    %cst_58 = arith.constant dense<0.000000e+00> : vector<32x32xf32>
    %117 = tpu.matmul %115, %116, %cst_58 {dimension_numbers = #tpu.dot_dimension_numbers<[1], [0], [0], [1], [0, 0, 1, 1], [], []>} : vector<32x8xf32>, vector<8x32xf32>, vector<32x32xf32> -> vector<32x32xf32>
    %118 = arith.addf %97, %117 : vector<32x32xf32>
    %c3_59 = arith.constant 3 : index
    %c0_60 = arith.constant 0 : index
    %c0_61 = arith.constant 0 : index
    %119 = vector.load %arg5[%c3_59, %c0_60, %c0_61] : memref<8x1x32xf32, #tpu.memory_space<vmem>>, vector<1x1x32xf32>
    %120 = vector.shape_cast %119 : vector<1x1x32xf32> to vector<1x32xf32>
    %121 = vector.broadcast %120 : vector<1x32xf32> to vector<32x32xf32>
    %122 = arith.addf %118, %121 : vector<32x32xf32>
    %123 = arith.addf %5, %122 : vector<32x32xf32>
    %cst_62 = arith.constant dense<0.000000e+00> : vector<32xf32>
    %124 = vector.multi_reduction <add>, %123, %cst_62 [1] : vector<32x32xf32> to vector<32xf32>
    %125 = vector.shape_cast %124 : vector<32xf32> to vector<32x1xf32>
    %cst_63 = arith.constant 3.200000e+01 : f32
    %126 = vector.broadcast %cst_63 : f32 to vector<32x1xf32>
    %127 = arith.divf %125, %126 : vector<32x1xf32>
    %128 = vector.broadcast %127 : vector<32x1xf32> to vector<32x32xf32>
    %129 = arith.subf %123, %128 : vector<32x32xf32>
    %130 = arith.mulf %129, %129 : vector<32x32xf32>
    %cst_64 = arith.constant dense<0.000000e+00> : vector<32xf32>
    %131 = vector.multi_reduction <add>, %130, %cst_64 [1] : vector<32x32xf32> to vector<32xf32>
    %132 = vector.shape_cast %131 : vector<32xf32> to vector<32x1xf32>
    %cst_65 = arith.constant 3.200000e+01 : f32
    %133 = vector.broadcast %cst_65 : f32 to vector<32x1xf32>
    %134 = arith.divf %132, %133 : vector<32x1xf32>
    %135 = vector.broadcast %127 : vector<32x1xf32> to vector<32x32xf32>
    %136 = arith.subf %123, %135 : vector<32x32xf32>
    %cst_66 = arith.constant 9.99999974E-6 : f32
    %137 = vector.broadcast %cst_66 : f32 to vector<32x1xf32>
    %138 = arith.addf %134, %137 : vector<32x1xf32>
    %139 = math.rsqrt %138 : vector<32x1xf32>
    %140 = vector.broadcast %139 : vector<32x1xf32> to vector<32x32xf32>
    %141 = arith.mulf %136, %140 : vector<32x32xf32>
    %142 = vector.broadcast %1 : vector<1x32xf32> to vector<32x32xf32>
    %143 = arith.mulf %141, %142 : vector<32x32xf32>
    %144 = vector.broadcast %3 : vector<1x32xf32> to vector<32x32xf32>
    %145 = arith.addf %143, %144 : vector<32x32xf32>
    %c5 = arith.constant 5 : index
    %c0_67 = arith.constant 0 : index
    %c0_68 = arith.constant 0 : index
    %146 = vector.load %arg4[%c5, %c0_67, %c0_68] : memref<8x32x32xf32, #tpu.memory_space<vmem>>, vector<1x32x32xf32>
    %147 = vector.shape_cast %146 : vector<1x32x32xf32> to vector<32x32xf32>
    %cst_69 = arith.constant dense<0.000000e+00> : vector<32x32xf32>
    %148 = tpu.matmul %145, %147, %cst_69 {dimension_numbers = #tpu.dot_dimension_numbers<[1], [0], [0], [1], [0, 0, 1, 1], [], []>} : vector<32x32xf32>, vector<32x32xf32>, vector<32x32xf32> -> vector<32x32xf32>
    %c5_70 = arith.constant 5 : index
    %c0_71 = arith.constant 0 : index
    %c0_72 = arith.constant 0 : index
    %149 = vector.load %arg5[%c5_70, %c0_71, %c0_72] : memref<8x1x32xf32, #tpu.memory_space<vmem>>, vector<1x1x32xf32>
    %150 = vector.shape_cast %149 : vector<1x1x32xf32> to vector<1x32xf32>
    %151 = vector.broadcast %150 : vector<1x32xf32> to vector<32x32xf32>
    %152 = arith.addf %148, %151 : vector<32x32xf32>
    %153 = vector.shape_cast %152 : vector<32x32xf32> to vector<4x8x32xf32>
    %c4 = arith.constant 4 : index
    %c0_73 = arith.constant 0 : index
    %c0_74 = arith.constant 0 : index
    %154 = vector.load %arg4[%c4, %c0_73, %c0_74] : memref<8x32x32xf32, #tpu.memory_space<vmem>>, vector<1x32x32xf32>
    %155 = vector.shape_cast %154 : vector<1x32x32xf32> to vector<32x32xf32>
    %cst_75 = arith.constant 0.000000e+00 : f32
    %156 = vector.broadcast %cst_75 : f32 to vector<32x32xf32>
    %157 = vector.extract_strided_slice %153 {offsets = [0, 0, 0], sizes = [4, 8, 8], strides = [1, 1, 1]} : vector<4x8x32xf32> to vector<4x8x8xf32>
    %158 = vector.extract_strided_slice %6 {offsets = [0, 0, 0], sizes = [4, 8, 8], strides = [1, 1, 1]} : vector<4x8x32xf32> to vector<4x8x8xf32>
    %cst_76 = arith.constant 0.353553385 : f32
    %159 = vector.broadcast %cst_76 : f32 to vector<4x8x8xf32>
    %160 = arith.mulf %158, %159 : vector<4x8x8xf32>
    %161 = vector.extract_strided_slice %7 {offsets = [0, 0, 0], sizes = [4, 8, 8], strides = [1, 1, 1]} : vector<4x8x32xf32> to vector<4x8x8xf32>
    "tpu.trace_start"() <{level = 10 : i32, message = "bqe,bke->bqk"}> : () -> ()
    %cst_77 = arith.constant dense<0.000000e+00> : vector<4x8x8xf32>
    %162 = tpu.matmul %157, %160, %cst_77 {dimension_numbers = #tpu.dot_dimension_numbers<[2], [2], [1], [1], [0, 0, 0, 1, 1, 1], [0], [0]>} : vector<4x8x8xf32>, vector<4x8x8xf32>, vector<4x8x8xf32> -> vector<4x8x8xf32>
    "tpu.trace_stop"() : () -> ()
    %cst_78 = arith.constant dense<0xFF800000> : vector<4x8xf32>
    %163 = vector.multi_reduction <maximumf>, %162, %cst_78 [2] : vector<4x8x8xf32> to vector<4x8xf32>
    %164 = vector.shape_cast %163 : vector<4x8xf32> to vector<4x8x1xf32>
    %165 = vector.broadcast %164 : vector<4x8x1xf32> to vector<4x8x8xf32>
    %166 = arith.subf %162, %165 : vector<4x8x8xf32>
    %167 = math.exp %166 : vector<4x8x8xf32>
    %cst_79 = arith.constant dense<0.000000e+00> : vector<4x8xf32>
    %168 = vector.multi_reduction <add>, %167, %cst_79 [2] : vector<4x8x8xf32> to vector<4x8xf32>
    %169 = vector.shape_cast %168 : vector<4x8xf32> to vector<4x8x1xf32>
    %170 = tpu.reciprocal %169 {approx = true} : vector<4x8x1xf32> -> vector<4x8x1xf32>
    %171 = vector.broadcast %170 : vector<4x8x1xf32> to vector<4x8x8xf32>
    %172 = arith.mulf %167, %171 : vector<4x8x8xf32>
    "tpu.trace_start"() <{level = 10 : i32, message = "bqk,bke->bqe"}> : () -> ()
    %cst_80 = arith.constant dense<0.000000e+00> : vector<4x8x8xf32>
    %173 = tpu.matmul %172, %161, %cst_80 {dimension_numbers = #tpu.dot_dimension_numbers<[2], [1], [1], [2], [0, 0, 0, 1, 1, 2], [0], [0]>} : vector<4x8x8xf32>, vector<4x8x8xf32>, vector<4x8x8xf32> -> vector<4x8x8xf32>
    "tpu.trace_stop"() : () -> ()
    %174 = vector.shape_cast %173 : vector<4x8x8xf32> to vector<32x8xf32>
    %175 = vector.extract_strided_slice %155 {offsets = [0, 0], sizes = [8, 32], strides = [1, 1]} : vector<32x32xf32> to vector<8x32xf32>
    %cst_81 = arith.constant dense<0.000000e+00> : vector<32x32xf32>
    %176 = tpu.matmul %174, %175, %cst_81 {dimension_numbers = #tpu.dot_dimension_numbers<[1], [0], [0], [1], [0, 0, 1, 1], [], []>} : vector<32x8xf32>, vector<8x32xf32>, vector<32x32xf32> -> vector<32x32xf32>
    %177 = arith.addf %156, %176 : vector<32x32xf32>
    %178 = vector.extract_strided_slice %153 {offsets = [0, 0, 8], sizes = [4, 8, 8], strides = [1, 1, 1]} : vector<4x8x32xf32> to vector<4x8x8xf32>
    %179 = vector.extract_strided_slice %6 {offsets = [0, 0, 8], sizes = [4, 8, 8], strides = [1, 1, 1]} : vector<4x8x32xf32> to vector<4x8x8xf32>
    %cst_82 = arith.constant 0.353553385 : f32
    %180 = vector.broadcast %cst_82 : f32 to vector<4x8x8xf32>
    %181 = arith.mulf %179, %180 : vector<4x8x8xf32>
    %182 = vector.extract_strided_slice %7 {offsets = [0, 0, 8], sizes = [4, 8, 8], strides = [1, 1, 1]} : vector<4x8x32xf32> to vector<4x8x8xf32>
    "tpu.trace_start"() <{level = 10 : i32, message = "bqe,bke->bqk"}> : () -> ()
    %cst_83 = arith.constant dense<0.000000e+00> : vector<4x8x8xf32>
    %183 = tpu.matmul %178, %181, %cst_83 {dimension_numbers = #tpu.dot_dimension_numbers<[2], [2], [1], [1], [0, 0, 0, 1, 1, 1], [0], [0]>} : vector<4x8x8xf32>, vector<4x8x8xf32>, vector<4x8x8xf32> -> vector<4x8x8xf32>
    "tpu.trace_stop"() : () -> ()
    %cst_84 = arith.constant dense<0xFF800000> : vector<4x8xf32>
    %184 = vector.multi_reduction <maximumf>, %183, %cst_84 [2] : vector<4x8x8xf32> to vector<4x8xf32>
    %185 = vector.shape_cast %184 : vector<4x8xf32> to vector<4x8x1xf32>
    %186 = vector.broadcast %185 : vector<4x8x1xf32> to vector<4x8x8xf32>
    %187 = arith.subf %183, %186 : vector<4x8x8xf32>
    %188 = math.exp %187 : vector<4x8x8xf32>
    %cst_85 = arith.constant dense<0.000000e+00> : vector<4x8xf32>
    %189 = vector.multi_reduction <add>, %188, %cst_85 [2] : vector<4x8x8xf32> to vector<4x8xf32>
    %190 = vector.shape_cast %189 : vector<4x8xf32> to vector<4x8x1xf32>
    %191 = tpu.reciprocal %190 {approx = true} : vector<4x8x1xf32> -> vector<4x8x1xf32>
    %192 = vector.broadcast %191 : vector<4x8x1xf32> to vector<4x8x8xf32>
    %193 = arith.mulf %188, %192 : vector<4x8x8xf32>
    "tpu.trace_start"() <{level = 10 : i32, message = "bqk,bke->bqe"}> : () -> ()
    %cst_86 = arith.constant dense<0.000000e+00> : vector<4x8x8xf32>
    %194 = tpu.matmul %193, %182, %cst_86 {dimension_numbers = #tpu.dot_dimension_numbers<[2], [1], [1], [2], [0, 0, 0, 1, 1, 2], [0], [0]>} : vector<4x8x8xf32>, vector<4x8x8xf32>, vector<4x8x8xf32> -> vector<4x8x8xf32>
    "tpu.trace_stop"() : () -> ()
    %195 = vector.shape_cast %194 : vector<4x8x8xf32> to vector<32x8xf32>
    %196 = vector.extract_strided_slice %155 {offsets = [8, 0], sizes = [8, 32], strides = [1, 1]} : vector<32x32xf32> to vector<8x32xf32>
    %cst_87 = arith.constant dense<0.000000e+00> : vector<32x32xf32>
    %197 = tpu.matmul %195, %196, %cst_87 {dimension_numbers = #tpu.dot_dimension_numbers<[1], [0], [0], [1], [0, 0, 1, 1], [], []>} : vector<32x8xf32>, vector<8x32xf32>, vector<32x32xf32> -> vector<32x32xf32>
    %198 = arith.addf %177, %197 : vector<32x32xf32>
    %199 = vector.extract_strided_slice %153 {offsets = [0, 0, 16], sizes = [4, 8, 8], strides = [1, 1, 1]} : vector<4x8x32xf32> to vector<4x8x8xf32>
    %200 = vector.extract_strided_slice %6 {offsets = [0, 0, 16], sizes = [4, 8, 8], strides = [1, 1, 1]} : vector<4x8x32xf32> to vector<4x8x8xf32>
    %cst_88 = arith.constant 0.353553385 : f32
    %201 = vector.broadcast %cst_88 : f32 to vector<4x8x8xf32>
    %202 = arith.mulf %200, %201 : vector<4x8x8xf32>
    %203 = vector.extract_strided_slice %7 {offsets = [0, 0, 16], sizes = [4, 8, 8], strides = [1, 1, 1]} : vector<4x8x32xf32> to vector<4x8x8xf32>
    "tpu.trace_start"() <{level = 10 : i32, message = "bqe,bke->bqk"}> : () -> ()
    %cst_89 = arith.constant dense<0.000000e+00> : vector<4x8x8xf32>
    %204 = tpu.matmul %199, %202, %cst_89 {dimension_numbers = #tpu.dot_dimension_numbers<[2], [2], [1], [1], [0, 0, 0, 1, 1, 1], [0], [0]>} : vector<4x8x8xf32>, vector<4x8x8xf32>, vector<4x8x8xf32> -> vector<4x8x8xf32>
    "tpu.trace_stop"() : () -> ()
    %cst_90 = arith.constant dense<0xFF800000> : vector<4x8xf32>
    %205 = vector.multi_reduction <maximumf>, %204, %cst_90 [2] : vector<4x8x8xf32> to vector<4x8xf32>
    %206 = vector.shape_cast %205 : vector<4x8xf32> to vector<4x8x1xf32>
    %207 = vector.broadcast %206 : vector<4x8x1xf32> to vector<4x8x8xf32>
    %208 = arith.subf %204, %207 : vector<4x8x8xf32>
    %209 = math.exp %208 : vector<4x8x8xf32>
    %cst_91 = arith.constant dense<0.000000e+00> : vector<4x8xf32>
    %210 = vector.multi_reduction <add>, %209, %cst_91 [2] : vector<4x8x8xf32> to vector<4x8xf32>
    %211 = vector.shape_cast %210 : vector<4x8xf32> to vector<4x8x1xf32>
    %212 = tpu.reciprocal %211 {approx = true} : vector<4x8x1xf32> -> vector<4x8x1xf32>
    %213 = vector.broadcast %212 : vector<4x8x1xf32> to vector<4x8x8xf32>
    %214 = arith.mulf %209, %213 : vector<4x8x8xf32>
    "tpu.trace_start"() <{level = 10 : i32, message = "bqk,bke->bqe"}> : () -> ()
    %cst_92 = arith.constant dense<0.000000e+00> : vector<4x8x8xf32>
    %215 = tpu.matmul %214, %203, %cst_92 {dimension_numbers = #tpu.dot_dimension_numbers<[2], [1], [1], [2], [0, 0, 0, 1, 1, 2], [0], [0]>} : vector<4x8x8xf32>, vector<4x8x8xf32>, vector<4x8x8xf32> -> vector<4x8x8xf32>
    "tpu.trace_stop"() : () -> ()
    %216 = vector.shape_cast %215 : vector<4x8x8xf32> to vector<32x8xf32>
    %217 = vector.extract_strided_slice %155 {offsets = [16, 0], sizes = [8, 32], strides = [1, 1]} : vector<32x32xf32> to vector<8x32xf32>
    %cst_93 = arith.constant dense<0.000000e+00> : vector<32x32xf32>
    %218 = tpu.matmul %216, %217, %cst_93 {dimension_numbers = #tpu.dot_dimension_numbers<[1], [0], [0], [1], [0, 0, 1, 1], [], []>} : vector<32x8xf32>, vector<8x32xf32>, vector<32x32xf32> -> vector<32x32xf32>
    %219 = arith.addf %198, %218 : vector<32x32xf32>
    %220 = vector.extract_strided_slice %153 {offsets = [0, 0, 24], sizes = [4, 8, 8], strides = [1, 1, 1]} : vector<4x8x32xf32> to vector<4x8x8xf32>
    %221 = vector.extract_strided_slice %6 {offsets = [0, 0, 24], sizes = [4, 8, 8], strides = [1, 1, 1]} : vector<4x8x32xf32> to vector<4x8x8xf32>
    %cst_94 = arith.constant 0.353553385 : f32
    %222 = vector.broadcast %cst_94 : f32 to vector<4x8x8xf32>
    %223 = arith.mulf %221, %222 : vector<4x8x8xf32>
    %224 = vector.extract_strided_slice %7 {offsets = [0, 0, 24], sizes = [4, 8, 8], strides = [1, 1, 1]} : vector<4x8x32xf32> to vector<4x8x8xf32>
    "tpu.trace_start"() <{level = 10 : i32, message = "bqe,bke->bqk"}> : () -> ()
    %cst_95 = arith.constant dense<0.000000e+00> : vector<4x8x8xf32>
    %225 = tpu.matmul %220, %223, %cst_95 {dimension_numbers = #tpu.dot_dimension_numbers<[2], [2], [1], [1], [0, 0, 0, 1, 1, 1], [0], [0]>} : vector<4x8x8xf32>, vector<4x8x8xf32>, vector<4x8x8xf32> -> vector<4x8x8xf32>
    "tpu.trace_stop"() : () -> ()
    %cst_96 = arith.constant dense<0xFF800000> : vector<4x8xf32>
    %226 = vector.multi_reduction <maximumf>, %225, %cst_96 [2] : vector<4x8x8xf32> to vector<4x8xf32>
    %227 = vector.shape_cast %226 : vector<4x8xf32> to vector<4x8x1xf32>
    %228 = vector.broadcast %227 : vector<4x8x1xf32> to vector<4x8x8xf32>
    %229 = arith.subf %225, %228 : vector<4x8x8xf32>
    %230 = math.exp %229 : vector<4x8x8xf32>
    %cst_97 = arith.constant dense<0.000000e+00> : vector<4x8xf32>
    %231 = vector.multi_reduction <add>, %230, %cst_97 [2] : vector<4x8x8xf32> to vector<4x8xf32>
    %232 = vector.shape_cast %231 : vector<4x8xf32> to vector<4x8x1xf32>
    %233 = tpu.reciprocal %232 {approx = true} : vector<4x8x1xf32> -> vector<4x8x1xf32>
    %234 = vector.broadcast %233 : vector<4x8x1xf32> to vector<4x8x8xf32>
    %235 = arith.mulf %230, %234 : vector<4x8x8xf32>
    "tpu.trace_start"() <{level = 10 : i32, message = "bqk,bke->bqe"}> : () -> ()
    %cst_98 = arith.constant dense<0.000000e+00> : vector<4x8x8xf32>
    %236 = tpu.matmul %235, %224, %cst_98 {dimension_numbers = #tpu.dot_dimension_numbers<[2], [1], [1], [2], [0, 0, 0, 1, 1, 2], [0], [0]>} : vector<4x8x8xf32>, vector<4x8x8xf32>, vector<4x8x8xf32> -> vector<4x8x8xf32>
    "tpu.trace_stop"() : () -> ()
    %237 = vector.shape_cast %236 : vector<4x8x8xf32> to vector<32x8xf32>
    %238 = vector.extract_strided_slice %155 {offsets = [24, 0], sizes = [8, 32], strides = [1, 1]} : vector<32x32xf32> to vector<8x32xf32>
    %cst_99 = arith.constant dense<0.000000e+00> : vector<32x32xf32>
    %239 = tpu.matmul %237, %238, %cst_99 {dimension_numbers = #tpu.dot_dimension_numbers<[1], [0], [0], [1], [0, 0, 1, 1], [], []>} : vector<32x8xf32>, vector<8x32xf32>, vector<32x32xf32> -> vector<32x32xf32>
    %240 = arith.addf %219, %239 : vector<32x32xf32>
    %c4_100 = arith.constant 4 : index
    %c0_101 = arith.constant 0 : index
    %c0_102 = arith.constant 0 : index
    %241 = vector.load %arg5[%c4_100, %c0_101, %c0_102] : memref<8x1x32xf32, #tpu.memory_space<vmem>>, vector<1x1x32xf32>
    %242 = vector.shape_cast %241 : vector<1x1x32xf32> to vector<1x32xf32>
    %243 = vector.broadcast %242 : vector<1x32xf32> to vector<32x32xf32>
    %244 = arith.addf %240, %243 : vector<32x32xf32>
    %245 = arith.addf %145, %244 : vector<32x32xf32>
    %cst_103 = arith.constant dense<0.000000e+00> : vector<32xf32>
    %246 = vector.multi_reduction <add>, %245, %cst_103 [1] : vector<32x32xf32> to vector<32xf32>
    %247 = vector.shape_cast %246 : vector<32xf32> to vector<32x1xf32>
    %cst_104 = arith.constant 3.200000e+01 : f32
    %248 = vector.broadcast %cst_104 : f32 to vector<32x1xf32>
    %249 = arith.divf %247, %248 : vector<32x1xf32>
    %250 = vector.broadcast %249 : vector<32x1xf32> to vector<32x32xf32>
    %251 = arith.subf %245, %250 : vector<32x32xf32>
    %252 = arith.mulf %251, %251 : vector<32x32xf32>
    %cst_105 = arith.constant dense<0.000000e+00> : vector<32xf32>
    %253 = vector.multi_reduction <add>, %252, %cst_105 [1] : vector<32x32xf32> to vector<32xf32>
    %254 = vector.shape_cast %253 : vector<32xf32> to vector<32x1xf32>
    %cst_106 = arith.constant 3.200000e+01 : f32
    %255 = vector.broadcast %cst_106 : f32 to vector<32x1xf32>
    %256 = arith.divf %254, %255 : vector<32x1xf32>
    %257 = vector.broadcast %249 : vector<32x1xf32> to vector<32x32xf32>
    %258 = arith.subf %245, %257 : vector<32x32xf32>
    %cst_107 = arith.constant 9.99999974E-6 : f32
    %259 = vector.broadcast %cst_107 : f32 to vector<32x1xf32>
    %260 = arith.addf %256, %259 : vector<32x1xf32>
    %261 = math.rsqrt %260 : vector<32x1xf32>
    %262 = vector.broadcast %261 : vector<32x1xf32> to vector<32x32xf32>
    %263 = arith.mulf %258, %262 : vector<32x32xf32>
    %264 = vector.broadcast %1 : vector<1x32xf32> to vector<32x32xf32>
    %265 = arith.mulf %263, %264 : vector<32x32xf32>
    %266 = vector.broadcast %3 : vector<1x32xf32> to vector<32x32xf32>
    %267 = arith.addf %265, %266 : vector<32x32xf32>
    %c6 = arith.constant 6 : index
    %c0_108 = arith.constant 0 : index
    %c0_109 = arith.constant 0 : index
    %268 = vector.load %arg4[%c6, %c0_108, %c0_109] : memref<8x32x32xf32, #tpu.memory_space<vmem>>, vector<1x32x32xf32>
    %269 = vector.shape_cast %268 : vector<1x32x32xf32> to vector<32x32xf32>
    %cst_110 = arith.constant dense<0.000000e+00> : vector<32x32xf32>
    %270 = tpu.matmul %267, %269, %cst_110 {dimension_numbers = #tpu.dot_dimension_numbers<[1], [0], [0], [1], [0, 0, 1, 1], [], []>} : vector<32x32xf32>, vector<32x32xf32>, vector<32x32xf32> -> vector<32x32xf32>
    %c6_111 = arith.constant 6 : index
    %c0_112 = arith.constant 0 : index
    %c0_113 = arith.constant 0 : index
    %271 = vector.load %arg5[%c6_111, %c0_112, %c0_113] : memref<8x1x32xf32, #tpu.memory_space<vmem>>, vector<1x1x32xf32>
    %272 = vector.shape_cast %271 : vector<1x1x32xf32> to vector<1x32xf32>
    %273 = vector.broadcast %272 : vector<1x32xf32> to vector<32x32xf32>
    %274 = arith.addf %270, %273 : vector<32x32xf32>
    %cst_114 = arith.constant 0.000000e+00 : f32
    %275 = vector.broadcast %cst_114 : f32 to vector<32x32xf32>
    %276 = arith.maximumf %274, %275 : vector<32x32xf32>
    %c7 = arith.constant 7 : index
    %c0_115 = arith.constant 0 : index
    %c0_116 = arith.constant 0 : index
    %277 = vector.load %arg4[%c7, %c0_115, %c0_116] : memref<8x32x32xf32, #tpu.memory_space<vmem>>, vector<1x32x32xf32>
    %278 = vector.shape_cast %277 : vector<1x32x32xf32> to vector<32x32xf32>
    %cst_117 = arith.constant dense<0.000000e+00> : vector<32x32xf32>
    %279 = tpu.matmul %276, %278, %cst_117 {dimension_numbers = #tpu.dot_dimension_numbers<[1], [0], [0], [1], [0, 0, 1, 1], [], []>} : vector<32x32xf32>, vector<32x32xf32>, vector<32x32xf32> -> vector<32x32xf32>
    %c7_118 = arith.constant 7 : index
    %c0_119 = arith.constant 0 : index
    %c0_120 = arith.constant 0 : index
    %280 = vector.load %arg5[%c7_118, %c0_119, %c0_120] : memref<8x1x32xf32, #tpu.memory_space<vmem>>, vector<1x1x32xf32>
    %281 = vector.shape_cast %280 : vector<1x1x32xf32> to vector<1x32xf32>
    %282 = vector.broadcast %281 : vector<1x32xf32> to vector<32x32xf32>
    %283 = arith.addf %279, %282 : vector<32x32xf32>
    %284 = arith.addf %267, %283 : vector<32x32xf32>
    %cst_121 = arith.constant dense<0.000000e+00> : vector<32xf32>
    %285 = vector.multi_reduction <add>, %284, %cst_121 [1] : vector<32x32xf32> to vector<32xf32>
    %286 = vector.shape_cast %285 : vector<32xf32> to vector<32x1xf32>
    %cst_122 = arith.constant 3.200000e+01 : f32
    %287 = vector.broadcast %cst_122 : f32 to vector<32x1xf32>
    %288 = arith.divf %286, %287 : vector<32x1xf32>
    %289 = vector.broadcast %288 : vector<32x1xf32> to vector<32x32xf32>
    %290 = arith.subf %284, %289 : vector<32x32xf32>
    %291 = arith.mulf %290, %290 : vector<32x32xf32>
    %cst_123 = arith.constant dense<0.000000e+00> : vector<32xf32>
    %292 = vector.multi_reduction <add>, %291, %cst_123 [1] : vector<32x32xf32> to vector<32xf32>
    %293 = vector.shape_cast %292 : vector<32xf32> to vector<32x1xf32>
    %cst_124 = arith.constant 3.200000e+01 : f32
    %294 = vector.broadcast %cst_124 : f32 to vector<32x1xf32>
    %295 = arith.divf %293, %294 : vector<32x1xf32>
    %296 = vector.broadcast %288 : vector<32x1xf32> to vector<32x32xf32>
    %297 = arith.subf %284, %296 : vector<32x32xf32>
    %cst_125 = arith.constant 9.99999974E-6 : f32
    %298 = vector.broadcast %cst_125 : f32 to vector<32x1xf32>
    %299 = arith.addf %295, %298 : vector<32x1xf32>
    %300 = math.rsqrt %299 : vector<32x1xf32>
    %301 = vector.broadcast %300 : vector<32x1xf32> to vector<32x32xf32>
    %302 = arith.mulf %297, %301 : vector<32x32xf32>
    %303 = vector.broadcast %1 : vector<1x32xf32> to vector<32x32xf32>
    %304 = arith.mulf %302, %303 : vector<32x32xf32>
    %305 = vector.broadcast %3 : vector<1x32xf32> to vector<32x32xf32>
    %306 = arith.addf %304, %305 : vector<32x32xf32>
    %307 = vector.shape_cast %306 : vector<32x32xf32> to vector<4x8x32xf32>
    %c0_126 = arith.constant 0 : index
    %c0_127 = arith.constant 0 : index
    %c0_128 = arith.constant 0 : index
    %308 = vector.load %arg7[%c0_126, %c0_127, %c0_128] : memref<4x8x32xf32, #tpu.memory_space<vmem>>, vector<4x8x32xf32>
    tpu.vector_store %arg7[%c0_126, %c0_127, %c0_128], %307 {strides = array<i32>} : memref<4x8x32xf32, #tpu.memory_space<vmem>>, vector<4x8x32xf32>,
    return
  }
  func.func @transform_0(%arg0: i32) -> (i32, i32, i32) {
    %c0_i32 = arith.constant 0 : i32
    %c0_i32_0 = arith.constant 0 : i32
    %c0_i32_1 = arith.constant 0 : i32
    return %arg0, %c0_i32, %c0_i32_0 : i32, i32, i32
  }
  func.func @transform_1(%arg0: i32) -> (i32, i32, i32) {
    %c0_i32 = arith.constant 0 : i32
    %c0_i32_0 = arith.constant 0 : i32
    %c0_i32_1 = arith.constant 0 : i32
    return %arg0, %c0_i32, %c0_i32_0 : i32, i32, i32
  }
  func.func @transform_2(%arg0: i32) -> (i32, i32, i32) {
    %c0_i32 = arith.constant 0 : i32
    %c0_i32_0 = arith.constant 0 : i32
    %c0_i32_1 = arith.constant 0 : i32
    return %arg0, %c0_i32, %c0_i32_0 : i32, i32, i32
  }
  func.func @transform_3(%arg0: i32) -> (i32, i32, i32) {
    %c0_i32 = arith.constant 0 : i32
    %c0_i32_0 = arith.constant 0 : i32
    %c0_i32_1 = arith.constant 0 : i32
    %c0_i32_2 = arith.constant 0 : i32
    return %c0_i32, %c0_i32_0, %c0_i32_1 : i32, i32, i32
  }
  func.func @transform_4(%arg0: i32) -> (i32, i32, i32) {
    %c0_i32 = arith.constant 0 : i32
    %c0_i32_0 = arith.constant 0 : i32
    %c0_i32_1 = arith.constant 0 : i32
    %c0_i32_2 = arith.constant 0 : i32
    return %c0_i32, %c0_i32_0, %c0_i32_1 : i32, i32, i32
  }
  func.func @transform_5(%arg0: i32) -> (i32, i32, i32) {
    %c0_i32 = arith.constant 0 : i32
    %c0_i32_0 = arith.constant 0 : i32
    %c0_i32_1 = arith.constant 0 : i32
    %c0_i32_2 = arith.constant 0 : i32
    return %c0_i32, %c0_i32_0, %c0_i32_1 : i32, i32, i32
  }
  func.func @transform_6(%arg0: i32) -> (i32, i32, i32) {
    %c0_i32 = arith.constant 0 : i32
    %c0_i32_0 = arith.constant 0 : i32
    %c0_i32_1 = arith.constant 0 : i32
    return %arg0, %c0_i32, %c0_i32_0 : i32, i32, i32
  }
}

</mosaic_0001>

<bundles_post_ra>
// kernel: tpu_custom_call.1
= control target key start
LH: loop header
LB: loop body
LE: loop exit
PB: predicated region body
PF: predicated region fallthrough
CT: control target
= control target key end

     0   :  { %s9989_s0 = inlined_call_operand.hbm [shape: f32[8,8,32], index: 0, kind: input, shape index: {}]   ;;  %s9990_s1 = inlined_call_operand.hbm [shape: f32[8,8,32], index: 1, kind: input, shape index: {}]   ;;  %s9991_s2 = inlined_call_operand.hbm [shape: f32[8,8,32], index: 2, kind: input, shape index: {}]   ;;  %s9992_s3 = inlined_call_operand.hbm [shape: f32[8,32,32], index: 3, kind: input, shape index: {}]   ;;  %s9993_s4 = inlined_call_operand.hbm [shape: f32[8,1,32], index: 4, kind: input, shape index: {}]   ;;  %s9994_s5 = inlined_call_operand.vmem [shape: f32[2,1,32], index: 5, kind: input, shape index: {}]   ;;  %s9995_s6 = inlined_call_operand.hbm [shape: f32[8,8,32], index: 6, kind: output, shape index: {}]  }
   0x1   :  { %10014 = sst [smem:[#allocation21_spill]] %s9990_s1 }
   0x2   :  { %10015 = sst [smem:[#allocation22_spill]] %s9992_s3 }
   0x3   :  { %10016 = sst [smem:[#allocation23_spill]] %s9995_s6 }
   0x4   :  { %11 = vsyncpa [#allocation3], 0 }
   0x5   :  { %13 = vsyncpa [#allocation3 + $0x1], 0 }
   0x6   :  { %14 = vsyncpa [#allocation6], 0 }
   0x7   :  { %16 = vsyncpa [#allocation6 + $0x1], 0 }
   0x8   :  { %17 = vsyncpa [#allocation9], 0 }
   0x9   :  { %18 = vsyncpa [#allocation4], 0 }
   0xa   :  { %20 = vsyncpa [#allocation4 + $0x1], 0  ;;  %s8860_s21 = smov 0   ;;  %s8862_s22 = smov 0  }
   0xb   :  { %s8864_s23 = smov 0   ;;  %s8866_s24 = smov 0  }
   0xc LB: > { %10017 = sst [smem:[#allocation16_spill]] %s8794_s21  ;;  %s8881_s25 = sadd.s32 4294967295, %s8806_s24   ;;  %s8806_s24 = sphi %s8866_s24, %s10048_s24   ;;  %s8802_s23 = sphi %s8864_s23, %s10052_s23   ;;  %s8798_s22 = sphi %s8862_s22, %s10051_s22   ;;  %s8794_s21 = sphi %s8860_s21, %s10050_s21  }
   0xd   : > { %10018 = sst [smem:[#allocation17_spill]] %s8806_s24  ;;  %s7475_s26 = sadd.s32 4294967294, %s8806_s24  }
   0xe   : > { %s8885_s27 = sadd.s32 1, %s8806_s24   ;;  %s33_s28 = sadd.s32 1, %s8802_s23 }
   0xf   : > { %10019 = sst [smem:[#allocation18_spill]] %s8885_s27  ;;  %s30_s29 = ssub.s32 %s8806_s24, %s8885_s27 }
  0x10   : > { %p40_p0 = scmp.ne.s32.totalorder %s8802_s23, %s8798_s22  ;;  %p31_p1 = scmp.eq.s32.totalorder %s30_s29, 0 }
  0x11   : > { %p41_p2 = scmp.eq.s32.totalorder %s8806_s24, 0  ;;  %p46_p3 = scmp.ne.s32.totalorder %s8798_s22, %s8794_s21 }
  0x12   : > { %p9996_p4 = scmp.eq.s32.totalorder %s8881_s25, 0  ;;  %p185_p7 = scmp.eq.s32.totalorder %s8881_s25, 1 }
  0x13   : > { %s8897_s30 = scalar_select %p31_p1, %s8802_s23, %s33_s28  }
  0x14   : > { %p8899_p5 = por %p41_p2, %p40_p0  ;;  %p8905_p6 = por %p9996_p4, %p46_p3 }
  0x15   : > { %10020 = sst [smem:[#allocation19_spill]] %s8897_s30  ;;  %p191_p8 = scmp.eq.s32.totalorder %s7475_s26, 1 }
  0x16   : > { %s10022_s8 = scalar_select %p8905_p6, 1, 0 }
  0x17   : > { %p7476_p9 = scmp.ge.s32.totalorder %s8806_s24, 1  ;;  %p198_p10 = scmp.lt.s32.totalorder %s8806_s24, 3 }
  0x18   : > { %p8912_p11 = por %p185_p7, %p40_p0  ;;  %p8916_p12 = por %p191_p8, %p46_p3 }
  0x19   : > { %p8920_p13 = pnand %p7476_p9, %p198_p10  ;;  %s8808_s12 = smov [#allocation8]  }
  0x1a   : > { %s10023_s9 = scalar_select %p8912_p11, 1, 0 }
  0x1b   : > { %s10024_s10 = scalar_select %p8916_p12, 1, 0 }
  0x1c   : > { %s10026_s11 = scalar_select %p8920_p13, 1, 0 }
  0x1d   : > { %10025 = sst [smem:[#allocation20_spill]] %s10024_s10  ;;  %p8368_p1 = pneg %p8920_p13 }
  0x1e   : > { %s210_s13 = sshll.u32 %s8808_s12, 4  ;;  %p8391_p3 = scmp.lt.s32.totalorder %s8806_s24, 2  ;;  %s211_s13 = int_to_ptr.vmem [resolvable:$true] %s210_s13 }
  0x1f   : > { %p8928_p2 = pnand %p8368_p1, %p9996_p4  ;;  %s9998_s15 = sand.u32 1, %s8802_s23  }
  0x20   : > { %s8937_s16 = sshll.u32 %s9998_s15, 5  ;;  %s8609_s17 = scalar_lea.vmem %s211_s13, 4096 }
  0x21   : > { %s10027_s14 = scalar_select %p8928_p2, 1, 0 }
  0x22   : > { %p10005_p7 = pneg %p8928_p2  ;;  %p8610_p8 = scmp.ne.s32.totalorder %s211_s13, %s8609_s17 }
  0x23   : > { %p8617_p1 = scmp.lt.s32.totalorder %s211_s13, %s211_s13  ;;  %p8618_p4 = scmp.lt.s32.totalorder %s8609_s17, %s8609_s17 }
  0x24   : > { %p8612_p9 = pnand %p8610_p8, %p10005_p7 }
  0x25   : > { %p8619_p12 = por %p8618_p4, %p8617_p1 }
  0x26   : > { %p8613_p10 = pneg %p8612_p9 }
  0x28   : > { %p8620_p11 = pnand %p8619_p12, %p8613_p10 }
  0x2a   : > { %8623 = shalt.err (!%p8620_p11)
}
  0x2b   : > { %s9999_s18 = smov 128   ;;  %s10001_s19 = smov 8  }
  0x2c   : > { %s10028_s3 = sld [smem:[#allocation22_spill]]  ;;  %s8953_s28 = sshll.u32 %s8806_s24, 9 }
  0x2d   : > { %p8959_p4 = pnand %p8391_p3, %p8899_p5  ;;  %s261_s12 = sand.u32 1, %s8806_s24  }
  0x2e   : > { %s10030_s1 = sld [smem:[#allocation21_spill]]  ;;  %s8973_s7 = scalar_lea.sflag [#allocation6], %s261_s12 }
  0x2f   : > { %p8979_p11 = pneg %p8959_p4 }
  0x32   : > { %8371 = dma.hbm_to_vmem [thread:$0]  (!%p8928_p2), %s10028_s3, 4096, %s211_s13, [#allocation9], %s9999_s18, %s9999_s18, %s10001_s19  }
  0x33   : > { %s265_s13 = scalar_lea.vmem [#allocation5], %s8937_s16 }
  0x34   : > { %s8968_s30 = scalar_lea.hbm %s10030_s1, %s8953_s28  ;;  %s272_s20 = sshll.u32 %s265_s13, 4  ;;  %s8971_s20 = int_to_ptr.vmem [resolvable:$true] %s272_s20 }
  0x35   : > { %s8624_s26 = scalar_lea.hbm %s8968_s30, 512  ;;  %s8629_s19 = scalar_lea.hbm %s10030_s1, 1024 }
  0x36   : > { %p8625_p5 = scmp.ne.s32.totalorder %s8968_s30, %s8624_s26  ;;  %p8630_p8 = scmp.lt.s32.totalorder %s8968_s30, %s10030_s1 }
  0x37   : > { %p8631_p9 = scmp.lt.s32.totalorder %s8629_s19, %s8624_s26 }
  0x38   : > { %p8627_p12 = pnand %p8979_p11, %p8625_p5 }
  0x39   : > { %p8632_p10 = por %p8631_p9, %p8630_p8 }
  0x3a   : > { %p8628_p3 = pneg %p8627_p12 }
  0x3c   : > { %p8633_p1 = pnand %p8632_p10, %p8628_p3 }
  0x3e   : > { %8636 = shalt.err (!%p8633_p1)
}
  0x3f   : > { %s8637_s12 = scalar_lea.vmem %s8971_s20, 512  ;;  %s8811_s27 = smov [#allocation5]  }
  0x40   : > { %p8638_p0 = scmp.ne.s32.totalorder %s8971_s20, %s8637_s12  ;;  %s8642_s15 = sshll.u32 %s8811_s27, 4  ;;  %s8643_s15 = int_to_ptr.vmem [resolvable:$false] %s8642_s15 }
  0x41   : > { %s8644_s17 = scalar_lea.vmem %s8643_s15, 1024  ;;  %p8645_p7 = scmp.lt.s32.totalorder %s8971_s20, %s8643_s15 }
  0x42   : > { %p8640_p5 = pnand %p8638_p0, %p8979_p11  ;;  %p8646_p6 = scmp.lt.s32.totalorder %s8644_s17, %s8637_s12 }
  0x44   : > { %p8641_p12 = pneg %p8640_p5  ;;  %p8647_p13 = por %p8646_p6, %p8645_p7 }
  0x46   : > { %p8648_p2 = pnand %p8647_p13, %p8641_p12 }
  0x48   : > { %8651 = shalt.err (!%p8648_p2)
}
  0x49   : > { %s10032_s3 = smov 8   ;;  %s10033_s19 = smov 128  }
  0x4a   : > { %8381 = dma.hbm_to_vmem [thread:$0]  (!%p8959_p4), %s8968_s30, 512, %s8971_s20, %s8973_s7, %s10033_s19, %s10033_s19, %s10032_s3  }
  0x4b   : > { %s8812_s26 = smov [#allocation10]   ;;  %p10034_p3 = scmp.ne.s32.totalorder %s10027_s14, 0 }
  0x4c   : > { %s223_s13 = sshll.u32 %s8812_s26, 4  ;;  %s224_s13 = int_to_ptr.vmem [resolvable:$true] %s223_s13 }
  0x4d   : > { %s8663_s27 = scalar_lea.vmem %s224_s13, 128  ;;  %p10035_p8 = pneg %p10034_p3 }
  0x4e   : > { %p8664_p0 = scmp.ne.s32.totalorder %s224_s13, %s8663_s27  ;;  %p8671_p2 = scmp.lt.s32.totalorder %s224_s13, %s224_s13 }
  0x4f   : > { %p8672_p7 = scmp.lt.s32.totalorder %s8663_s27, %s8663_s27 }
  0x50   : > { %p8666_p6 = pnand %p8664_p0, %p10035_p8 }
  0x51   : > { %p8673_p9 = por %p8672_p7, %p8671_p2 }
  0x52   : > { %p8667_p13 = pneg %p8666_p6 }
  0x54   : > { %p8674_p10 = pnand %p8673_p9, %p8667_p13 }
  0x56   : > { %8677 = shalt.err (!%p8674_p10)
}
  0x57   : > { %s8813_s12 = smov 16   ;;  %s8814_s30 = smov 1  }
  0x58   : > { %8374 = dma.hbm_to_vmem [thread:$0]  (!%p10034_p3), %s9993_s4, 128, %s224_s13, [#allocation9], %s8813_s12, %s8813_s12, %s8814_s30  }
  0x59   : > { %s9017_s1 = scalar_lea.hbm %s9989_s0, %s8953_s28  ;;  %s244_s27 = scalar_lea.vmem [#allocation2], %s8937_s16 }
  0x5a   : > { %s251_s24 = sshll.u32 %s244_s27, 4  ;;  %s10036_s10 = sand.u32 1, %s8802_s23   ;;  %s9020_s24 = int_to_ptr.vmem [resolvable:$true] %s251_s24 }
  0x5b   : > { %s241_s21 = scalar_lea.sflag [#allocation3], %s10036_s10  ;;  %s8678_s6 = scalar_lea.hbm %s9017_s1, 512 }
  0x5c   : > { %p8679_p1 = scmp.ne.s32.totalorder %s9017_s1, %s8678_s6  ;;  %s8683_s12 = scalar_lea.hbm %s9989_s0, 1024 }
  0x5d   : > { %p8684_p0 = scmp.lt.s32.totalorder %s9017_s1, %s9989_s0  ;;  %p8685_p3 = scmp.lt.s32.totalorder %s8683_s12, %s8678_s6 }
  0x5e   : > { %p8681_p5 = pnand %p8679_p1, %p8979_p11 }
  0x5f   : > { %p8686_p8 = por %p8685_p3, %p8684_p0 }
  0x60   : > { %p8682_p12 = pneg %p8681_p5 }
  0x62   : > { %p8687_p6 = pnand %p8686_p8, %p8682_p12 }
  0x64   : > { %8690 = shalt.err (!%p8687_p6)
}
  0x65   : > { %s8691_s10 = scalar_lea.vmem %s9020_s24, 512  ;;  %s8815_s15 = smov [#allocation2]  }
  0x66   : > { %p8692_p13 = scmp.ne.s32.totalorder %s9020_s24, %s8691_s10  ;;  %s8696_s17 = sshll.u32 %s8815_s15, 4  ;;  %s8697_s17 = int_to_ptr.vmem [resolvable:$false] %s8696_s17 }
  0x67   : > { %s8698_s26 = scalar_lea.vmem %s8697_s17, 1024  ;;  %p8699_p9 = scmp.lt.s32.totalorder %s9020_s24, %s8697_s17 }
  0x68   : > { %p8694_p2 = pnand %p8692_p13, %p8979_p11  ;;  %p8700_p10 = scmp.lt.s32.totalorder %s8698_s26, %s8691_s10 }
  0x6a   : > { %p8695_p7 = pneg %p8694_p2  ;;  %p8701_p1 = por %p8700_p10, %p8699_p9 }
  0x6c   : > { %p8702_p5 = pnand %p8701_p1, %p8695_p7 }
  0x6e   : > { %8705 = shalt.err (!%p8702_p5)
}
  0x6f   : > { %8378 = dma.hbm_to_vmem [thread:$0]  (!%p8959_p4), %s9017_s1, 512, %s9020_s24, %s241_s21, %s10033_s19, %s10033_s19, %s10032_s3  }
  0x70   : > { %s9051_s14 = scalar_lea.hbm %s9991_s2, %s8953_s28  ;;  %s286_s13 = scalar_lea.vmem [#allocation7], %s8937_s16 }
  0x71   : > { %s293_s12 = sshll.u32 %s286_s13, 4  ;;  %s8706_s30 = scalar_lea.hbm %s9051_s14, 512  ;;  %s294_s12 = int_to_ptr.vmem [resolvable:$true] %s293_s12 }
  0x72   : > { %p8707_p12 = scmp.ne.s32.totalorder %s9051_s14, %s8706_s30  ;;  %s8711_s1 = scalar_lea.hbm %s9991_s2, 1024 }
  0x73   : > { %p8712_p8 = scmp.lt.s32.totalorder %s9051_s14, %s9991_s2  ;;  %p8713_p6 = scmp.lt.s32.totalorder %s8711_s1, %s8706_s30 }
  0x74   : > { %p8709_p0 = pnand %p8707_p12, %p8979_p11 }
  0x75   : > { %p8714_p13 = por %p8713_p6, %p8712_p8 }
  0x76   : > { %p8710_p3 = pneg %p8709_p0 }
  0x78   : > { %p8715_p2 = pnand %p8714_p13, %p8710_p3 }
  0x7a   : > { %8718 = shalt.err (!%p8715_p2)
}
  0x7b   : > { %s8719_s16 = scalar_lea.vmem %s294_s12, 512  ;;  %s8816_s28 = smov [#allocation7]  }
  0x7c   : > { %p8720_p7 = scmp.ne.s32.totalorder %s294_s12, %s8719_s16  ;;  %s8724_s15 = sshll.u32 %s8816_s28, 4  ;;  %s8725_s15 = int_to_ptr.vmem [resolvable:$false] %s8724_s15 }
  0x7d   : > { %s8726_s17 = scalar_lea.vmem %s8725_s15, 1024  ;;  %p8727_p1 = scmp.lt.s32.totalorder %s294_s12, %s8725_s15 }
  0x7e   : > { %p8722_p9 = pnand %p8720_p7, %p8979_p11  ;;  %p8728_p5 = scmp.lt.s32.totalorder %s8726_s17, %s8719_s16 }
  0x80   : > { %p8723_p10 = pneg %p8722_p9  ;;  %p8729_p12 = por %p8728_p5, %p8727_p1 }
  0x82   : > { %p8730_p0 = pnand %p8729_p12, %p8723_p10 }
  0x84   : > { %8733 = shalt.err (!%p8730_p0)
}
  0x85   : > { %8384 = dma.hbm_to_vmem [thread:$0]  (!%p8959_p4), %s9051_s14, 512, %s294_s12, %s8973_s7, %s10033_s19, %s10033_s19, %s10032_s3  }
  0x86   : > { %p10037_p11 = scmp.ne.s32.totalorder %s10026_s11, 0 }
  0x87   : > { %s9077_s18 = sand.u32 (!%p10037_p11), 1, %s8798_s22   ;;  %p10038_p3 = scmp.ne.s32.totalorder (!%p10037_p11), %s10022_s8, 0 }
  0x88   : > { %305 = sbr.rel (%p10037_p11) target bundleno = 7684 (0x1e04), region = 44  ;;  %s9080_s26 = sshll.u32 (!%p10037_p11), %s9077_s18, 5 }
  0x89   : > { %s308_s6 = scalar_lea.sflag (!%p10037_p11), [#allocation3], %s9077_s18  ;;  %s9084_s29 = scalar_lea.vmem (!%p10037_p11), [#allocation2], %s9080_s26 }
  0x8d   : > { %8777 = dma.done.wait (%p10038_p3), %s308_s6, 512  }
  0x8e   : > { %8779 = vsyncadd (%p10038_p3), %s308_s6, 4294966784  ;;  %s316_s11 = sand.u32 1, %s8881_s25   ;;  %s9092_s3 = scalar_lea.vmem [#allocation5], %s9080_s26 }
  0x8f   : > { %s317_s7 = scalar_lea.sflag [#allocation6], %s316_s11 }
  0x90   : > { %8781 = dma.done.wait (%p10038_p3), %s317_s7, 1024  }
  0x91   : > { %8783 = vsyncadd (%p10038_p3), %s317_s7, 4294966272  ;;  %s9099_s19 = scalar_lea.vmem [#allocation7], %s9080_s26  ;;  %p10039_p4 = scmp.eq.s32.totalorder %s8881_s25, 0 }
  0x93   : > { %8785 = dma.done.wait (%p10039_p4), [#allocation9], 4224   ;;  %p10040_p8 = pmov %p10039_p4 }
  0x94   : > { %v508_v0 = vld [vmem:[#allocation8 + $0x38] sm:$0xff]  ;;  %v507_v1 = vld [vmem:[#allocation8 + $0x30] sm:$0xff]  ;;  %v506_v4 = vld [vmem:[#allocation8 + $0x28] sm:$0xff]  ;;  %vm406_vm0 = vcmask 261120   ;;  %v8817_v16 = vmov 0.0   ;;  %vm8818_vm1 = vmmov 0  }
  0x95   : > { %8787 = vsyncadd (%p10040_p8), [#allocation9], 4294963072  ;;  %7898 = vmatprep.subr.mxu1 %v508_v0  ;;  %v398_v2 = vld [vmem:[#allocation8 + $0x18] sm:$0xff]  ;;  %v397_v3 = vld [vmem:[#allocation8 + $0x10] sm:$0xff]  ;;  %vm709_vm2 = vcmask 64512   ;;  %s8819_s8 = smov 120  }
  0x96   : > { %7899 = vmatpush3.msra.mxu1 %v508_v0  ;;  %7884 = vmatprep.subr.mxu0 %v398_v2  ;;  %v383_v5 = vld [vmem:[%s9084_s29] sm:$0xff]  ;;  %v396_v7 = vld [vmem:[#allocation8 + $0x8] sm:$0xff]  ;;  %v385_v10 = vld [vmem:[%s9084_s29 + $0x10] sm:$0xff]  ;;  %s8820_s27 = smov 112   ;;  %s8821_s14 = smov 104  }
  0x97   : > { %7900 = vmatprep.subr.mxu1 %v507_v1  ;;  %7885 = vmatpush3.msra.mxu0 %v398_v2  ;;  %v505_v6 = vld [vmem:[#allocation8 + $0x20] sm:$0xff]  ;;  %v384_v8 = vld [vmem:[%s9084_s29 + $0x8] sm:$0xff]  ;;  %v606_v11 = vld [vmem:[#allocation8 + $0x58] sm:$0xff]  ;;  %s375_s16 = scalar_lea.vmem [#allocation11], %s9080_s26  ;;  %s7667_s28 = sshll.u32 %s8881_s25, 9 }
  0x98   : > { %7901 = vmatpush3.msra.mxu1 %v507_v1  ;;  %7886 = vmatprep.subr.mxu0 %v397_v3  ;;  %v395_v9 = vld [vmem:[#allocation8] sm:$0xff]  ;;  %v386_v12 = vld [vmem:[%s9084_s29 + $0x18] sm:$0xff]  ;;  %v605_v13 = vld [vmem:[#allocation8 + $0x50] sm:$0xff]  ;;  %s7340_s15 = sshll.u32 %s375_s16, 4  ;;  %s10041_s6 = sld [smem:[#allocation23_spill]]  ;;  %s9943_s15 = int_to_ptr.vmem [resolvable:$true] %s7340_s15 }
  0x99   : > { %7902 = vmatprep.subr.mxu1 %v506_v4  ;;  %7906 = vmatprep.mubr.msk.f32.mxu1 %vm406_vm0, %v383_v5  ;;  %v604_v14 = vld [vmem:[#allocation8 + $0x48] sm:$0xff]  ;;  %v603_v15 = vld [vmem:[#allocation8 + $0x40] sm:$0xff]  ;;  %s7327_s25 = scalar_lea.sflag [#allocation4], %s9077_s18  ;;  %s8734_s11 = scalar_lea.vmem %s9943_s15, 512 }
  0x9a   : > { %7903 = vmatpush3.msra.mxu1 %v506_v4  ;;  %7887 = vmatpush3.msra.mxu0 %v397_v3  ;;  %v7502_v18 = vld [vmem:[#allocation10 + $0x1] ss:$0 sm:$0xff]  ;;  %v7497_v25 = vld [vmem:[#allocation10] ss:$0 sm:$0xff]  ;;  %v9171_v39 = vld [vmem:[#allocation10 + $0x2] ss:$0 sm:$0xff]  ;;  %p8735_p6 = scmp.ne.s32.totalorder %s9943_s15, %s8734_s11 }
  0x9b   : > { %7904 = vmatprep.subr.mxu1 %v505_v6  ;;  %7888 = vmatprep.subr.mxu0 %v396_v7  ;;  %p10042_p13 = scmp.ne.s32.totalorder %s10023_s9, 0  ;;  %s8822_s7 = smov [#allocation11]  }
  0x9c   : > { %7905 = vmatpush3.msra.mxu1 %v505_v6  ;;  %7889 = vmatpush3.msra.mxu0 %v396_v7 }
  0x9d   : > { %7907 = vmatmul.mubr.msk.f32.vlgmr.msra.gmra.mxu1 %vm406_vm0, %v384_v8  ;;  %7890 = vmatprep.subr.mxu0 %v395_v9  ;;  %p8736_p2 = pnand %p8735_p6, %p10042_p13 }
  0x9e   : > { %7909 = vmatprep.mubr.msk.f32.mxu1 %vm406_vm0, %v385_v10  ;;  %7891 = vmatpush3.msra.mxu0 %v395_v9 }
  0x9f   : > { %7892 = vmatprep.mubr.msk.f32.mxu0 %vm406_vm0, %v383_v5  ;;  %7912 = vmatprep.subr.mxu0 %v606_v11  ;;  %p8737_p7 = pneg %p8736_p2 }
  0xa0   : > { %7893 = vmatmul.mubr.msk.f32.vlgmr.msra.gmra.mxu0 %vm406_vm0, %v384_v8  ;;  %7926 = vmatprep.subr.mxu1 %v8817_v16 }
  0xa1   : > { %7910 = vmatmul.mubr.msk.f32.gmra.mxu1 %vm406_vm0, %v386_v12  ;;  %7895 = vmatprep.mubr.msk.f32.mxu0 %vm406_vm0, %v385_v10 }
  0xa2   : > { %7913 = vmatpush3.msra.mxu0 %v606_v11  ;;  %7928 = vmatprep.mubr.msk.f32.mxu1 %vm8818_vm1, %v8817_v16 }
  0xa3   : > { %7914 = vmatprep.subr.mxu0 %v605_v13 }
  0xa4   : > { %7896 = vmatmul.mubr.msk.f32.gmra.mxu0 %vm406_vm0, %v386_v12 }
  0xa5   : > { %7920 = vmatprep.mubr.msk.f32.mxu0 %vm406_vm0, %v383_v5  ;;  %7915 = vmatpush3.msra.mxu0 %v605_v13 }
  0xa6   : > { %7916 = vmatprep.subr.mxu0 %v604_v14 }
  0xa7   : > { %7917 = vmatpush3.msra.mxu0 %v604_v14 }
  0xa8   : > { %7918 = vmatprep.subr.mxu0 %v603_v15 }
  0xa9   : > { %7919 = vmatpush3.msra.mxu0 %v603_v15 }
  0xaa   : > { %7921 = vmatmul.mubr.msk.f32.vlgmr.msra.gmra.mxu0 %vm406_vm0, %v384_v8  ;;  %7936 = vmatprep.subr.mxu0 %v8817_v16 }
  0xab   : > { %7923 = vmatprep.mubr.msk.f32.mxu0 %vm406_vm0, %v385_v10 }
  0xae   : > { %7924 = vmatmul.mubr.msk.f32.gmra.mxu0 %vm406_vm0, %v386_v12 }
  0xaf   : > { %7938 = vmatprep.mubr.msk.f32.mxu0 %vm8818_vm1, %v8817_v16 }
 0x15d   : > { %v7908_v17 = vpop.f32.mrf.mxu1 }
 0x15e   : > { %v589_v23 = vadd.f32 %v7908_v17, %v7502_v18 }
 0x15f   : > { %v583_v19 = vpop.f32.mrf.mxu1 }
 0x160   : > { %v584_v20 = vadd.f32 %v7502_v18, %v583_v19  ;;  %v7894_v21 = vpop.f32.mrf.mxu0  ;;  %v9134_v32 = vmul.f32 0.35355338, %v589_v23 }
 0x161   : > { %v7911_v22 = vpop.f32.mrf.mxu1  ;;  %v9148_v37 = vadd.f32 %v7894_v21, %v7497_v25 }
 0x162   : > { %v9127_v24 = vmul.f32 0.35355338, %v584_v20  ;;  %v485_v26 = vpop.f32.mrf.mxu0  ;;  %v599_v28 = vadd.f32 %v7911_v22, %v7502_v18 }
 0x163   : > { %v593_v27 = vpop.f32.mrf.mxu1  ;;  %v9131_v31 = vadd.f32 %v7497_v25, %v485_v26 }
 0x164   : > { %v594_v29 = vadd.f32 %v7502_v18, %v593_v27  ;;  %7927 = vmatpush3.xpose.msk.msra.mxu1 %vm709_vm2, %v9127_v24  ;;  %v7897_v30 = vpop.f32.mrf.mxu0  ;;  %v9142_v36 = vmul.f32 0.35355338, %v599_v28 }
 0x165   : > { %7931 = vmatprep.subr.mxu1 %v8817_v16  ;;  %v9154_v38 = vadd.f32 %v7897_v30, %v7497_v25 }
 0x166   : > { %v9136_v33 = vmul.f32 0.35355338, %v594_v29  ;;  %v495_v34 = vpop.f32.mrf.mxu0 }
 0x167   : > { %7929 = vmatmul.mubr.msk.f32.vlgmr.msra.gmra.mxu1 %vm709_vm2, %v9131_v31  ;;  %v9140_v35 = vadd.f32 %v7497_v25, %v495_v34 }
 0x168   : > { %7932 = vmatpush3.xpose.msk.msra.mxu1 %vm709_vm2, %v9134_v32  ;;  %7937 = vmatpush3.xpose.msk.msra.mxu0 %vm709_vm2, %v9136_v33 }
 0x169   : > { %7933 = vmatprep.mubr.msk.f32.mxu1 %vm8818_vm1, %v8817_v16  ;;  %7941 = vmatprep.subr.mxu1 %v8817_v16 }
 0x16a   : > { %7946 = vmatprep.subr.mxu0 %v8817_v16  ;;  %v7922_v40 = vpop.f32.mrf.mxu0 }
 0x16b   : > { %7934 = vmatmul.mubr.msk.f32.vlgmr.msra.gmra.mxu1 %vm709_vm2, %v9148_v37  ;;  %7939 = vmatmul.mubr.msk.f32.vlgmr.msra.gmra.mxu0 %vm709_vm2, %v9140_v35  ;;  %v9174_v41 = vadd.f32 %v7922_v40, %v9171_v39 }
 0x16c   : > { %7942 = vmatpush3.xpose.msk.msra.mxu1 %vm709_vm2, %v9142_v36  ;;  %7943 = vmatprep.mubr.msk.f32.mxu1 %vm8818_vm1, %v8817_v16  ;;  %v681_v42 = vpop.f32.mrf.mxu0 }
 0x16d   : > { %7951 = vmatprep.subr.mxu1 %v8817_v16  ;;  %7948 = vmatprep.mubr.msk.f32.mxu0 %vm8818_vm1, %v8817_v16  ;;  %v9177_v43 = vadd.f32 %v9171_v39, %v681_v42 }
 0x16e   : > { %v7925_v44 = vpop.f32.mrf.mxu0 }
 0x16f   : > { %7944 = vmatmul.mubr.msk.f32.vlgmr.msra.gmra.mxu1 %vm709_vm2, %v9154_v38  ;;  %v9182_v45 = vadd.f32 %v7925_v44, %v9171_v39  ;;  %7947 = vmatpush3.msra.mxu0 %v9177_v43 }
 0x170   : > { %7953 = vmatprep.mubr.msk.f32.mxu1 %vm8818_vm1, %v8817_v16  ;;  %7952 = vmatpush3.msra.mxu1 %v9174_v41  ;;  %v691_v47 = vpop.f32.mrf.mxu0 }
 0x171   : > { %7961 = vmatprep.subr.mxu1 %v8817_v16  ;;  %7956 = vmatprep.subr.mxu0 %v8817_v16  ;;  %v9211_v21 = vadd.f32 %v9171_v39, %v691_v47 }
 0x227   : > { %v782_v46 = vpop.f32.mrf.mxu1 }
 0x228   : > { %v1014_v48 = vsel %vm709_vm2, %v782_v46, -inf }
 0x229   : > { %1015 = vmax.xlane.f32.xlu0 %v1014_v48  ;;  %v7930_v49 = vpop.f32.mrf.mxu1 }
 0x22b   : > { %v858_v50 = vpop.f32.mrf.mxu1  ;;  %v934_v51 = vpop.f32.mrf.mxu0 }
 0x22c   : > { %v1020_v52 = vsel %vm709_vm2, %v934_v51, -inf  ;;  %v1017_v53 = vsel %vm709_vm2, %v858_v50, -inf }
 0x22d   : > { %1021 = vmax.xlane.f32.xlu1 %v1020_v52  ;;  %1018 = vmax.xlane.f32.xlu0 %v1017_v53  ;;  %v7935_v54 = vpop.f32.mrf.mxu1  ;;  %v7940_v55 = vpop.f32.mrf.mxu0 }
 0x22f   : > { %v1010_v56 = vpop.f32.mrf.mxu1 }
 0x230   : > { %v1023_v57 = vsel %vm709_vm2, %v1010_v56, -inf }
 0x231   : > { %1024 = vmax.xlane.f32.xlu1 %v1023_v57  ;;  %v7945_v58 = vpop.f32.mrf.mxu1 }
 0x2b2   : > { %v1016_v59 = vpop.xlane.xlu0 %1015 }
 0x2b3   : > { %v1026_v60 = vsub.f32 %v782_v46, %v1016_v59 }
 0x2b5   : > { %v1030_v61 = vmul.f32 1.442695, %v1026_v60 }
 0x2b6   : > { %v1022_v62 = vpop.xlane.xlu1 %1021  ;;  %v1019_v63 = vpop.xlane.xlu0 %1018 }
 0x2b7   : > { %8440 = vpow2.f32 %v1030_v61  ;;  %v1028_v0 = vsub.f32 %v934_v51, %v1022_v62  ;;  %v1027_v1 = vsub.f32 %v858_v50, %v1019_v63 }
 0x2b9   : > { %v1034_v2 = vmul.f32 1.442695, %v1028_v0  ;;  %v1032_v3 = vmul.f32 1.442695, %v1027_v1 }
 0x2ba   : > { %v1025_v10 = vpop.xlane.xlu1 %1024 }
 0x2bb   : > { %8442 = vpow2.f32 %v1034_v2  ;;  %v1029_v11 = vsub.f32 %v1010_v56, %v1025_v10 }
 0x2bc   : > { %8444 = vpow2.f32 %v1032_v3 }
 0x2bd   : > { %v1036_v12 = vmul.f32 1.442695, %v1029_v11 }
 0x2bf   : > { %8446 = vpow2.f32 %v1036_v12 }
 0x2c4   : > { %v8441_v4 = vpop.eup %8440 }
 0x2c5   : > { %v1038_v5 = vsel %vm709_vm2, %v8441_v4, 0.0 }
 0x2c6   : > { %1039 = vadd.xlane.f32.xlu0 %v1038_v5 }
 0x2c8   : > { %v8443_v6 = vpop.eup %8442 }
 0x2c9   : > { %v8445_v7 = vpop.eup %8444  ;;  %v1044_v8 = vsel %vm709_vm2, %v8443_v6, 0.0 }
 0x2ca   : > { %1045 = vadd.xlane.f32.xlu0 %v1044_v8  ;;  %v1041_v9 = vsel %vm709_vm2, %v8445_v7, 0.0 }
 0x2cb   : > { %1042 = vadd.xlane.f32.xlu1 %v1041_v9 }
 0x2cc   : > { %v8447_v13 = vpop.eup %8446 }
 0x2cd   : > { %v1047_v14 = vsel %vm709_vm2, %v8447_v13, 0.0 }
 0x2dc   : > { %1430 = vrot.lane.b32.xlu1 %v9134_v32, %s8819_s8 }
 0x2e0   : > { %1350 = vrot.lane.b32.xlu1 %v9131_v31, %s8819_s8  ;;  %1352 = vrot.lane.b32.xlu0 %v9127_v24, %s8819_s8 }
 0x2e4   : > { %1428 = vrot.lane.b32.xlu1 %v9148_v37, %s8819_s8  ;;  %1508 = vrot.lane.b32.xlu0 %v9136_v33, %s8819_s8 }
 0x2e8   : > { %1586 = vrot.lane.b32.xlu1 %v9142_v36, %s8819_s8  ;;  %1506 = vrot.lane.b32.xlu0 %v9140_v35, %s8819_s8 }
 0x30c   : > { %1048 = vadd.xlane.f32.xlu1 %v1047_v14 }
 0x31d   : > { %1584 = vrot.lane.b32.xlu1 %v9154_v38, %s8819_s8 }
 0x34f   : > { %v1040_v15 = vpop.xlane.xlu0 %1039 }
 0x350   : > { %8448 = vrcp.f32 %v1040_v15 }
 0x353   : > { %v1046_v17 = vpop.xlane.xlu0 %1045 }
 0x354   : > { %8450 = vrcp.f32 %v1046_v17  ;;  %v1043_v18 = vpop.xlane.xlu1 %1042 }
 0x355   : > { %8452 = vrcp.f32 %v1043_v18 }
 0x357   : > { %v1353_v22 = vpop.permute.xlu0 %1352 }
 0x358   : > { %v1431_v25 = vpop.permute.xlu1 %1430 }
 0x35b   : > { %v1509_v29 = vpop.permute.xlu0 %1508 }
 0x35c   : > { %v1351_v30 = vpop.permute.xlu1 %1350 }
 0x35d   : > { %v8449_v19 = vpop.eup %8448 }
 0x35e   : > { %v1054_v20 = vmul.f32 %v8449_v19, %v8441_v4 }
 0x35f   : > { %v1507_v34 = vpop.permute.xlu0 %1506 }
 0x360   : > { %7949 = vmatmul.mubr.msk.f32.vlgmr.msra.gmra.mxu0 %vm709_vm2, %v1054_v20  ;;  %v1429_v39 = vpop.permute.xlu1 %1428 }
 0x361   : > { %v8451_v23 = vpop.eup %8450  ;;  %7957 = vmatpush3.msra.mxu0 %v9211_v21  ;;  %7958 = vmatprep.mubr.msk.f32.mxu0 %vm8818_vm1, %v8817_v16 }
 0x362   : > { %v8453_v26 = vpop.eup %8452  ;;  %7966 = vmatprep.subr.mxu0 %v8817_v16  ;;  %v1056_v27 = vmul.f32 %v8451_v23, %v8443_v6 }
 0x363   : > { %v1055_v28 = vmul.f32 %v8453_v26, %v8445_v7 }
 0x364   : > { %7959 = vmatmul.mubr.msk.f32.vlgmr.msra.gmra.mxu0 %vm709_vm2, %v1056_v27  ;;  %v1587_v40 = vpop.permute.xlu1 %1586 }
 0x365   : > { %7954 = vmatmul.mubr.msk.f32.vlgmr.msra.gmra.mxu1 %vm709_vm2, %v1055_v28  ;;  %7967 = vmatpush3.xpose.msk.msra.mxu0 %vm709_vm2, %v1353_v22 }
 0x366   : > { %7962 = vmatpush3.msra.mxu1 %v9182_v45  ;;  %7968 = vmatprep.mubr.msk.f32.mxu0 %vm8818_vm1, %v8817_v16 }
 0x367   : > { %7976 = vmatprep.subr.mxu0 %v8817_v16  ;;  %7963 = vmatprep.mubr.msk.f32.mxu1 %vm8818_vm1, %v8817_v16 }
 0x368   : > { %7969 = vmatmul.mubr.msk.f32.vlgmr.msra.gmra.mxu0 %vm709_vm2, %v1351_v30  ;;  %7971 = vmatprep.subr.mxu1 %v8817_v16 }
 0x369   : > { %7977 = vmatpush3.xpose.msk.msra.mxu0 %vm709_vm2, %v1509_v29  ;;  %7978 = vmatprep.mubr.msk.f32.mxu0 %vm8818_vm1, %v8817_v16 }
 0x36a   : > { %7986 = vmatprep.subr.mxu0 %v8817_v16 }
 0x36c   : > { %7979 = vmatmul.mubr.msk.f32.vlgmr.msra.gmra.mxu0 %vm709_vm2, %v1507_v34 }
 0x36d   : > { %7988 = vmatprep.mubr.msk.f32.mxu0 %vm8818_vm1, %v8817_v16 }
 0x395   : > { %v1049_v42 = vpop.xlane.xlu1 %1048 }
 0x396   : > { %8454 = vrcp.f32 %v1049_v42 }
 0x399   : > { %v1585_v47 = vpop.permute.xlu1 %1584 }
 0x3a3   : > { %v8455_v44 = vpop.eup %8454 }
 0x3a4   : > { %v1057_v46 = vmul.f32 %v8455_v44, %v8447_v13 }
 0x3a6   : > { %7964 = vmatmul.mubr.msk.f32.vlgmr.msra.gmra.mxu1 %vm709_vm2, %v1057_v46 }
 0x3a7   : > { %7972 = vmatpush3.xpose.msk.msra.mxu1 %vm709_vm2, %v1431_v25  ;;  %7973 = vmatprep.mubr.msk.f32.mxu1 %vm8818_vm1, %v8817_v16 }
 0x3a8   : > { %7981 = vmatprep.subr.mxu1 %v8817_v16 }
 0x3aa   : > { %7974 = vmatmul.mubr.msk.f32.vlgmr.msra.gmra.mxu1 %vm709_vm2, %v1429_v39 }
 0x3ab   : > { %7982 = vmatpush3.xpose.msk.msra.mxu1 %vm709_vm2, %v1587_v40  ;;  %7983 = vmatprep.mubr.msk.f32.mxu1 %vm8818_vm1, %v8817_v16 }
 0x3ac   : > { %7991 = vmatprep.subr.mxu1 %v8817_v16 }
 0x3ae   : > { %7984 = vmatmul.mubr.msk.f32.vlgmr.msra.gmra.mxu1 %vm709_vm2, %v1585_v47 }
 0x3af   : > { %7993 = vmatprep.mubr.msk.f32.mxu1 %vm8818_vm1, %v8817_v16 }
 0x420   : > { %v9249_v48 = vpop.f32.mrf.mxu0 }
 0x422   : > { %v7950_v49 = vpop.f32.mrf.mxu0 }
 0x424   : > { %v9251_v50 = vpop.f32.mrf.mxu0 }
 0x425   : > { %v9253_v51 = vpop.f32.mrf.mxu1 }
 0x426   : > { %v7960_v52 = vpop.f32.mrf.mxu0 }
 0x427   : > { %v7955_v53 = vpop.f32.mrf.mxu1 }
 0x428   : > { %v1424_v54 = vpop.f32.mrf.mxu0  ;;  %v701_v53 = vld [vmem:[#allocation8 + $0x60] sm:$0xff] }
 0x429   : > { %v1662_v55 = vsel %vm709_vm2, %v1424_v54, -inf }
 0x42a   : > { %1663 = vmax.xlane.f32.xlu0 %v1662_v55  ;;  %v7970_v56 = vpop.f32.mrf.mxu0 }
 0x42c   : > { %v1580_v57 = vpop.f32.mrf.mxu0 }
 0x42d   : > { %v1668_v58 = vsel %vm709_vm2, %v1580_v57, -inf }
 0x42e   : > { %1669 = vmax.xlane.f32.xlu0 %v1668_v58  ;;  %v7980_v59 = vpop.f32.mrf.mxu0  ;;  %v702_v58 = vld [vmem:[#allocation8 + $0x68] sm:$0xff] }
 0x466   : > { %v9257_v60 = vpop.f32.mrf.mxu1 }
 0x468   : > { %v7965_v61 = vpop.f32.mrf.mxu1 }
 0x46a   : > { %v1502_v62 = vpop.f32.mrf.mxu1 }
 0x46b   : > { %v1665_v63 = vsel %vm709_vm2, %v1502_v62, -inf }
 0x46c   : > { %1666 = vmax.xlane.f32.xlu1 %v1665_v63  ;;  %v7975_v0 = vpop.f32.mrf.mxu1 }
 0x46e   : > { %v1658_v1 = vpop.f32.mrf.mxu1 }
 0x46f   : > { %v1671_v2 = vsel %vm709_vm2, %v1658_v1, -inf }
 0x470   : > { %1672 = vmax.xlane.f32.xlu0 %v1671_v2  ;;  %v7985_v3 = vpop.f32.mrf.mxu1 }
 0x4b3   : > { %v1664_v4 = vpop.xlane.xlu0 %1663 }
 0x4b4   : > { %v1674_v5 = vsub.f32 %v1424_v54, %v1664_v4 }
 0x4b6   : > { %v1678_v6 = vmul.f32 1.442695, %v1674_v5 }
 0x4b7   : > { %v1670_v7 = vpop.xlane.xlu0 %1669 }
 0x4b8   : > { %8456 = vpow2.f32 %v1678_v6  ;;  %v1676_v8 = vsub.f32 %v1580_v57, %v1670_v7 }
 0x4ba   : > { %v1682_v9 = vmul.f32 1.442695, %v1676_v8 }
 0x4bc   : > { %8458 = vpow2.f32 %v1682_v9 }
 0x4c5   : > { %v8457_v10 = vpop.eup %8456 }
 0x4c6   : > { %v1686_v11 = vsel %vm709_vm2, %v8457_v10, 0.0 }
 0x4c7   : > { %1687 = vadd.xlane.f32.xlu0 %v1686_v11 }
 0x4c9   : > { %v8459_v12 = vpop.eup %8458 }
 0x4ca   : > { %v1692_v13 = vsel %vm709_vm2, %v8459_v12, 0.0 }
 0x4cb   : > { %1693 = vadd.xlane.f32.xlu0 %v1692_v13 }
 0x4e1   : > { %1707 = vrot.lane.b32.xlu0 %v9177_v43, %s8819_s8 }
 0x4e5   : > { %2210 = vrot.lane.b32.xlu0 %v9127_v24, %s8820_s27 }
 0x4e9   : > { %2208 = vrot.lane.b32.xlu0 %v9131_v31, %s8820_s27 }
 0x4ed   : > { %2366 = vrot.lane.b32.xlu0 %v9136_v33, %s8820_s27 }
 0x4f1   : > { %2364 = vrot.lane.b32.xlu0 %v9140_v35, %s8820_s27 }
 0x4f5   : > { %v1667_v14 = vpop.xlane.xlu1 %1666 }
 0x4f6   : > { %v1675_v15 = vsub.f32 %v1502_v62, %v1667_v14 }
 0x4f8   : > { %v1680_v17 = vmul.f32 1.442695, %v1675_v15 }
 0x4f9   : > { %v1673_v20 = vpop.xlane.xlu0 %1672 }
 0x4fa   : > { %8460 = vpow2.f32 %v1680_v17  ;;  %v1677_v22 = vsub.f32 %v1658_v1, %v1673_v20 }
 0x4fc   : > { %v1684_v23 = vmul.f32 1.442695, %v1677_v22 }
 0x4fe   : > { %8462 = vpow2.f32 %v1684_v23 }
 0x507   : > { %v8461_v18 = vpop.eup %8460 }
 0x508   : > { %v1689_v19 = vsel %vm709_vm2, %v8461_v18, 0.0 }
 0x509   : > { %1690 = vadd.xlane.f32.xlu1 %v1689_v19 }
 0x50b   : > { %v8463_v25 = vpop.eup %8462 }
 0x50c   : > { %v1695_v26 = vsel %vm709_vm2, %v8463_v25, 0.0 }
 0x51a   : > { %1784 = vrot.lane.b32.xlu1 %v9174_v41, %s8819_s8 }
 0x51e   : > { %1861 = vrot.lane.b32.xlu1 %v9211_v21, %s8819_s8 }
 0x542   : > { %1696 = vadd.xlane.f32.xlu1 %v1695_v26 }
 0x550   : > { %v1688_v27 = vpop.xlane.xlu0 %1687 }
 0x551   : > { %8464 = vrcp.f32 %v1688_v27 }
 0x553   : > { %1938 = vrot.lane.b32.xlu1 %v9182_v45, %s8819_s8 }
 0x554   : > { %v1694_v28 = vpop.xlane.xlu0 %1693 }
 0x555   : > { %8466 = vrcp.f32 %v1694_v28 }
 0x557   : > { %2288 = vrot.lane.b32.xlu1 %v9134_v32, %s8820_s27 }
 0x558   : > { %v1708_v29 = vpop.permute.xlu0 %1707 }
 0x559   : > { %7987 = vmatpush3.msra.mxu0 %v1708_v29 }
 0x55a   : > { %7996 = vmatprep.subr.mxu0 %v8817_v16 }
 0x55b   : > { %2286 = vrot.lane.b32.xlu1 %v9148_v37, %s8820_s27 }
 0x55c   : > { %v2211_v0 = vpop.permute.xlu0 %2210 }
 0x55e   : > { %v8465_v30 = vpop.eup %8464 }
 0x55f   : > { %2444 = vrot.lane.b32.xlu1 %v9142_v36, %s8820_s27  ;;  %v1702_v34 = vmul.f32 %v8465_v30, %v8457_v10 }
 0x560   : > { %v2209_v2 = vpop.permute.xlu0 %2208 }
 0x561   : > { %7989 = vmatmul.mubr.msk.f32.vlgmr.msra.gmra.mxu0 %vm709_vm2, %v1702_v34 }
 0x562   : > { %7998 = vmatprep.mubr.msk.f32.mxu0 %vm8818_vm1, %v8817_v16  ;;  %v8467_v42 = vpop.eup %8466 }
 0x563   : > { %2442 = vrot.lane.b32.xlu1 %v9154_v38, %s8820_s27  ;;  %v1704_v46 = vmul.f32 %v8467_v42, %v8459_v12 }
 0x564   : > { %v2367_v4 = vpop.permute.xlu0 %2366 }
 0x568   : > { %v2365_v8 = vpop.permute.xlu0 %2364 }
 0x592   : > { %v1691_v39 = vpop.xlane.xlu1 %1690 }
 0x593   : > { %8468 = vrcp.f32 %v1691_v39 }
 0x596   : > { %v1785_v40 = vpop.permute.xlu1 %1784 }
 0x597   : > { %7992 = vmatpush3.msra.mxu1 %v1785_v40 }
 0x598   : > { %8001 = vmatprep.subr.mxu1 %v8817_v16 }
 0x59a   : > { %v1862_v44 = vpop.permute.xlu1 %1861 }
 0x59b   : > { %7997 = vmatpush3.msra.mxu0 %v1862_v44 }
 0x59c   : > { %7999 = vmatmul.mubr.msk.f32.vlgmr.msra.gmra.mxu0 %vm709_vm2, %v1704_v46  ;;  %8006 = vmatprep.subr.mxu0 %v702_v58 }
 0x59d   : > { %8007 = vmatpush3.msra.mxu0 %v702_v58 }
 0x59e   : > { %8022 = vmatprep.subr.mxu0 %v8817_v16 }
 0x5a0   : > { %v8469_v47 = vpop.eup %8468 }
 0x5a1   : > { %v1703_v49 = vmul.f32 %v8469_v47, %v8461_v18 }
 0x5a3   : > { %7994 = vmatmul.mubr.msk.f32.vlgmr.msra.gmra.mxu1 %vm709_vm2, %v1703_v49 }
 0x5a4   : > { %8003 = vmatprep.mubr.msk.f32.mxu1 %vm8818_vm1, %v8817_v16 }
 0x5cb   : > { %v1697_v52 = vpop.xlane.xlu1 %1696 }
 0x5cc   : > { %8470 = vrcp.f32 %v1697_v52 }
 0x5cf   : > { %v1939_v54 = vpop.permute.xlu1 %1938 }
 0x5d0   : > { %8002 = vmatpush3.msra.mxu1 %v1939_v54 }
 0x5d1   : > { %8014 = vmatprep.subr.mxu1 %v701_v53 }
 0x5d3   : > { %v2289_v56 = vpop.permute.xlu1 %2288 }
 0x5d7   : > { %v2287_v59 = vpop.permute.xlu1 %2286 }
 0x5d9   : > { %v8471_v55 = vpop.eup %8470 }
 0x5da   : > { %v1705_v57 = vmul.f32 %v8471_v55, %v8463_v25 }
 0x5dc   : > { %8004 = vmatmul.mubr.msk.f32.vlgmr.msra.gmra.mxu1 %vm709_vm2, %v1705_v57 }
 0x5dd   : > { %8016 = vmatprep.mubr.msk.f32.mxu1 %vm709_vm2, %v9249_v48  ;;  %8015 = vmatpush3.msra.mxu1 %v701_v53  ;;  %v2445_v48 = vpop.permute.xlu1 %2444 }
 0x5de   : > { %8027 = vmatprep.subr.mxu1 %v8817_v16 }
 0x5e0   : > { %8017 = vmatmul.mubr.msk.f32.vlgmr.msra.gmra.mxu1 %vm709_vm2, %v9253_v51 }
 0x5e1   : > { %8028 = vmatpush3.xpose.msk.msra.mxu1 %vm709_vm2, %v2289_v56  ;;  %8019 = vmatprep.mubr.msk.f32.mxu1 %vm709_vm2, %v9251_v50  ;;  %v2443_v50 = vpop.permute.xlu1 %2442 }
 0x5e2   : > { %8037 = vmatprep.subr.mxu1 %v8817_v16 }
 0x5e4   : > { %8020 = vmatmul.mubr.msk.f32.gmra.mxu1 %vm709_vm2, %v9257_v60 }
 0x5e5   : > { %8029 = vmatprep.mubr.msk.f32.mxu1 %vm8818_vm1, %v8817_v16 }
 0x5e8   : > { %8030 = vmatmul.mubr.msk.f32.vlgmr.msra.gmra.mxu1 %vm709_vm2, %v2287_v59 }
 0x5e9   : > { %8038 = vmatpush3.xpose.msk.msra.mxu1 %vm709_vm2, %v2445_v48  ;;  %8039 = vmatprep.mubr.msk.f32.mxu1 %vm8818_vm1, %v8817_v16 }
 0x5ea   : > { %8047 = vmatprep.subr.mxu1 %v8817_v16 }
 0x5ec   : > { %8040 = vmatmul.mubr.msk.f32.vlgmr.msra.gmra.mxu1 %vm709_vm2, %v2443_v50 }
 0x5ed   : > { %8049 = vmatprep.mubr.msk.f32.mxu1 %vm8818_vm1, %v8817_v16 }
 0x621   : > { %v1779_v51 = vpop.f32.mrf.mxu0 }
 0x622   : > { %8008 = vmatprep.mubr.msk.f32.mxu0 %vm709_vm2, %v1779_v51 }
 0x623   : > { %v7990_v60 = vpop.f32.mrf.mxu0 }
 0x65c   : > { %v1933_v61 = vpop.f32.mrf.mxu0 }
 0x65e   : > { %v8000_v62 = vpop.f32.mrf.mxu0 }
 0x663   : > { %v1856_v63 = vpop.f32.mrf.mxu1 }
 0x664   : > { %8009 = vmatmul.mubr.msk.f32.vlgmr.msra.gmra.mxu0 %vm709_vm2, %v1856_v63 }
 0x665   : > { %8023 = vmatpush3.xpose.msk.msra.mxu0 %vm709_vm2, %v2211_v0  ;;  %v7995_v1 = vpop.f32.mrf.mxu1  ;;  %8011 = vmatprep.mubr.msk.f32.mxu0 %vm709_vm2, %v1933_v61 }
 0x666   : > { %8032 = vmatprep.subr.mxu0 %v8817_v16 }
 0x69c   : > { %v2010_v3 = vpop.f32.mrf.mxu1 }
 0x69d   : > { %8012 = vmatmul.mubr.msk.f32.gmra.mxu0 %vm709_vm2, %v2010_v3 }
 0x69e   : > { %v8005_v5 = vpop.f32.mrf.mxu1  ;;  %8024 = vmatprep.mubr.msk.f32.mxu0 %vm8818_vm1, %v8817_v16 }
 0x6a0   : > { %v9329_v6 = vpop.f32.mrf.mxu1 }
 0x6a1   : > { %8025 = vmatmul.mubr.msk.f32.vlgmr.msra.gmra.mxu0 %vm709_vm2, %v2209_v2 }
 0x6a2   : > { %8033 = vmatpush3.xpose.msk.msra.mxu0 %vm709_vm2, %v2367_v4  ;;  %v9333_v7 = vpop.f32.mrf.mxu1  ;;  %8034 = vmatprep.mubr.msk.f32.mxu0 %vm8818_vm1, %v8817_v16 }
 0x6a3   : > { %8042 = vmatprep.subr.mxu0 %v8817_v16 }
 0x6a4   : > { %v9338_v9 = vpop.f32.mrf.mxu1 }
 0x6a5   : > { %8035 = vmatmul.mubr.msk.f32.vlgmr.msra.gmra.mxu0 %vm709_vm2, %v2365_v8 }
 0x6a6   : > { %v9341_v10 = vpop.f32.mrf.mxu1  ;;  %8044 = vmatprep.mubr.msk.f32.mxu0 %vm8818_vm1, %v8817_v16 }
 0x6a8   : > { %v2360_v11 = vpop.f32.mrf.mxu1 }
 0x6a9   : > { %v2523_v12 = vsel %vm709_vm2, %v2360_v11, -inf }
 0x6aa   : > { %2524 = vmax.xlane.f32.xlu1 %v2523_v12  ;;  %v8031_v13 = vpop.f32.mrf.mxu1 }
 0x6ac   : > { %v2516_v14 = vpop.f32.mrf.mxu1 }
 0x6ad   : > { %v2529_v42 = vsel %vm709_vm2, %v2516_v14, -inf }
 0x6ae   : > { %v8041_v15 = vpop.f32.mrf.mxu1 }
 0x724   : > { %v9350_v23 = vpop.f32.mrf.mxu0 }
 0x726   : > { %v9352_v25 = vpop.f32.mrf.mxu0 }
 0x733   : > { %v2525_v17 = vpop.xlane.xlu1 %2524 }
 0x734   : > { %v2533_v18 = vsub.f32 %v2360_v11, %v2525_v17 }
 0x736   : > { %v2538_v19 = vmul.f32 1.442695, %v2533_v18 }
 0x738   : > { %8472 = vpow2.f32 %v2538_v19 }
 0x745   : > { %v9346_v20 = vpop.eup %8472 }
 0x746   : > { %v2547_v22 = vsel %vm709_vm2, %v9346_v20, 0.0 }
 0x747   : > { %2548 = vadd.xlane.f32.xlu1 %v2547_v22 }
 0x75d   : > { %v9354_v26 = vpop.f32.mrf.mxu0 }
 0x75f   : > { %v9356_v27 = vpop.f32.mrf.mxu0 }
 0x761   : > { %v2282_v28 = vpop.f32.mrf.mxu0 }
 0x762   : > { %v2520_v29 = vsel %vm709_vm2, %v2282_v28, -inf }
 0x763   : > { %2521 = vmax.xlane.f32.xlu0 %v2520_v29  ;;  %v8026_v30 = vpop.f32.mrf.mxu0 }
 0x765   : > { %v2438_v34 = vpop.f32.mrf.mxu0 }
 0x766   : > { %v2526_v39 = vsel %vm709_vm2, %v2438_v34, -inf }
 0x767   : > { %2527 = vmax.xlane.f32.xlu0 %v2526_v39  ;;  %v8036_v40 = vpop.f32.mrf.mxu0 }
 0x76b   : > { %2530 = vmax.xlane.f32.xlu0 %v2529_v42 }
 0x7ec   : > { %v2522_v44 = vpop.xlane.xlu0 %2521 }
 0x7ed   : > { %v2532_v46 = vsub.f32 %v2282_v28, %v2522_v44 }
 0x7ef   : > { %v2536_v47 = vmul.f32 1.442695, %v2532_v46 }
 0x7f0   : > { %v2528_v49 = vpop.xlane.xlu0 %2527 }
 0x7f1   : > { %8474 = vpow2.f32 %v2536_v47  ;;  %v2534_v52 = vsub.f32 %v2438_v34, %v2528_v49 }
 0x7f3   : > { %v2540_v53 = vmul.f32 1.442695, %v2534_v52 }
 0x7f4   : > { %v2531_v54 = vpop.xlane.xlu0 %2530 }
 0x7f5   : > { %8476 = vpow2.f32 %v2540_v53  ;;  %v2535_v55 = vsub.f32 %v2516_v14, %v2531_v54  ;;  %v703_v14 = vld [vmem:[#allocation8 + $0x70] sm:$0xff] }
 0x7f7   : > { %v2542_v56 = vmul.f32 1.442695, %v2535_v55 }
 0x7f9   : > { %8478 = vpow2.f32 %v2542_v56 }
 0x7fe   : > { %v8475_v57 = vpop.eup %8474 }
 0x7ff   : > { %v2544_v58 = vsel %vm709_vm2, %v8475_v57, 0.0 }
 0x800   : > { %2545 = vadd.xlane.f32.xlu0 %v2544_v58 }
 0x802   : > { %v8477_v59 = vpop.eup %8476 }
 0x803   : > { %v2550_v48 = vsel %vm709_vm2, %v8477_v59, 0.0 }
 0x804   : > { %2551 = vadd.xlane.f32.xlu0 %v2550_v48  ;;  %v2195_v48 = vadd.f32 %v9329_v6, %v9350_v23 }
 0x806   : > { %v8479_v50 = vpop.eup %8478 }
 0x807   : > { %v2553_v51 = vsel %vm709_vm2, %v8479_v50, 0.0 }
 0x808   : > { %2554 = vadd.xlane.f32.xlu1 %v2553_v51 }
 0x819   : > { %2640 = vrot.lane.b32.xlu1 %v9174_v41, %s8820_s27 }
 0x81a   : > { %2564 = vrot.lane.b32.xlu0 %v9177_v43, %s8820_s27 }
 0x81d   : > { %2716 = vrot.lane.b32.xlu1 %v9211_v21, %s8820_s27 }
 0x81e   : > { %2971 = vrot.lane.b32.xlu0 %v9127_v24, %s8821_s14  ;;  %v2549_v24 = vpop.xlane.xlu1 %2548 }
 0x81f   : > { %8480 = vrcp.f32 %v2549_v24  ;;  %v2190_v24 = vadd.f32 %v9333_v7, %v9352_v25 }
 0x821   : > { %2792 = vrot.lane.b32.xlu1 %v9182_v45, %s8820_s27 }
 0x822   : > { %3049 = vrot.lane.b32.xlu0 %v9134_v32, %s8821_s14 }
 0x825   : > { %2969 = vrot.lane.b32.xlu1 %v9131_v31, %s8821_s14 }
 0x826   : > { %3127 = vrot.lane.b32.xlu0 %v9136_v33, %s8821_s14 }
 0x829   : > { %3047 = vrot.lane.b32.xlu1 %v9148_v37, %s8821_s14 }
 0x82a   : > { %3125 = vrot.lane.b32.xlu0 %v9140_v35, %s8821_s14 }
 0x82c   : > { %v8481_v61 = vpop.eup %8480 }
 0x82d   : > { %3205 = vrot.lane.b32.xlu1 %v9142_v36, %s8821_s14  ;;  %v2561_v37 = vmul.f32 %v8481_v61, %v9346_v20 }
 0x831   : > { %3203 = vrot.lane.b32.xlu1 %v9154_v38, %s8821_s14 }
 0x889   : > { %v2546_v32 = vpop.xlane.xlu0 %2545 }
 0x88a   : > { %8482 = vrcp.f32 %v2546_v32 }
 0x88d   : > { %v2552_v31 = vpop.xlane.xlu0 %2551 }
 0x88e   : > { %8484 = vrcp.f32 %v2552_v31 }
 0x891   : > { %v2555_v60 = vpop.xlane.xlu1 %2554  ;;  %v2565_v33 = vpop.permute.xlu0 %2564 }
 0x892   : > { %8486 = vrcp.f32 %v2555_v60  ;;  %8043 = vmatpush3.msra.mxu0 %v2565_v33  ;;  %v2205_v33 = vadd.f32 %v9338_v9, %v9354_v26 }
 0x893   : > { %8052 = vmatprep.subr.mxu0 %v8817_v16 }
 0x895   : > { %v2641_v35 = vpop.permute.xlu1 %2640  ;;  %v2972_v3 = vpop.permute.xlu0 %2971 }
 0x896   : > { %8048 = vmatpush3.msra.mxu1 %v2641_v35  ;;  %v2200_v35 = vadd.f32 %v9341_v10, %v9356_v27 }
 0x897   : > { %v8483_v36 = vpop.eup %8482  ;;  %8050 = vmatmul.mubr.msk.f32.vlgmr.msra.gmra.mxu1 %vm709_vm2, %v2561_v37  ;;  %8057 = vmatprep.subr.mxu1 %v8817_v16 }
 0x898   : > { %v2560_v38 = vmul.f32 %v8483_v36, %v8475_v57  ;;  %8059 = vmatprep.mubr.msk.f32.mxu1 %vm8818_vm1, %v8817_v16 }
 0x899   : > { %v2717_v62 = vpop.permute.xlu1 %2716  ;;  %v3050_v11 = vpop.permute.xlu0 %3049 }
 0x89a   : > { %8045 = vmatmul.mubr.msk.f32.vlgmr.msra.gmra.mxu0 %vm709_vm2, %v2560_v38 }
 0x89b   : > { %v8485_v63 = vpop.eup %8484  ;;  %8053 = vmatpush3.msra.mxu0 %v2717_v62  ;;  %8054 = vmatprep.mubr.msk.f32.mxu0 %vm8818_vm1, %v8817_v16 }
 0x89c   : > { %v2562_v0 = vmul.f32 %v8485_v63, %v8477_v59  ;;  %8062 = vmatprep.subr.mxu0 %v703_v14 }
 0x89d   : > { %v2793_v1 = vpop.permute.xlu1 %2792  ;;  %v3128_v19 = vpop.permute.xlu0 %3127 }
 0x89e   : > { %8055 = vmatmul.mubr.msk.f32.vlgmr.msra.gmra.mxu0 %vm709_vm2, %v2562_v0  ;;  %8058 = vmatpush3.msra.mxu1 %v2793_v1 }
 0x89f   : > { %v8487_v2 = vpop.eup %8486  ;;  %8070 = vmatprep.subr.mxu1 %v8817_v16  ;;  %8063 = vmatpush3.msra.mxu0 %v703_v14 }
 0x8a0   : > { %v2563_v4 = vmul.f32 %v8487_v2, %v8479_v50  ;;  %8080 = vmatprep.subr.mxu0 %v8817_v16 }
 0x8a1   : > { %v2970_v5 = vpop.permute.xlu1 %2969  ;;  %v3126_v34 = vpop.permute.xlu0 %3125 }
 0x8a2   : > { %8060 = vmatmul.mubr.msk.f32.vlgmr.msra.gmra.mxu1 %vm709_vm2, %v2563_v4 }
 0x8a3   : > { %8071 = vmatpush3.xpose.msk.msra.mxu1 %vm709_vm2, %v2972_v3  ;;  %8072 = vmatprep.mubr.msk.f32.mxu1 %vm8818_vm1, %v8817_v16 }
 0x8a4   : > { %8075 = vmatprep.subr.mxu1 %v8817_v16 }
 0x8a5   : > { %v3048_v8 = vpop.permute.xlu1 %3047 }
 0x8a6   : > { %8073 = vmatmul.mubr.msk.f32.vlgmr.msra.gmra.mxu1 %vm709_vm2, %v2970_v5 }
 0x8a7   : > { %8076 = vmatpush3.xpose.msk.msra.mxu1 %vm709_vm2, %v3050_v11  ;;  %8077 = vmatprep.mubr.msk.f32.mxu1 %vm8818_vm1, %v8817_v16 }
 0x8a8   : > { %8085 = vmatprep.subr.mxu1 %v8817_v16 }
 0x8a9   : > { %v3206_v12 = vpop.permute.xlu1 %3205 }
 0x8aa   : > { %8078 = vmatmul.mubr.msk.f32.vlgmr.msra.gmra.mxu1 %vm709_vm2, %v3048_v8 }
 0x8ab   : > { %8086 = vmatpush3.xpose.msk.msra.mxu1 %vm709_vm2, %v3206_v12  ;;  %8087 = vmatprep.mubr.msk.f32.mxu1 %vm8818_vm1, %v8817_v16 }
 0x8ac   : > { %8095 = vmatprep.subr.mxu1 %v8817_v16 }
 0x8ad   : > { %v3204_v13 = vpop.permute.xlu1 %3203 }
 0x8ae   : > { %8088 = vmatmul.mubr.msk.f32.vlgmr.msra.gmra.mxu1 %vm709_vm2, %v3204_v13 }
 0x8af   : > { %8097 = vmatprep.mubr.msk.f32.mxu1 %vm8818_vm1, %v8817_v16 }
 0x957   : > { %v2712_v15 = vpop.f32.mrf.mxu1 }
 0x959   : > { %v8051_v17 = vpop.f32.mrf.mxu1 }
 0x95a   : > { %v2636_v18 = vpop.f32.mrf.mxu0 }
 0x95b   : > { %8064 = vmatprep.mubr.msk.f32.mxu0 %vm709_vm2, %v2636_v18 }
 0x95c   : > { %v8046_v20 = vpop.f32.mrf.mxu0  ;;  %8065 = vmatmul.mubr.msk.f32.vlgmr.msra.gmra.mxu0 %vm709_vm2, %v2712_v15 }
 0x95d   : > { %8081 = vmatpush3.xpose.msk.msra.mxu0 %vm709_vm2, %v3128_v19 }
 0x95e   : > { %v2788_v22 = vpop.f32.mrf.mxu0  ;;  %8090 = vmatprep.subr.mxu0 %v8817_v16 }
 0x95f   : > { %8067 = vmatprep.mubr.msk.f32.mxu0 %vm709_vm2, %v2788_v22 }
 0x960   : > { %v8056_v28 = vpop.f32.mrf.mxu0 }
 0x962   : > { %v2864_v29 = vpop.f32.mrf.mxu1 }
 0x963   : > { %8068 = vmatmul.mubr.msk.f32.gmra.mxu0 %vm709_vm2, %v2864_v29  ;;  %v704_v29 = vld [vmem:[#allocation8 + $0x78] sm:$0xff] }
 0x964   : > { %v8061_v30 = vpop.f32.mrf.mxu1  ;;  %8082 = vmatprep.mubr.msk.f32.mxu0 %vm8818_vm1, %v8817_v16 }
 0x966   : > { %v3043_v39 = vpop.f32.mrf.mxu1 }
 0x967   : > { %8083 = vmatmul.mubr.msk.f32.vlgmr.msra.gmra.mxu0 %vm709_vm2, %v3126_v34  ;;  %v3281_v40 = vsel %vm709_vm2, %v3043_v39, -inf }
 0x968   : > { %3282 = vmax.xlane.f32.xlu0 %v3281_v40  ;;  %v8074_v42 = vpop.f32.mrf.mxu1  ;;  %8092 = vmatprep.mubr.msk.f32.mxu0 %vm8818_vm1, %v8817_v16 }
 0x96a   : > { %v3121_v44 = vpop.f32.mrf.mxu1 }
 0x96b   : > { %v3284_v46 = vsel %vm709_vm2, %v3121_v44, -inf }
 0x96c   : > { %3285 = vmax.xlane.f32.xlu1 %v3284_v46  ;;  %v8079_v47 = vpop.f32.mrf.mxu1 }
 0x96e   : > { %v3277_v49 = vpop.f32.mrf.mxu1 }
 0x96f   : > { %v3290_v38 = vsel %vm709_vm2, %v3277_v49, -inf }
 0x970   : > { %v8089_v52 = vpop.f32.mrf.mxu1 }
 0x971   : > { %v7576_v52 = vld [vmem:[#allocation10 + $0x3] ss:$0 sm:$0xff] }
 0x9f1   : > { %v3283_v58 = vpop.xlane.xlu0 %3282 }
 0x9f2   : > { %v3293_v59 = vsub.f32 %v3043_v39, %v3283_v58  ;;  %v8592_v58 = vld [vmem:[%s9084_s29 + $0x8] sm:$0xff] }
 0x9f4   : > { %v3297_v50 = vmul.f32 1.442695, %v3293_v59 }
 0x9f5   : > { %v3286_v53 = vpop.xlane.xlu1 %3285 }
 0x9f6   : > { %v3294_v54 = vsub.f32 %v3121_v44, %v3286_v53 }
 0x9f8   : > { %v3299_v55 = vmul.f32 1.442695, %v3294_v54 }
 0x9fa   : > { %8488 = vpow2.f32 %v3299_v55 }
 0x9fb   : > { %8490 = vpow2.f32 %v3297_v50  ;;  %v8593_v50 = vld [vmem:[%s9084_s29] sm:$0xff] }
 0xa07   : > { %v9431_v56 = vpop.eup %8488 }
 0xa08   : > { %v3308_v57 = vsel %vm709_vm2, %v9431_v56, 0.0  ;;  %v8491_v62 = vpop.eup %8490 }
 0xa09   : > { %3309 = vadd.xlane.f32.xlu1 %v3308_v57  ;;  %v3305_v9 = vsel %vm709_vm2, %v8491_v62, 0.0 }
 0xa1c   : > { %v8066_v51 = vpop.f32.mrf.mxu0 }
 0xa1d   : > { %v9439_v32 = vadd.f32 %v8066_v51, %v2195_v48 }
 0xa1e   : > { %v2946_v31 = vpop.f32.mrf.mxu0 }
 0xa1f   : > { %v9441_v60 = vadd.f32 %v2946_v31, %v2190_v24 }
 0xa23   : > { %v8069_v61 = vpop.f32.mrf.mxu0 }
 0xa24   : > { %v9447_v37 = vadd.f32 %v8069_v61, %v2205_v33 }
 0xa25   : > { %v2956_v6 = vpop.f32.mrf.mxu0 }
 0xa26   : > { %v9449_v23 = vadd.f32 %v2956_v6, %v2200_v35  ;;  %v8594_v6 = vld [vmem:[%s9084_s29 + $0x10] sm:$0xff] }
 0xa27   : > { %v3199_v36 = vpop.f32.mrf.mxu0 }
 0xa28   : > { %v3287_v7 = vsel %vm709_vm2, %v3199_v36, -inf }
 0xa29   : > { %v8084_v25 = vpop.f32.mrf.mxu0  ;;  %3288 = vmax.xlane.f32.xlu0 %v3287_v7 }
 0xa2a   : > { %v8595_v25 = vld [vmem:[%s9084_s29 + $0x18] sm:$0xff]  ;;  %s9941_s29 = scalar_lea.hbm %s10041_s6, %s7667_s28 }
 0xa2d   : > { %3291 = vmax.xlane.f32.xlu0 %v3290_v38 }
 0xa31   : > { %3306 = vadd.xlane.f32.xlu0 %v3305_v9 }
 0xa92   : > { %v3310_v11 = vpop.xlane.xlu1 %3309 }
 0xab2   : > { %v3289_v26 = vpop.xlane.xlu0 %3288 }
 0xab3   : > { %v3295_v63 = vsub.f32 %v3199_v36, %v3289_v26 }
 0xab5   : > { %v3301_v10 = vmul.f32 1.442695, %v3295_v63 }
 0xab6   : > { %v3292_v27 = vpop.xlane.xlu0 %3291 }
 0xab7   : > { %8492 = vpow2.f32 %v3301_v10  ;;  %v3296_v0 = vsub.f32 %v3277_v49, %v3292_v27 }
 0xab9   : > { %v3303_v1 = vmul.f32 1.442695, %v3296_v0 }
 0xaba   : > { %v3307_v8 = vpop.xlane.xlu0 %3306 }
 0xabb   : > { %8494 = vpow2.f32 %v3303_v1 }
 0xabc   : > { %8496 = vrcp.f32 %v3307_v8 }
 0xabd   : > { %8498 = vrcp.f32 %v3310_v11 }
 0xac4   : > { %v8493_v2 = vpop.eup %8492 }
 0xac5   : > { %v3311_v3 = vsel %vm709_vm2, %v8493_v2, 0.0 }
 0xac6   : > { %3312 = vadd.xlane.f32.xlu0 %v3311_v3 }
 0xac8   : > { %v8495_v4 = vpop.eup %8494 }
 0xac9   : > { %v3314_v5 = vsel %vm709_vm2, %v8495_v4, 0.0  ;;  %v8497_v13 = vpop.eup %8496 }
 0xaca   : > { %3315 = vadd.xlane.f32.xlu1 %v3314_v5  ;;  %v3321_v17 = vmul.f32 %v8497_v13, %v8491_v62 }
 0xadb   : > { %3401 = vrot.lane.b32.xlu1 %v9174_v41, %s8821_s14  ;;  %v8499_v41 = vpop.eup %8498 }
 0xadc   : > { %3325 = vrot.lane.b32.xlu0 %v9177_v43, %s8821_s14 }
 0xadf   : > { %3477 = vrot.lane.b32.xlu1 %v9211_v21, %s8821_s14 }
 0xae3   : > { %3553 = vrot.lane.b32.xlu1 %v9182_v45, %s8821_s14  ;;  %v3322_v45 = vmul.f32 %v8499_v41, %v9431_v56  ;;  %v3823_v41 = vld [vmem:[#allocation8 + $0xb8] sm:$0xff] }
 0xb4f   : > { %v3313_v12 = vpop.xlane.xlu0 %3312 }
 0xb50   : > { %8500 = vrcp.f32 %v3313_v12 }
 0xb53   : > { %v3316_v14 = vpop.xlane.xlu1 %3315  ;;  %v3326_v15 = vpop.permute.xlu0 %3325 }
 0xb54   : > { %8502 = vrcp.f32 %v3316_v14  ;;  %8091 = vmatpush3.msra.mxu0 %v3326_v15 }
 0xb55   : > { %8093 = vmatmul.mubr.msk.f32.vlgmr.msra.gmra.mxu0 %vm709_vm2, %v3321_v17  ;;  %8100 = vmatprep.subr.mxu0 %v8817_v16 }
 0xb56   : > { %8102 = vmatprep.mubr.msk.f32.mxu0 %vm8818_vm1, %v8817_v16 }
 0xb57   : > { %v3402_v43 = vpop.permute.xlu1 %3401 }
 0xb58   : > { %8096 = vmatpush3.msra.mxu1 %v3402_v43  ;;  %v3822_v43 = vld [vmem:[#allocation8 + $0xb0] sm:$0xff] }
 0xb59   : > { %8098 = vmatmul.mubr.msk.f32.vlgmr.msra.gmra.mxu1 %vm709_vm2, %v3322_v45  ;;  %8105 = vmatprep.subr.mxu1 %v8817_v16  ;;  %v3821_v45 = vld [vmem:[#allocation8 + $0xa8] sm:$0xff] }
 0xb5a   : > { %8107 = vmatprep.mubr.msk.f32.mxu1 %vm8818_vm1, %v8817_v16 }
 0xb5b   : > { %v3478_v21 = vpop.permute.xlu1 %3477 }
 0xb5c   : > { %8101 = vmatpush3.msra.mxu0 %v3478_v21  ;;  %v3820_v21 = vld [vmem:[#allocation8 + $0xa0] sm:$0xff] }
 0xb5d   : > { %v8501_v18 = vpop.eup %8500  ;;  %8110 = vmatprep.subr.mxu0 %v704_v29 }
 0xb5e   : > { %v3323_v19 = vmul.f32 %v8501_v18, %v8493_v2 }
 0xb5f   : > { %v3554_v20 = vpop.permute.xlu1 %3553 }
 0xb60   : > { %8103 = vmatmul.mubr.msk.f32.vlgmr.msra.gmra.mxu0 %vm709_vm2, %v3323_v19  ;;  %8106 = vmatpush3.msra.mxu1 %v3554_v20 }
 0xb61   : > { %v8503_v22 = vpop.eup %8502  ;;  %8111 = vmatpush3.msra.mxu0 %v704_v29  ;;  %8118 = vmatprep.subr.mxu1 %v3823_v41 }
 0xb62   : > { %v3324_v28 = vmul.f32 %v8503_v22, %v8495_v4  ;;  %8132 = vmatprep.subr.mxu0 %v8817_v16 }
 0xb64   : > { %8108 = vmatmul.mubr.msk.f32.vlgmr.msra.gmra.mxu1 %vm709_vm2, %v3324_v28 }
 0xb65   : > { %8119 = vmatpush3.msra.mxu1 %v3823_v41 }
 0xb66   : > { %8120 = vmatprep.subr.mxu1 %v3822_v43 }
 0xb67   : > { %8121 = vmatpush3.msra.mxu1 %v3822_v43 }
 0xb68   : > { %8122 = vmatprep.subr.mxu1 %v3821_v45 }
 0xb69   : > { %8123 = vmatpush3.msra.mxu1 %v3821_v45 }
 0xb6a   : > { %8124 = vmatprep.subr.mxu1 %v3820_v21 }
 0xb6b   : > { %8125 = vmatpush3.msra.mxu1 %v3820_v21 }
 0xb6c   : > { %8142 = vmatprep.subr.mxu1 %v8817_v16 }
 0xc15   : > { %v3397_v30 = vpop.f32.mrf.mxu0 }
 0xc16   : > { %8112 = vmatprep.mubr.msk.f32.mxu0 %vm709_vm2, %v3397_v30 }
 0xc17   : > { %v8094_v34 = vpop.f32.mrf.mxu0 }
 0xc19   : > { %v3473_v39 = vpop.f32.mrf.mxu1 }
 0xc1a   : > { %8113 = vmatmul.mubr.msk.f32.vlgmr.msra.gmra.mxu0 %vm709_vm2, %v3473_v39 }
 0xc1b   : > { %v8099_v40 = vpop.f32.mrf.mxu1 }
 0xc20   : > { %v3549_v42 = vpop.f32.mrf.mxu0 }
 0xc21   : > { %8115 = vmatprep.mubr.msk.f32.mxu0 %vm709_vm2, %v3549_v42 }
 0xc22   : > { %v8104_v44 = vpop.f32.mrf.mxu0 }
 0xc24   : > { %v3625_v46 = vpop.f32.mrf.mxu1 }
 0xc25   : > { %8116 = vmatmul.mubr.msk.f32.gmra.mxu0 %vm709_vm2, %v3625_v46 }
 0xc26   : > { %v8109_v47 = vpop.f32.mrf.mxu1  ;;  %8134 = vmatprep.mubr.msk.f32.mxu0 %vm8818_vm1, %v8817_v16 }
 0xc27   : > { %v7577_v47 = vld [vmem:[%s9994_s5] ss:$0 sm:$0xff] }
 0xcda   : > { %v8114_v49 = vpop.f32.mrf.mxu0 }
 0xcdb   : > { %v3727_v53 = vadd.f32 %v8114_v49, %v9439_v32 }
 0xcdc   : > { %v3707_v54 = vpop.f32.mrf.mxu0 }
 0xcdd   : > { %v3739_v55 = vadd.f32 %v7576_v52, %v3727_v53  ;;  %v3726_v56 = vadd.f32 %v3707_v54, %v9441_v60 }
 0xcdf   : > { %v3738_v57 = vadd.f32 %v7576_v52, %v3726_v56  ;;  %v3743_v59 = vadd.f32 %v8592_v58, %v3739_v55  ;;  %v7578_v55 = vld [vmem:[%s9994_s5 + $0x1] ss:$0 sm:$0xff] }
 0xce1   : > { %v3749_v48 = vsel %vm406_vm0, %v3743_v59, 0.0  ;;  %v3742_v51 = vadd.f32 %v8593_v50, %v3738_v57 }
 0xce2   : > { %3750 = vadd.xlane.f32.xlu1 %v3749_v48 }
 0xce3   : > { %v3746_v24 = vsel %vm406_vm0, %v3742_v51, 0.0 }
 0xce4   : > { %3747 = vadd.xlane.f32.xlu0 %v3746_v24 }
 0xce5   : > { %v8117_v31 = vpop.f32.mrf.mxu0 }
 0xce6   : > { %v3729_v32 = vadd.f32 %v8117_v31, %v9447_v37 }
 0xce7   : > { %v3717_v33 = vpop.f32.mrf.mxu0 }
 0xce8   : > { %v3728_v61 = vadd.f32 %v3717_v33, %v9449_v23  ;;  %v3741_v60 = vadd.f32 %v7576_v52, %v3729_v32 }
 0xcea   : > { %v3740_v35 = vadd.f32 %v7576_v52, %v3728_v61  ;;  %v3745_v38 = vadd.f32 %v8595_v25, %v3741_v60  ;;  %v387_v61 = vld [vmem:[%s9092_s3] sm:$0xff] }
 0xceb   : > { %v9524_v60 = vmul.f32 0.35355338, %v387_v61  ;;  %v7579_v25 = vld [vmem:[#allocation10 + $0x5] ss:$0 sm:$0xff] }
 0xcec   : > { %v3744_v36 = vadd.f32 %v8594_v6, %v3740_v35  ;;  %v3755_v62 = vsel %vm406_vm0, %v3745_v38, 0.0  ;;  %v389_v35 = vld [vmem:[%s9092_s3 + $0x10] sm:$0xff] }
 0xced   : > { %8133 = vmatpush3.xpose.msk.msra.mxu0 %vm709_vm2, %v9524_v60  ;;  %v9530_v6 = vmul.f32 0.35355338, %v389_v35 }
 0xcee   : > { %v3752_v7 = vsel %vm406_vm0, %v3744_v36, 0.0  ;;  %8137 = vmatprep.subr.mxu0 %v8817_v16 }
 0xcef   : > { %3753 = vadd.xlane.f32.xlu0 %v3752_v7 }
 0xcf3   : > { %3756 = vadd.xlane.f32.xlu0 %v3755_v62 }
 0xd6b   : > { %v3751_v9 = vpop.xlane.xlu1 %3750 }
 0xd6c   : > { %v3760_v26 = vmul.f32 0.03125, %v3751_v9 }
 0xd6d   : > { %v3748_v63 = vpop.xlane.xlu0 %3747 }
 0xd6e   : > { %v3764_v10 = vsub.f32 %v3743_v59, %v3760_v26  ;;  %v3759_v37 = vmul.f32 0.03125, %v3748_v63  ;;  %v390_v26 = vld [vmem:[%s9092_s3 + $0x18] sm:$0xff] }
 0xd6f   : > { %v9547_v63 = vmul.f32 0.35355338, %v390_v26 }
 0xd70   : > { %v3763_v27 = vsub.f32 %v3742_v51, %v3759_v37  ;;  %v3768_v0 = vmul.f32 %v3764_v10, %v3764_v10 }
 0xd72   : > { %v3774_v23 = vsel %vm406_vm0, %v3768_v0, 0.0  ;;  %v3767_v1 = vmul.f32 %v3763_v27, %v3763_v27 }
 0xd73   : > { %3775 = vadd.xlane.f32.xlu1 %v3774_v23 }
 0xd74   : > { %v3771_v2 = vsel %vm406_vm0, %v3767_v1, 0.0 }
 0xd75   : > { %3772 = vadd.xlane.f32.xlu0 %v3771_v2 }
 0xd78   : > { %v3754_v3 = vpop.xlane.xlu0 %3753 }
 0xd79   : > { %v3761_v4 = vmul.f32 0.03125, %v3754_v3 }
 0xd7b   : > { %v3765_v5 = vsub.f32 %v3744_v36, %v3761_v4  ;;  %v388_v36 = vld [vmem:[%s9092_s3 + $0x8] sm:$0xff]  ;;  %s8738_s3 = sshll.u32 %s8822_s7, 4  ;;  %s8739_s3 = int_to_ptr.vmem [resolvable:$false] %s8738_s3 }
 0xd7c   : > { %v3757_v8 = vpop.xlane.xlu0 %3756  ;;  %v9536_v62 = vmul.f32 0.35355338, %v388_v36  ;;  %v9613_v36 = vld [vmem:[%s9099_s19 + $0x18] sm:$0xff]  ;;  %p8741_p9 = scmp.lt.s32.totalorder %s9943_s15, %s8739_s3 }
 0xd7d   : > { %v3762_v11 = vmul.f32 0.03125, %v3757_v8  ;;  %v3769_v12 = vmul.f32 %v3765_v5, %v3765_v5 }
 0xd7f   : > { %v3766_v13 = vsub.f32 %v3745_v38, %v3762_v11  ;;  %v3777_v14 = vsel %vm406_vm0, %v3769_v12, 0.0 }
 0xd80   : > { %3778 = vadd.xlane.f32.xlu0 %v3777_v14 }
 0xd81   : > { %v3770_v15 = vmul.f32 %v3766_v13, %v3766_v13 }
 0xd83   : > { %v3780_v17 = vsel %vm406_vm0, %v3770_v15, 0.0 }
 0xd84   : > { %3781 = vadd.xlane.f32.xlu1 %v3780_v17 }
 0xdfc   : > { %v3776_v18 = vpop.xlane.xlu1 %3775 }
 0xdfd   : > { %v3784_v19 = vmul.f32 0.03125, %v3776_v18 }
 0xdfe   : > { %v3773_v20 = vpop.xlane.xlu0 %3772 }
 0xdff   : > { %v3788_v22 = vadd.f32 1e-05, %v3784_v19  ;;  %v3783_v28 = vmul.f32 0.03125, %v3773_v20 }
 0xe01   : > { %8504 = vrsqrt.f32 %v3788_v22  ;;  %v3787_v29 = vadd.f32 1e-05, %v3783_v28 }
 0xe03   : > { %8506 = vrsqrt.f32 %v3787_v29 }
 0xe09   : > { %v3779_v30 = vpop.xlane.xlu0 %3778 }
 0xe0a   : > { %v3785_v34 = vmul.f32 0.03125, %v3779_v30 }
 0xe0c   : > { %v3789_v39 = vadd.f32 1e-05, %v3785_v34 }
 0xe0d   : > { %v3782_v40 = vpop.xlane.xlu1 %3781 }
 0xe0e   : > { %v8505_v42 = vpop.eup %8504  ;;  %8508 = vrsqrt.f32 %v3789_v39  ;;  %v3786_v44 = vmul.f32 0.03125, %v3782_v40 }
 0xe0f   : > { %v3796_v46 = vmul.f32 %v8505_v42, %v3764_v10 }
 0xe10   : > { %v8507_v49 = vpop.eup %8506  ;;  %v3790_v52 = vadd.f32 1e-05, %v3786_v44 }
 0xe11   : > { %v3795_v53 = vmul.f32 %v8507_v49, %v3763_v27  ;;  %v3806_v54 = vmul.f32 %v7577_v47, %v3796_v46 }
 0xe12   : > { %8510 = vrsqrt.f32 %v3790_v52 }
 0xe13   : > { %v3805_v56 = vmul.f32 %v7577_v47, %v3795_v53  ;;  %v9507_v58 = vadd.f32 %v7578_v55, %v3806_v54  ;;  %v9580_v53 = vld [vmem:[%s9099_s19] sm:$0xff]  ;;  %v9585_v54 = vld [vmem:[%s9099_s19 + $0x8] sm:$0xff] }
 0xe15   : > { %v9505_v57 = vadd.f32 %v7578_v55, %v3805_v56 }
 0xe17   : > { %8126 = vmatprep.mubr.msk.f32.mxu1 %vm406_vm0, %v9505_v57 }
 0xe18   : > { %8127 = vmatmul.mubr.msk.f32.vlgmr.msra.gmra.mxu1 %vm406_vm0, %v9507_v58 }
 0xe19   : > { %8143 = vmatpush3.xpose.msk.msra.mxu1 %vm709_vm2, %v9530_v6 }
 0xe1a   : > { %8152 = vmatprep.subr.mxu1 %v8817_v16 }
 0xe1b   : > { %v8509_v59 = vpop.eup %8508 }
 0xe1c   : > { %v3797_v48 = vmul.f32 %v8509_v59, %v3765_v5 }
 0xe1e   : > { %v3807_v50 = vmul.f32 %v7577_v47, %v3797_v48 }
 0xe1f   : > { %v8511_v51 = vpop.eup %8510 }
 0xe20   : > { %v9513_v24 = vadd.f32 %v7578_v55, %v3807_v50  ;;  %v3798_v31 = vmul.f32 %v8511_v51, %v3766_v13 }
 0xe22   : > { %8129 = vmatprep.mubr.msk.f32.mxu1 %vm406_vm0, %v9513_v24  ;;  %v3808_v32 = vmul.f32 %v7577_v47, %v3798_v31  ;;  %v9606_v31 = vld [vmem:[%s9099_s19 + $0x10] sm:$0xff]  ;;  %s8740_s19 = scalar_lea.vmem %s8739_s3, 1024 }
 0xe23   : > { %p8742_p10 = scmp.lt.s32.totalorder %s8740_s19, %s8734_s11 }
 0xe24   : > { %v9517_v33 = vadd.f32 %v7578_v55, %v3808_v32 }
 0xe25   : > { %p8743_p1 = por %p8742_p10, %p8741_p9 }
 0xe26   : > { %8130 = vmatmul.mubr.msk.f32.gmra.mxu1 %vm406_vm0, %v9517_v33 }
 0xe27   : > { %8144 = vmatprep.mubr.msk.f32.mxu1 %vm8818_vm1, %v8817_v16  ;;  %p8744_p5 = pnand %p8743_p1, %p8737_p7 }
 0xed8   : > { %v8128_v7 = vpop.f32.mrf.mxu1 }
 0xed9   : > { %v9549_v10 = vadd.f32 %v8128_v7, %v7579_v25 }
 0xeda   : > { %v3910_v38 = vpop.f32.mrf.mxu1 }
 0xedb   : > { %v9538_v9 = vadd.f32 %v7579_v25, %v3910_v38 }
 0xedd   : > { %8135 = vmatmul.mubr.msk.f32.vlgmr.msra.gmra.mxu0 %vm709_vm2, %v9538_v9 }
 0xede   : > { %8138 = vmatpush3.xpose.msk.msra.mxu0 %vm709_vm2, %v9536_v62  ;;  %8139 = vmatprep.mubr.msk.f32.mxu0 %vm8818_vm1, %v8817_v16 }
 0xedf   : > { %8147 = vmatprep.subr.mxu0 %v8817_v16 }
 0xee1   : > { %8140 = vmatmul.mubr.msk.f32.vlgmr.msra.gmra.mxu0 %vm709_vm2, %v9549_v10 }
 0xee2   : > { %8148 = vmatpush3.xpose.msk.msra.mxu0 %vm709_vm2, %v9547_v63  ;;  %8149 = vmatprep.mubr.msk.f32.mxu0 %vm8818_vm1, %v8817_v16 }
 0xee3   : > { %8157 = vmatprep.subr.mxu0 %v8817_v16 }
 0xee6   : > { %v8131_v37 = vpop.f32.mrf.mxu1 }
 0xee7   : > { %v9559_v27 = vadd.f32 %v8131_v37, %v7579_v25 }
 0xee8   : > { %v3920_v0 = vpop.f32.mrf.mxu1 }
 0xee9   : > { %v9561_v23 = vadd.f32 %v7579_v25, %v3920_v0  ;;  %8150 = vmatmul.mubr.msk.f32.vlgmr.msra.gmra.mxu0 %vm709_vm2, %v9559_v27 }
 0xeea   : > { %8159 = vmatprep.mubr.msk.f32.mxu0 %vm8818_vm1, %v8817_v16  ;;  %8158 = vmatpush3.msra.mxu0 %v9585_v54 }
 0xeeb   : > { %8145 = vmatmul.mubr.msk.f32.vlgmr.msra.gmra.mxu1 %vm709_vm2, %v9561_v23  ;;  %8167 = vmatprep.subr.mxu0 %v8817_v16 }
 0xeec   : > { %8154 = vmatprep.mubr.msk.f32.mxu1 %vm8818_vm1, %v8817_v16  ;;  %8153 = vmatpush3.msra.mxu1 %v9580_v53 }
 0xeed   : > { %8162 = vmatprep.subr.mxu1 %v8817_v16 }
 0xf9d   : > { %v4010_v1 = vpop.f32.mrf.mxu0 }
 0xf9e   : > { %v4242_v2 = vsel %vm709_vm2, %v4010_v1, -inf }
 0xf9f   : > { %4243 = vmax.xlane.f32.xlu0 %v4242_v2  ;;  %v8136_v3 = vpop.f32.mrf.mxu0 }
 0xfa1   : > { %v4086_v4 = vpop.f32.mrf.mxu0 }
 0xfa2   : > { %v4245_v5 = vsel %vm709_vm2, %v4086_v4, -inf }
 0xfa3   : > { %4246 = vmax.xlane.f32.xlu1 %v4245_v5  ;;  %v8141_v8 = vpop.f32.mrf.mxu0 }
 0xfa9   : > { %v4238_v11 = vpop.f32.mrf.mxu0 }
 0xfaa   : > { %v4251_v12 = vsel %vm709_vm2, %v4238_v11, -inf }
 0xfab   : > { %v4162_v13 = vpop.f32.mrf.mxu1  ;;  %4252 = vmax.xlane.f32.xlu1 %v4251_v12  ;;  %v8151_v14 = vpop.f32.mrf.mxu0 }
 0xfac   : > { %v4248_v15 = vsel %vm709_vm2, %v4162_v13, -inf }
 0xfad   : > { %v8146_v17 = vpop.f32.mrf.mxu1  ;;  %4249 = vmax.xlane.f32.xlu0 %v4248_v15 }
0x1028   : > { %v4244_v41 = vpop.xlane.xlu0 %4243 }
0x1029   : > { %v4254_v43 = vsub.f32 %v4010_v1, %v4244_v41 }
0x102b   : > { %v4258_v45 = vmul.f32 1.442695, %v4254_v43 }
0x102c   : > { %v4247_v21 = vpop.xlane.xlu1 %4246 }
0x102d   : > { %8512 = vpow2.f32 %v4258_v45  ;;  %v4255_v18 = vsub.f32 %v4086_v4, %v4247_v21 }
0x102f   : > { %v4260_v19 = vmul.f32 1.442695, %v4255_v18 }
0x1031   : > { %8514 = vpow2.f32 %v4260_v19 }
0x1034   : > { %v4253_v20 = vpop.xlane.xlu1 %4252 }
0x1035   : > { %v4257_v22 = vsub.f32 %v4238_v11, %v4253_v20 }
0x1036   : > { %v4250_v28 = vpop.xlane.xlu0 %4249 }
0x1037   : > { %v4264_v29 = vmul.f32 1.442695, %v4257_v22  ;;  %v4256_v30 = vsub.f32 %v4162_v13, %v4250_v28 }
0x1039   : > { %8516 = vpow2.f32 %v4264_v29  ;;  %v4262_v34 = vmul.f32 1.442695, %v4256_v30 }
0x103a   : > { %v8513_v39 = vpop.eup %8512 }
0x103b   : > { %8518 = vpow2.f32 %v4262_v34  ;;  %v4266_v40 = vsel %vm709_vm2, %v8513_v39, 0.0 }
0x103c   : > { %4267 = vadd.xlane.f32.xlu0 %v4266_v40 }
0x103e   : > { %v8515_v42 = vpop.eup %8514 }
0x103f   : > { %v4269_v44 = vsel %vm709_vm2, %v8515_v42, 0.0 }
0x1040   : > { %4270 = vadd.xlane.f32.xlu1 %v4269_v44 }
0x1046   : > { %v8517_v46 = vpop.eup %8516 }
0x1047   : > { %v4275_v47 = vsel %vm709_vm2, %v8517_v46, 0.0 }
0x1048   : > { %v8519_v49 = vpop.eup %8518  ;;  %4276 = vadd.xlane.f32.xlu1 %v4275_v47 }
0x1049   : > { %v4272_v52 = vsel %vm709_vm2, %v8519_v49, 0.0 }
0x104a   : > { %4273 = vadd.xlane.f32.xlu0 %v4272_v52 }
0x1059   : > { %4658 = vrot.lane.b32.xlu1 %v9536_v62, %s8819_s8 }
0x105d   : > { %4578 = vrot.lane.b32.xlu1 %v9538_v9, %s8819_s8 }
0x1060   : > { %4580 = vrot.lane.b32.xlu0 %v9524_v60, %s8819_s8 }
0x1061   : > { %4656 = vrot.lane.b32.xlu1 %v9549_v10, %s8819_s8 }
0x1064   : > { %4736 = vrot.lane.b32.xlu0 %v9530_v6, %s8819_s8 }
0x1065   : > { %4814 = vrot.lane.b32.xlu1 %v9547_v63, %s8819_s8 }
0x1068   : > { %4734 = vrot.lane.b32.xlu0 %v9561_v23, %s8819_s8 }
0x1069   : > { %4812 = vrot.lane.b32.xlu1 %v9559_v27, %s8819_s8 }
0x10c5   : > { %v4268_v55 = vpop.xlane.xlu0 %4267 }
0x10c6   : > { %8520 = vrcp.f32 %v4268_v55 }
0x10c9   : > { %v4271_v56 = vpop.xlane.xlu1 %4270 }
0x10ca   : > { %8522 = vrcp.f32 %v4271_v56 }
0x10d1   : > { %v4277_v59 = vpop.xlane.xlu1 %4276 }
0x10d2   : > { %8524 = vrcp.f32 %v4277_v59 }
0x10d3   : > { %v8521_v48 = vpop.eup %8520  ;;  %v4274_v50 = vpop.xlane.xlu0 %4273 }
0x10d4   : > { %8526 = vrcp.f32 %v4274_v50  ;;  %v4282_v51 = vmul.f32 %v8521_v48, %v8513_v39 }
0x10d5   : > { %v4659_v32 = vpop.permute.xlu1 %4658 }
0x10d6   : > { %8155 = vmatmul.mubr.msk.f32.vlgmr.msra.gmra.mxu1 %vm709_vm2, %v4282_v51 }
0x10d7   : > { %v8523_v61 = vpop.eup %8522  ;;  %8163 = vmatpush3.msra.mxu1 %v9606_v31  ;;  %8164 = vmatprep.mubr.msk.f32.mxu1 %vm8818_vm1, %v8817_v16  ;;  %v4581_v26 = vpop.permute.xlu0 %4580 }
0x10d8   : > { %v4283_v35 = vmul.f32 %v8523_v61, %v8515_v42  ;;  %8172 = vmatprep.subr.mxu1 %v8817_v16 }
0x10d9   : > { %v4579_v7 = vpop.permute.xlu1 %4578 }
0x10da   : > { %8160 = vmatmul.mubr.msk.f32.vlgmr.msra.gmra.mxu0 %vm709_vm2, %v4283_v35 }
0x10db   : > { %8168 = vmatpush3.msra.mxu0 %v9613_v36  ;;  %8169 = vmatprep.mubr.msk.f32.mxu0 %vm8818_vm1, %v8817_v16  ;;  %v4737_v3 = vpop.permute.xlu0 %4736 }
0x10dc   : > { %8177 = vmatprep.subr.mxu0 %v8817_v16 }
0x10dd   : > { %v4657_v25 = vpop.permute.xlu1 %4656 }
0x10df   : > { %v8525_v38 = vpop.eup %8524  ;;  %v4735_v5 = vpop.permute.xlu0 %4734 }
0x10e0   : > { %v4285_v37 = vmul.f32 %v8525_v38, %v8517_v46 }
0x10e1   : > { %v8527_v0 = vpop.eup %8526  ;;  %v4815_v2 = vpop.permute.xlu1 %4814 }
0x10e2   : > { %8170 = vmatmul.mubr.msk.f32.vlgmr.msra.gmra.mxu0 %vm709_vm2, %v4285_v37  ;;  %v4284_v1 = vmul.f32 %v8527_v0, %v8519_v49 }
0x10e3   : > { %8178 = vmatpush3.xpose.msk.msra.mxu0 %vm709_vm2, %v4659_v32  ;;  %8179 = vmatprep.mubr.msk.f32.mxu0 %vm8818_vm1, %v8817_v16 }
0x10e4   : > { %8165 = vmatmul.mubr.msk.f32.vlgmr.msra.gmra.mxu1 %vm709_vm2, %v4284_v1  ;;  %8187 = vmatprep.subr.mxu0 %v8817_v16 }
0x10e5   : > { %8173 = vmatpush3.xpose.msk.msra.mxu1 %vm709_vm2, %v4581_v26  ;;  %8174 = vmatprep.mubr.msk.f32.mxu1 %vm8818_vm1, %v8817_v16  ;;  %v4813_v4 = vpop.permute.xlu1 %4812 }
0x10e6   : > { %8180 = vmatmul.mubr.msk.f32.vlgmr.msra.gmra.mxu0 %vm709_vm2, %v4657_v25  ;;  %8182 = vmatprep.subr.mxu1 %v8817_v16 }
0x10e7   : > { %8188 = vmatpush3.xpose.msk.msra.mxu0 %vm709_vm2, %v4815_v2  ;;  %8189 = vmatprep.mubr.msk.f32.mxu0 %vm8818_vm1, %v8817_v16 }
0x10e8   : > { %8175 = vmatmul.mubr.msk.f32.vlgmr.msra.gmra.mxu1 %vm709_vm2, %v4579_v7  ;;  %8197 = vmatprep.subr.mxu0 %v8817_v16 }
0x10e9   : > { %8183 = vmatpush3.xpose.msk.msra.mxu1 %vm709_vm2, %v4737_v3  ;;  %8184 = vmatprep.mubr.msk.f32.mxu1 %vm8818_vm1, %v8817_v16 }
0x10ea   : > { %8190 = vmatmul.mubr.msk.f32.vlgmr.msra.gmra.mxu0 %vm709_vm2, %v4813_v4  ;;  %8192 = vmatprep.subr.mxu1 %v8817_v16 }
0x10eb   : > { %8199 = vmatprep.mubr.msk.f32.mxu0 %vm8818_vm1, %v8817_v16 }
0x10ec   : > { %8185 = vmatmul.mubr.msk.f32.vlgmr.msra.gmra.mxu1 %vm709_vm2, %v4735_v5 }
0x10ed   : > { %8194 = vmatprep.mubr.msk.f32.mxu1 %vm8818_vm1, %v8817_v16 }
0x1196   : > { %v9647_v8 = vpop.f32.mrf.mxu1 }
0x1198   : > { %v8156_v11 = vpop.f32.mrf.mxu1 }
0x119a   : > { %v9649_v12 = vpop.f32.mrf.mxu0 }
0x119c   : > { %v8161_v13 = vpop.f32.mrf.mxu0 }
0x11a2   : > { %v9651_v14 = vpop.f32.mrf.mxu0 }
0x11a4   : > { %v9653_v15 = vpop.f32.mrf.mxu1  ;;  %v8171_v17 = vpop.f32.mrf.mxu0 }
0x11a6   : > { %v8166_v41 = vpop.f32.mrf.mxu1  ;;  %v4730_v43 = vpop.f32.mrf.mxu0 }
0x11a7   : > { %v4893_v45 = vsel %vm709_vm2, %v4730_v43, -inf }
0x11a8   : > { %v4652_v21 = vpop.f32.mrf.mxu1  ;;  %4894 = vmax.xlane.f32.xlu1 %v4893_v45  ;;  %v8181_v18 = vpop.f32.mrf.mxu0 }
0x11a9   : > { %v4890_v19 = vsel %vm709_vm2, %v4652_v21, -inf }
0x11aa   : > { %4891 = vmax.xlane.f32.xlu0 %v4890_v19  ;;  %v8176_v20 = vpop.f32.mrf.mxu1  ;;  %v4886_v22 = vpop.f32.mrf.mxu0 }
0x11ab   : > { %v4899_v39 = vsel %vm709_vm2, %v4886_v22, -inf }
0x11ac   : > { %v4808_v28 = vpop.f32.mrf.mxu1  ;;  %v8191_v29 = vpop.f32.mrf.mxu0 }
0x11ad   : > { %v4896_v30 = vsel %vm709_vm2, %v4808_v28, -inf }
0x11ae   : > { %4897 = vmax.xlane.f32.xlu0 %v4896_v30  ;;  %v8186_v34 = vpop.f32.mrf.mxu1 }
0x11b2   : > { %4900 = vmax.xlane.f32.xlu0 %v4899_v39 }
0x1231   : > { %v4895_v40 = vpop.xlane.xlu1 %4894 }
0x1232   : > { %v4903_v42 = vsub.f32 %v4730_v43, %v4895_v40 }
0x1233   : > { %v4892_v44 = vpop.xlane.xlu0 %4891 }
0x1234   : > { %v4908_v46 = vmul.f32 1.442695, %v4903_v42  ;;  %v4902_v47 = vsub.f32 %v4652_v21, %v4892_v44  ;;  %v3930_v21 = vld [vmem:[#allocation8 + $0x80] sm:$0xff] }
0x1236   : > { %8528 = vpow2.f32 %v4908_v46  ;;  %v4906_v49 = vmul.f32 1.442695, %v4902_v47 }
0x1237   : > { %v4898_v52 = vpop.xlane.xlu0 %4897 }
0x1238   : > { %8530 = vpow2.f32 %v4906_v49  ;;  %v4904_v55 = vsub.f32 %v4808_v28, %v4898_v52 }
0x123a   : > { %v4910_v56 = vmul.f32 1.442695, %v4904_v55 }
0x123b   : > { %v4901_v59 = vpop.xlane.xlu0 %4900 }
0x123c   : > { %8532 = vpow2.f32 %v4910_v56  ;;  %v4905_v48 = vsub.f32 %v4886_v22, %v4901_v59 }
0x123e   : > { %v4912_v50 = vmul.f32 1.442695, %v4905_v48 }
0x1240   : > { %8534 = vpow2.f32 %v4912_v50 }
0x1243   : > { %v8529_v51 = vpop.eup %8528 }
0x1244   : > { %v4917_v32 = vsel %vm709_vm2, %v8529_v51, 0.0 }
0x1245   : > { %v8531_v61 = vpop.eup %8530  ;;  %4918 = vadd.xlane.f32.xlu1 %v4917_v32 }
0x1246   : > { %v4914_v35 = vsel %vm709_vm2, %v8531_v61, 0.0 }
0x1247   : > { %4915 = vadd.xlane.f32.xlu0 %v4914_v35 }
0x1249   : > { %v8533_v7 = vpop.eup %8532 }
0x124a   : > { %v4920_v25 = vsel %vm709_vm2, %v8533_v7, 0.0 }
0x124b   : > { %4921 = vadd.xlane.f32.xlu0 %v4920_v25 }
0x124d   : > { %v8535_v38 = vpop.eup %8534 }
0x124e   : > { %v4923_v26 = vsel %vm709_vm2, %v8535_v38, 0.0 }
0x124f   : > { %4924 = vadd.xlane.f32.xlu1 %v4923_v26 }
0x1260   : > { %5012 = vrot.lane.b32.xlu1 %v9585_v54, %s8819_s8 }
0x1261   : > { %4935 = vrot.lane.b32.xlu0 %v9580_v53, %s8819_s8 }
0x1264   : > { %5089 = vrot.lane.b32.xlu1 %v9606_v31, %s8819_s8 }
0x1265   : > { %5438 = vrot.lane.b32.xlu0 %v9524_v60, %s8820_s27 }
0x1268   : > { %5166 = vrot.lane.b32.xlu1 %v9613_v36, %s8819_s8 }
0x1269   : > { %5436 = vrot.lane.b32.xlu0 %v9538_v9, %s8820_s27 }
0x126c   : > { %5516 = vrot.lane.b32.xlu1 %v9536_v62, %s8820_s27 }
0x126d   : > { %5594 = vrot.lane.b32.xlu0 %v9530_v6, %s8820_s27 }
0x1270   : > { %5514 = vrot.lane.b32.xlu1 %v9549_v10, %s8820_s27 }
0x1271   : > { %5592 = vrot.lane.b32.xlu0 %v9561_v23, %s8820_s27 }
0x1274   : > { %5672 = vrot.lane.b32.xlu1 %v9547_v63, %s8820_s27 }
0x1278   : > { %5670 = vrot.lane.b32.xlu1 %v9559_v27, %s8820_s27 }
0x12ce   : > { %v4919_v37 = vpop.xlane.xlu1 %4918 }
0x12cf   : > { %8536 = vrcp.f32 %v4919_v37 }
0x12d0   : > { %v4916_v0 = vpop.xlane.xlu0 %4915 }
0x12d1   : > { %8538 = vrcp.f32 %v4916_v0 }
0x12d4   : > { %v4922_v1 = vpop.xlane.xlu0 %4921 }
0x12d5   : > { %8540 = vrcp.f32 %v4922_v1 }
0x12d8   : > { %v4925_v2 = vpop.xlane.xlu1 %4924  ;;  %v4936_v3 = vpop.permute.xlu0 %4935 }
0x12d9   : > { %8542 = vrcp.f32 %v4925_v2  ;;  %8193 = vmatpush3.msra.mxu1 %v4936_v3 }
0x12da   : > { %8202 = vmatprep.subr.mxu1 %v8817_v16 }
0x12dc   : > { %v8537_v4 = vpop.eup %8536  ;;  %v5013_v5 = vpop.permute.xlu1 %5012 }
0x12dd   : > { %8198 = vmatpush3.msra.mxu0 %v5013_v5  ;;  %v4931_v11 = vmul.f32 %v8537_v4, %v8529_v51 }
0x12de   : > { %v8539_v13 = vpop.eup %8538  ;;  %8207 = vmatprep.subr.mxu0 %v8817_v16 }
0x12df   : > { %8200 = vmatmul.mubr.msk.f32.vlgmr.msra.gmra.mxu0 %vm709_vm2, %v4931_v11  ;;  %v4930_v17 = vmul.f32 %v8539_v13, %v8531_v61 }
0x12e0   : > { %v5090_v41 = vpop.permute.xlu1 %5089  ;;  %8209 = vmatprep.mubr.msk.f32.mxu0 %vm8818_vm1, %v8817_v16 }
0x12e1   : > { %8195 = vmatmul.mubr.msk.f32.vlgmr.msra.gmra.mxu1 %vm709_vm2, %v4930_v17 }
0x12e2   : > { %v8541_v43 = vpop.eup %8540  ;;  %8203 = vmatpush3.msra.mxu1 %v5090_v41  ;;  %8204 = vmatprep.mubr.msk.f32.mxu1 %vm8818_vm1, %v8817_v16 }
0x12e3   : > { %v4932_v45 = vmul.f32 %v8541_v43, %v8533_v7 }
0x12e4   : > { %v5167_v18 = vpop.permute.xlu1 %5166 }
0x12e5   : > { %8205 = vmatmul.mubr.msk.f32.vlgmr.msra.gmra.mxu1 %vm709_vm2, %v4932_v45  ;;  %8208 = vmatpush3.msra.mxu0 %v5167_v18 }
0x12e6   : > { %v8543_v19 = vpop.eup %8542  ;;  %8220 = vmatprep.subr.mxu0 %v3930_v21 }
0x12e7   : > { %v4933_v20 = vmul.f32 %v8543_v19, %v8535_v38 }
0x12e8   : > { %v5517_v22 = vpop.permute.xlu1 %5516 }
0x12e9   : > { %8210 = vmatmul.mubr.msk.f32.vlgmr.msra.gmra.mxu0 %vm709_vm2, %v4933_v20 }
0x12ea   : > { %8222 = vmatprep.mubr.msk.f32.mxu0 %vm709_vm2, %v9647_v8  ;;  %8221 = vmatpush3.msra.mxu0 %v3930_v21 }
0x12eb   : > { %8233 = vmatprep.subr.mxu0 %v8817_v16 }
0x12ec   : > { %v5515_v28 = vpop.permute.xlu1 %5514 }
0x12ed   : > { %8223 = vmatmul.mubr.msk.f32.vlgmr.msra.gmra.mxu0 %vm709_vm2, %v9649_v12  ;;  %v3931_v12 = vld [vmem:[#allocation8 + $0x88] sm:$0xff] }
0x12ee   : > { %8225 = vmatprep.mubr.msk.f32.mxu0 %vm709_vm2, %v9653_v15  ;;  %8234 = vmatpush3.xpose.msk.msra.mxu0 %vm709_vm2, %v5517_v22 }
0x12ef   : > { %8243 = vmatprep.subr.mxu0 %v8817_v16  ;;  %8212 = vmatprep.subr.mxu1 %v3931_v12 }
0x12f0   : > { %v5673_v29 = vpop.permute.xlu1 %5672  ;;  %8213 = vmatpush3.msra.mxu1 %v3931_v12 }
0x12f1   : > { %8226 = vmatmul.mubr.msk.f32.gmra.mxu0 %vm709_vm2, %v9651_v14  ;;  %8228 = vmatprep.subr.mxu1 %v8817_v16  ;;  %v5439_v14 = vpop.permute.xlu0 %5438 }
0x12f2   : > { %8235 = vmatprep.mubr.msk.f32.mxu0 %vm8818_vm1, %v8817_v16 }
0x12f4   : > { %v5671_v8 = vpop.permute.xlu1 %5670 }
0x12f5   : > { %8236 = vmatmul.mubr.msk.f32.vlgmr.msra.gmra.mxu0 %vm709_vm2, %v5515_v28  ;;  %v5437_v40 = vpop.permute.xlu0 %5436 }
0x12f6   : > { %8244 = vmatpush3.xpose.msk.msra.mxu0 %vm709_vm2, %v5673_v29  ;;  %8245 = vmatprep.mubr.msk.f32.mxu0 %vm8818_vm1, %v8817_v16 }
0x12f7   : > { %8253 = vmatprep.subr.mxu0 %v8817_v16 }
0x12f9   : > { %8246 = vmatmul.mubr.msk.f32.vlgmr.msra.gmra.mxu0 %vm709_vm2, %v5671_v8  ;;  %v5595_v47 = vpop.permute.xlu0 %5594 }
0x12fa   : > { %8255 = vmatprep.mubr.msk.f32.mxu0 %vm8818_vm1, %v8817_v16 }
0x12fd   : > { %v5593_v56 = vpop.permute.xlu0 %5592 }
0x139f   : > { %v5084_v15 = vpop.f32.mrf.mxu0 }
0x13a1   : > { %v5007_v30 = vpop.f32.mrf.mxu1  ;;  %v8201_v34 = vpop.f32.mrf.mxu0 }
0x13a2   : > { %8214 = vmatprep.mubr.msk.f32.mxu1 %vm709_vm2, %v5007_v30 }
0x13a3   : > { %v8196_v39 = vpop.f32.mrf.mxu1  ;;  %8215 = vmatmul.mubr.msk.f32.vlgmr.msra.gmra.mxu1 %vm709_vm2, %v5084_v15 }
0x13a4   : > { %8229 = vmatpush3.xpose.msk.msra.mxu1 %vm709_vm2, %v5439_v14 }
0x13a5   : > { %v5161_v42 = vpop.f32.mrf.mxu1  ;;  %8238 = vmatprep.subr.mxu1 %v8817_v16 }
0x13a6   : > { %8217 = vmatprep.mubr.msk.f32.mxu1 %vm709_vm2, %v5161_v42 }
0x13a7   : > { %v8206_v44 = vpop.f32.mrf.mxu1 }
0x13a9   : > { %v5238_v46 = vpop.f32.mrf.mxu0 }
0x13aa   : > { %8218 = vmatmul.mubr.msk.f32.gmra.mxu1 %vm709_vm2, %v5238_v46 }
0x13ab   : > { %v8211_v49 = vpop.f32.mrf.mxu0  ;;  %8230 = vmatprep.mubr.msk.f32.mxu1 %vm8818_vm1, %v8817_v16 }
0x13ad   : > { %v9727_v52 = vpop.f32.mrf.mxu0 }
0x13ae   : > { %8231 = vmatmul.mubr.msk.f32.vlgmr.msra.gmra.mxu1 %vm709_vm2, %v5437_v40 }
0x13af   : > { %v9730_v55 = vpop.f32.mrf.mxu0  ;;  %8239 = vmatpush3.xpose.msk.msra.mxu1 %vm709_vm2, %v5595_v47  ;;  %8240 = vmatprep.mubr.msk.f32.mxu1 %vm8818_vm1, %v8817_v16 }
0x13b0   : > { %8248 = vmatprep.subr.mxu1 %v8817_v16 }
0x13b1   : > { %v9736_v59 = vpop.f32.mrf.mxu0 }
0x13b2   : > { %8241 = vmatmul.mubr.msk.f32.vlgmr.msra.gmra.mxu1 %vm709_vm2, %v5593_v56 }
0x13b3   : > { %v9739_v48 = vpop.f32.mrf.mxu0  ;;  %8250 = vmatprep.mubr.msk.f32.mxu1 %vm8818_vm1, %v8817_v16 }
0x13b5   : > { %v5588_v50 = vpop.f32.mrf.mxu0 }
0x13b6   : > { %v5751_v51 = vsel %vm709_vm2, %v5588_v50, -inf }
0x13b7   : > { %5752 = vmax.xlane.f32.xlu1 %v5751_v51  ;;  %v8237_v32 = vpop.f32.mrf.mxu0 }
0x13b9   : > { %v5744_v61 = vpop.f32.mrf.mxu0 }
0x13ba   : > { %v5757_v43 = vsel %vm709_vm2, %v5744_v61, -inf }
0x13bb   : > { %v8247_v35 = vpop.f32.mrf.mxu0 }
0x1440   : > { %v5753_v7 = vpop.xlane.xlu1 %5752 }
0x1441   : > { %v5761_v25 = vsub.f32 %v5588_v50, %v5753_v7 }
0x1443   : > { %v5766_v38 = vmul.f32 1.442695, %v5761_v25 }
0x1445   : > { %8544 = vpow2.f32 %v5766_v38  ;;  %v3932_v38 = vld [vmem:[#allocation8 + $0x90] sm:$0xff] }
0x1452   : > { %v9744_v26 = vpop.eup %8544 }
0x1453   : > { %v5775_v37 = vsel %vm709_vm2, %v9744_v26, 0.0 }
0x1454   : > { %5776 = vadd.xlane.f32.xlu1 %v5775_v37 }
0x1463   : > { %v9748_v0 = vpop.f32.mrf.mxu1 }
0x1465   : > { %v9750_v1 = vpop.f32.mrf.mxu1 }
0x146a   : > { %v9752_v2 = vpop.f32.mrf.mxu1 }
0x146c   : > { %v9754_v3 = vpop.f32.mrf.mxu1 }
0x146e   : > { %v5510_v4 = vpop.f32.mrf.mxu1 }
0x146f   : > { %v5748_v5 = vsel %vm709_vm2, %v5510_v4, -inf }
0x1470   : > { %5749 = vmax.xlane.f32.xlu0 %v5748_v5  ;;  %v8232_v11 = vpop.f32.mrf.mxu1 }
0x1472   : > { %v5666_v13 = vpop.f32.mrf.mxu1 }
0x1473   : > { %v5754_v17 = vsel %vm709_vm2, %v5666_v13, -inf }
0x1474   : > { %5755 = vmax.xlane.f32.xlu0 %v5754_v17  ;;  %v8242_v41 = vpop.f32.mrf.mxu1 }
0x1478   : > { %5758 = vmax.xlane.f32.xlu0 %v5757_v43 }
0x14f9   : > { %v5750_v45 = vpop.xlane.xlu0 %5749 }
0x14fa   : > { %v5760_v21 = vsub.f32 %v5510_v4, %v5750_v45 }
0x14fc   : > { %v5764_v18 = vmul.f32 1.442695, %v5760_v21 }
0x14fd   : > { %v5756_v19 = vpop.xlane.xlu0 %5755 }
0x14fe   : > { %8546 = vpow2.f32 %v5764_v18  ;;  %v5762_v20 = vsub.f32 %v5666_v13, %v5756_v19 }
0x1500   : > { %v5768_v22 = vmul.f32 1.442695, %v5762_v20 }
0x1501   : > { %v5759_v28 = vpop.xlane.xlu0 %5758 }
0x1502   : > { %8548 = vpow2.f32 %v5768_v22  ;;  %v5763_v29 = vsub.f32 %v5744_v61, %v5759_v28 }
0x1504   : > { %v5770_v8 = vmul.f32 1.442695, %v5763_v29 }
0x1506   : > { %8550 = vpow2.f32 %v5770_v8 }
0x150b   : > { %v8547_v12 = vpop.eup %8546 }
0x150c   : > { %v5772_v14 = vsel %vm709_vm2, %v8547_v12, 0.0 }
0x150d   : > { %5773 = vadd.xlane.f32.xlu0 %v5772_v14 }
0x150f   : > { %v8549_v15 = vpop.eup %8548 }
0x1510   : > { %v5778_v30 = vsel %vm709_vm2, %v8549_v15, 0.0 }
0x1511   : > { %5779 = vadd.xlane.f32.xlu0 %v5778_v30 }
0x1513   : > { %v8551_v34 = vpop.eup %8550 }
0x1514   : > { %v5781_v39 = vsel %vm709_vm2, %v8551_v34, 0.0 }
0x1515   : > { %5782 = vadd.xlane.f32.xlu1 %v5781_v39 }
0x1526   : > { %5868 = vrot.lane.b32.xlu1 %v9585_v54, %s8820_s27 }
0x1527   : > { %5792 = vrot.lane.b32.xlu0 %v9580_v53, %s8820_s27 }
0x152a   : > { %5944 = vrot.lane.b32.xlu1 %v9606_v31, %s8820_s27 }
0x152b   : > { %6199 = vrot.lane.b32.xlu0 %v9524_v60, %s8821_s14  ;;  %v5777_v60 = vpop.xlane.xlu1 %5776 }
0x152c   : > { %8552 = vrcp.f32 %v5777_v60 }
0x152e   : > { %6020 = vrot.lane.b32.xlu1 %v9613_v36, %s8820_s27 }
0x152f   : > { %6277 = vrot.lane.b32.xlu0 %v9536_v62, %s8821_s14 }
0x1532   : > { %6197 = vrot.lane.b32.xlu1 %v9538_v9, %s8821_s14 }
0x1533   : > { %6355 = vrot.lane.b32.xlu0 %v9530_v6, %s8821_s14 }
0x1536   : > { %6275 = vrot.lane.b32.xlu1 %v9549_v10, %s8821_s14 }
0x1537   : > { %6353 = vrot.lane.b32.xlu0 %v9561_v23, %s8821_s14 }
0x1539   : > { %v8553_v42 = vpop.eup %8552 }
0x153a   : > { %6433 = vrot.lane.b32.xlu1 %v9547_v63, %s8821_s14  ;;  %v5789_v23 = vmul.f32 %v8553_v42, %v9744_v26 }
0x153e   : > { %6431 = vrot.lane.b32.xlu1 %v9559_v27, %s8821_s14 }
0x1596   : > { %v5774_v62 = vpop.xlane.xlu0 %5773 }
0x1597   : > { %8554 = vrcp.f32 %v5774_v62  ;;  %v5423_v62 = vadd.f32 %v9727_v52, %v9748_v0 }
0x159a   : > { %v5780_v9 = vpop.xlane.xlu0 %5779 }
0x159b   : > { %8556 = vrcp.f32 %v5780_v9 }
0x159e   : > { %v5783_v40 = vpop.xlane.xlu1 %5782  ;;  %v5793_v6 = vpop.permute.xlu0 %5792 }
0x159f   : > { %8558 = vrcp.f32 %v5783_v40  ;;  %8249 = vmatpush3.msra.mxu1 %v5793_v6  ;;  %v5418_v6 = vadd.f32 %v9730_v55, %v9750_v1 }
0x15a0   : > { %8258 = vmatprep.subr.mxu1 %v8817_v16 }
0x15a2   : > { %v5869_v10 = vpop.permute.xlu1 %5868  ;;  %v6200_v50 = vpop.permute.xlu0 %6199 }
0x15a3   : > { %8254 = vmatpush3.msra.mxu0 %v5869_v10 }
0x15a4   : > { %v8555_v63 = vpop.eup %8554  ;;  %8256 = vmatmul.mubr.msk.f32.vlgmr.msra.gmra.mxu0 %vm709_vm2, %v5789_v23  ;;  %8263 = vmatprep.subr.mxu0 %v8817_v16 }
0x15a5   : > { %v5788_v27 = vmul.f32 %v8555_v63, %v8547_v12  ;;  %8265 = vmatprep.mubr.msk.f32.mxu0 %vm8818_vm1, %v8817_v16  ;;  %v5433_v63 = vadd.f32 %v9736_v59, %v9752_v2 }
0x15a6   : > { %v5945_v44 = vpop.permute.xlu1 %5944  ;;  %v6278_v35 = vpop.permute.xlu0 %6277 }
0x15a7   : > { %8251 = vmatmul.mubr.msk.f32.vlgmr.msra.gmra.mxu1 %vm709_vm2, %v5788_v27 }
0x15a8   : > { %v8557_v46 = vpop.eup %8556  ;;  %8259 = vmatpush3.msra.mxu1 %v5945_v44  ;;  %8260 = vmatprep.mubr.msk.f32.mxu1 %vm8818_vm1, %v8817_v16  ;;  %v5428_v44 = vadd.f32 %v9739_v48, %v9754_v3 }
0x15a9   : > { %v5790_v47 = vmul.f32 %v8557_v46, %v8549_v15  ;;  %8268 = vmatprep.subr.mxu1 %v3932_v38 }
0x15aa   : > { %v6021_v49 = vpop.permute.xlu1 %6020  ;;  %v6356_v5 = vpop.permute.xlu0 %6355 }
0x15ab   : > { %8261 = vmatmul.mubr.msk.f32.vlgmr.msra.gmra.mxu1 %vm709_vm2, %v5790_v47  ;;  %8264 = vmatpush3.msra.mxu0 %v6021_v49 }
0x15ac   : > { %v8559_v56 = vpop.eup %8558  ;;  %8276 = vmatprep.subr.mxu0 %v8817_v16  ;;  %8269 = vmatpush3.msra.mxu1 %v3932_v38 }
0x15ad   : > { %v5791_v51 = vmul.f32 %v8559_v56, %v8551_v34  ;;  %8286 = vmatprep.subr.mxu1 %v8817_v16 }
0x15ae   : > { %v6198_v32 = vpop.permute.xlu1 %6197  ;;  %v6354_v45 = vpop.permute.xlu0 %6353 }
0x15af   : > { %8266 = vmatmul.mubr.msk.f32.vlgmr.msra.gmra.mxu0 %vm709_vm2, %v5791_v51 }
0x15b0   : > { %8277 = vmatpush3.xpose.msk.msra.mxu0 %vm709_vm2, %v6200_v50  ;;  %8278 = vmatprep.mubr.msk.f32.mxu0 %vm8818_vm1, %v8817_v16 }
0x15b1   : > { %8281 = vmatprep.subr.mxu0 %v8817_v16 }
0x15b2   : > { %v6276_v61 = vpop.permute.xlu1 %6275 }
0x15b3   : > { %8279 = vmatmul.mubr.msk.f32.vlgmr.msra.gmra.mxu0 %vm709_vm2, %v6198_v32 }
0x15b4   : > { %8282 = vmatpush3.xpose.msk.msra.mxu0 %vm709_vm2, %v6278_v35  ;;  %8283 = vmatprep.mubr.msk.f32.mxu0 %vm8818_vm1, %v8817_v16 }
0x15b5   : > { %8291 = vmatprep.subr.mxu0 %v8817_v16 }
0x15b6   : > { %v6434_v7 = vpop.permute.xlu1 %6433 }
0x15b7   : > { %8284 = vmatmul.mubr.msk.f32.vlgmr.msra.gmra.mxu0 %vm709_vm2, %v6276_v61 }
0x15b8   : > { %8292 = vmatpush3.xpose.msk.msra.mxu0 %vm709_vm2, %v6434_v7  ;;  %8293 = vmatprep.mubr.msk.f32.mxu0 %vm8818_vm1, %v8817_v16 }
0x15b9   : > { %8301 = vmatprep.subr.mxu0 %v8817_v16 }
0x15ba   : > { %v6432_v25 = vpop.permute.xlu1 %6431 }
0x15bb   : > { %8294 = vmatmul.mubr.msk.f32.vlgmr.msra.gmra.mxu0 %vm709_vm2, %v6432_v25 }
0x15bc   : > { %8303 = vmatprep.mubr.msk.f32.mxu0 %vm8818_vm1, %v8817_v16 }
0x1664   : > { %v5940_v26 = vpop.f32.mrf.mxu0 }
0x1666   : > { %v8257_v37 = vpop.f32.mrf.mxu0 }
0x1667   : > { %v5864_v4 = vpop.f32.mrf.mxu1 }
0x1668   : > { %8270 = vmatprep.mubr.msk.f32.mxu1 %vm709_vm2, %v5864_v4 }
0x1669   : > { %v8252_v11 = vpop.f32.mrf.mxu1  ;;  %8271 = vmatmul.mubr.msk.f32.vlgmr.msra.gmra.mxu1 %vm709_vm2, %v5940_v26 }
0x166a   : > { %8287 = vmatpush3.xpose.msk.msra.mxu1 %vm709_vm2, %v6356_v5 }
0x166b   : > { %v6016_v13 = vpop.f32.mrf.mxu1  ;;  %8296 = vmatprep.subr.mxu1 %v8817_v16 }
0x166c   : > { %8273 = vmatprep.mubr.msk.f32.mxu1 %vm709_vm2, %v6016_v13 }
0x166d   : > { %v8262_v17 = vpop.f32.mrf.mxu1 }
0x166f   : > { %v6092_v41 = vpop.f32.mrf.mxu0 }
0x1670   : > { %8274 = vmatmul.mubr.msk.f32.gmra.mxu1 %vm709_vm2, %v6092_v41 }
0x1671   : > { %v8267_v43 = vpop.f32.mrf.mxu0  ;;  %8288 = vmatprep.mubr.msk.f32.mxu1 %vm8818_vm1, %v8817_v16 }
0x1673   : > { %v6271_v21 = vpop.f32.mrf.mxu0 }
0x1674   : > { %8289 = vmatmul.mubr.msk.f32.vlgmr.msra.gmra.mxu1 %vm709_vm2, %v6354_v45  ;;  %v6509_v18 = vsel %vm709_vm2, %v6271_v21, -inf }
0x1675   : > { %6510 = vmax.xlane.f32.xlu0 %v6509_v18  ;;  %v8280_v19 = vpop.f32.mrf.mxu0  ;;  %8298 = vmatprep.mubr.msk.f32.mxu1 %vm8818_vm1, %v8817_v16  ;;  %v3933_v18 = vld [vmem:[#allocation8 + $0x98] sm:$0xff] }
0x1677   : > { %v6349_v20 = vpop.f32.mrf.mxu0 }
0x1678   : > { %v6512_v22 = vsel %vm709_vm2, %v6349_v20, -inf }
0x1679   : > { %6513 = vmax.xlane.f32.xlu1 %v6512_v22  ;;  %v8285_v28 = vpop.f32.mrf.mxu0 }
0x167b   : > { %v6505_v29 = vpop.f32.mrf.mxu0 }
0x167c   : > { %v6518_v49 = vsel %vm709_vm2, %v6505_v29, -inf }
0x167d   : > { %v8295_v8 = vpop.f32.mrf.mxu0 }
0x16fe   : > { %v6511_v39 = vpop.xlane.xlu0 %6510 }
0x16ff   : > { %v6521_v60 = vsub.f32 %v6271_v21, %v6511_v39 }
0x1701   : > { %v6525_v9 = vmul.f32 1.442695, %v6521_v60 }
0x1702   : > { %v6514_v12 = vpop.xlane.xlu1 %6513 }
0x1703   : > { %v6522_v14 = vsub.f32 %v6349_v20, %v6514_v12 }
0x1705   : > { %v6527_v15 = vmul.f32 1.442695, %v6522_v14 }
0x1707   : > { %8560 = vpow2.f32 %v6527_v15  ;;  %v7648_v15 = vld [vmem:[#allocation10 + $0x4] ss:$0 sm:$0xff] }
0x1708   : > { %8562 = vpow2.f32 %v6525_v9 }
0x1714   : > { %v9829_v30 = vpop.eup %8560 }
0x1715   : > { %v6536_v34 = vsel %vm709_vm2, %v9829_v30, 0.0  ;;  %v8563_v56 = vpop.eup %8562 }
0x1716   : > { %6537 = vadd.xlane.f32.xlu1 %v6536_v34  ;;  %v6533_v59 = vsel %vm709_vm2, %v8563_v56, 0.0 }
0x1729   : > { %v8272_v40 = vpop.f32.mrf.mxu1 }
0x172a   : > { %v9837_v42 = vadd.f32 %v8272_v40, %v5423_v62 }
0x172b   : > { %v6174_v10 = vpop.f32.mrf.mxu1 }
0x172c   : > { %v9839_v23 = vadd.f32 %v6174_v10, %v5418_v6 }
0x1730   : > { %v8275_v27 = vpop.f32.mrf.mxu1 }
0x1731   : > { %v9845_v46 = vadd.f32 %v8275_v27, %v5433_v63 }
0x1732   : > { %v6184_v52 = vpop.f32.mrf.mxu1 }
0x1733   : > { %v9847_v0 = vadd.f32 %v6184_v52, %v5428_v44 }
0x1734   : > { %v6427_v47 = vpop.f32.mrf.mxu1 }
0x1735   : > { %v6515_v55 = vsel %vm709_vm2, %v6427_v47, -inf }
0x1736   : > { %v8290_v1 = vpop.f32.mrf.mxu1  ;;  %6516 = vmax.xlane.f32.xlu0 %v6515_v55 }
0x173a   : > { %6519 = vmax.xlane.f32.xlu0 %v6518_v49 }
0x173e   : > { %6534 = vadd.xlane.f32.xlu0 %v6533_v59 }
0x179f   : > { %v6538_v26 = vpop.xlane.xlu1 %6537 }
0x17bf   : > { %v6517_v2 = vpop.xlane.xlu0 %6516 }
0x17c0   : > { %v6523_v50 = vsub.f32 %v6427_v47, %v6517_v2 }
0x17c2   : > { %v6529_v48 = vmul.f32 1.442695, %v6523_v50 }
0x17c3   : > { %v6520_v3 = vpop.xlane.xlu0 %6519 }
0x17c4   : > { %8564 = vpow2.f32 %v6529_v48  ;;  %v6524_v51 = vsub.f32 %v6505_v29, %v6520_v3 }
0x17c6   : > { %v6531_v32 = vmul.f32 1.442695, %v6524_v51 }
0x17c7   : > { %v6535_v38 = vpop.xlane.xlu0 %6534 }
0x17c8   : > { %8566 = vpow2.f32 %v6531_v32 }
0x17c9   : > { %8568 = vrcp.f32 %v6535_v38 }
0x17ca   : > { %8570 = vrcp.f32 %v6538_v26 }
0x17d1   : > { %v8565_v61 = vpop.eup %8564 }
0x17d2   : > { %v6539_v35 = vsel %vm709_vm2, %v8565_v61, 0.0 }
0x17d3   : > { %6540 = vadd.xlane.f32.xlu0 %v6539_v35 }
0x17d5   : > { %v8567_v7 = vpop.eup %8566 }
0x17d6   : > { %v6542_v25 = vsel %vm709_vm2, %v8567_v7, 0.0  ;;  %v8569_v4 = vpop.eup %8568 }
0x17d7   : > { %6543 = vadd.xlane.f32.xlu1 %v6542_v25  ;;  %v6549_v13 = vmul.f32 %v8569_v4, %v8563_v56  ;;  %v7037_v4 = vld [vmem:[#allocation8 + $0xd0] sm:$0xff] }
0x17e8   : > { %6629 = vrot.lane.b32.xlu1 %v9585_v54, %s8821_s14  ;;  %v8571_v54 = vpop.eup %8570 }
0x17e9   : > { %6553 = vrot.lane.b32.xlu0 %v9580_v53, %s8821_s14 }
0x17ec   : > { %6705 = vrot.lane.b32.xlu1 %v9606_v31, %s8821_s14  ;;  %v6550_v31 = vmul.f32 %v8571_v54, %v9829_v30 }
0x17f0   : > { %6781 = vrot.lane.b32.xlu1 %v9613_v36, %s8821_s14 }
0x185c   : > { %v6541_v37 = vpop.xlane.xlu0 %6540 }
0x185d   : > { %8572 = vrcp.f32 %v6541_v37  ;;  %v7038_v37 = vld [vmem:[#allocation8 + $0xd8] sm:$0xff] }
0x1860   : > { %v6544_v5 = vpop.xlane.xlu1 %6543  ;;  %v6554_v11 = vpop.permute.xlu0 %6553 }
0x1861   : > { %8574 = vrcp.f32 %v6544_v5  ;;  %8297 = vmatpush3.msra.mxu1 %v6554_v11  ;;  %v7036_v5 = vld [vmem:[#allocation8 + $0xc8] sm:$0xff]  ;;  %v7035_v11 = vld [vmem:[#allocation8 + $0xc0] sm:$0xff] }
0x1862   : > { %8299 = vmatmul.mubr.msk.f32.vlgmr.msra.gmra.mxu1 %vm709_vm2, %v6549_v13  ;;  %8306 = vmatprep.subr.mxu1 %v8817_v16 }
0x1863   : > { %8308 = vmatprep.mubr.msk.f32.mxu1 %vm8818_vm1, %v8817_v16 }
0x1864   : > { %v6630_v53 = vpop.permute.xlu1 %6629 }
0x1865   : > { %8302 = vmatpush3.msra.mxu0 %v6630_v53 }
0x1866   : > { %8304 = vmatmul.mubr.msk.f32.vlgmr.msra.gmra.mxu0 %vm709_vm2, %v6550_v31  ;;  %8311 = vmatprep.subr.mxu0 %v8817_v16 }
0x1867   : > { %8313 = vmatprep.mubr.msk.f32.mxu0 %vm8818_vm1, %v8817_v16 }
0x1868   : > { %v6706_v36 = vpop.permute.xlu1 %6705 }
0x1869   : > { %8307 = vmatpush3.msra.mxu1 %v6706_v36 }
0x186a   : > { %v8573_v17 = vpop.eup %8572  ;;  %8316 = vmatprep.subr.mxu1 %v3933_v18 }
0x186b   : > { %v6551_v41 = vmul.f32 %v8573_v17, %v8565_v61 }
0x186c   : > { %v6782_v43 = vpop.permute.xlu1 %6781 }
0x186d   : > { %8309 = vmatmul.mubr.msk.f32.vlgmr.msra.gmra.mxu1 %vm709_vm2, %v6551_v41  ;;  %8312 = vmatpush3.msra.mxu0 %v6782_v43 }
0x186e   : > { %v8575_v45 = vpop.eup %8574  ;;  %8317 = vmatpush3.msra.mxu1 %v3933_v18  ;;  %8324 = vmatprep.subr.mxu0 %v7038_v37 }
0x186f   : > { %v6552_v21 = vmul.f32 %v8575_v45, %v8567_v7 }
0x1871   : > { %8314 = vmatmul.mubr.msk.f32.vlgmr.msra.gmra.mxu0 %vm709_vm2, %v6552_v21 }
0x1872   : > { %8325 = vmatpush3.msra.mxu0 %v7038_v37 }
0x1873   : > { %8326 = vmatprep.subr.mxu0 %v7037_v4 }
0x1874   : > { %8327 = vmatpush3.msra.mxu0 %v7037_v4 }
0x1875   : > { %8328 = vmatprep.subr.mxu0 %v7036_v5 }
0x1876   : > { %8329 = vmatpush3.msra.mxu0 %v7036_v5 }
0x1877   : > { %8330 = vmatprep.subr.mxu0 %v7035_v11 }
0x1878   : > { %8331 = vmatpush3.msra.mxu0 %v7035_v11 }
0x1922   : > { %v6625_v19 = vpop.f32.mrf.mxu1 }
0x1923   : > { %8318 = vmatprep.mubr.msk.f32.mxu1 %vm709_vm2, %v6625_v19 }
0x1924   : > { %v8300_v20 = vpop.f32.mrf.mxu1 }
0x1926   : > { %v6701_v16 = vpop.f32.mrf.mxu0 }
0x1927   : > { %8319 = vmatmul.mubr.msk.f32.vlgmr.msra.gmra.mxu1 %vm709_vm2, %v6701_v16 }
0x1928   : > { %v8305_v22 = vpop.f32.mrf.mxu0 }
0x192d   : > { %v6777_v28 = vpop.f32.mrf.mxu1 }
0x192e   : > { %8321 = vmatprep.mubr.msk.f32.mxu1 %vm709_vm2, %v6777_v28 }
0x192f   : > { %v8310_v29 = vpop.f32.mrf.mxu1 }
0x1930   : > { %v9896_v29 = vld [vmem:[%s9994_s5] ss:$0 sm:$0xff] }
0x1931   : > { %v6853_v8 = vpop.f32.mrf.mxu0 }
0x1932   : > { %8322 = vmatmul.mubr.msk.f32.gmra.mxu1 %vm709_vm2, %v6853_v8 }
0x1933   : > { %v8315_v12 = vpop.f32.mrf.mxu0 }
0x19e7   : > { %v8320_v14 = vpop.f32.mrf.mxu1 }
0x19e8   : > { %v6955_v30 = vadd.f32 %v8320_v14, %v9837_v42  ;;  %v9903_v14 = vld [vmem:[%s9994_s5 + $0x1] ss:$0 sm:$0xff] }
0x19e9   : > { %v6935_v34 = vpop.f32.mrf.mxu1 }
0x19ea   : > { %v6967_v39 = vadd.f32 %v7648_v15, %v6955_v30  ;;  %v6954_v60 = vadd.f32 %v6935_v34, %v9839_v23 }
0x19ec   : > { %v6966_v62 = vadd.f32 %v7648_v15, %v6954_v60  ;;  %v6971_v9 = vadd.f32 %v6967_v39, %v9507_v58 }
0x19ee   : > { %v6977_v40 = vsel %vm406_vm0, %v6971_v9, 0.0  ;;  %v6970_v6 = vadd.f32 %v6966_v62, %v9505_v57 }
0x19ef   : > { %6978 = vadd.xlane.f32.xlu1 %v6977_v40 }
0x19f0   : > { %v6974_v10 = vsel %vm406_vm0, %v6970_v6, 0.0 }
0x19f1   : > { %6975 = vadd.xlane.f32.xlu0 %v6974_v10 }
0x19f2   : > { %v8323_v63 = vpop.f32.mrf.mxu1 }
0x19f3   : > { %v6957_v27 = vadd.f32 %v8323_v63, %v9845_v46  ;;  %v7152_v63 = vld [vmem:[#allocation8 + $0xf8] sm:$0xff] }
0x19f4   : > { %v6945_v44 = vpop.f32.mrf.mxu1  ;;  %8338 = vmatprep.subr.mxu1 %v7152_v63 }
0x19f5   : > { %v6956_v42 = vadd.f32 %v6945_v44, %v9847_v0  ;;  %v6969_v52 = vadd.f32 %v7648_v15, %v6957_v27  ;;  %8339 = vmatpush3.msra.mxu1 %v7152_v63  ;;  %v7151_v27 = vld [vmem:[#allocation8 + $0xf0] sm:$0xff]  ;;  %v7150_v44 = vld [vmem:[#allocation8 + $0xe8] sm:$0xff] }
0x19f6   : > { %8340 = vmatprep.subr.mxu1 %v7151_v27 }
0x19f7   : > { %v6968_v47 = vadd.f32 %v7648_v15, %v6956_v42  ;;  %v6973_v55 = vadd.f32 %v6969_v52, %v9517_v33  ;;  %8341 = vmatpush3.msra.mxu1 %v7151_v27  ;;  %v7149_v42 = vld [vmem:[#allocation8 + $0xe0] sm:$0xff] }
0x19f8   : > { %8342 = vmatprep.subr.mxu1 %v7150_v44  ;;  %v7649_v52 = vld [vmem:[#allocation10 + $0x6] ss:$0 sm:$0xff] }
0x19f9   : > { %v6972_v23 = vadd.f32 %v6968_v47, %v9513_v24  ;;  %v6983_v57 = vsel %vm406_vm0, %v6973_v55, 0.0  ;;  %8343 = vmatpush3.msra.mxu1 %v7150_v44 }
0x19fa   : > { %8344 = vmatprep.subr.mxu1 %v7149_v42 }
0x19fb   : > { %v6980_v58 = vsel %vm406_vm0, %v6972_v23, 0.0  ;;  %8345 = vmatpush3.msra.mxu1 %v7149_v42 }
0x19fc   : > { %6981 = vadd.xlane.f32.xlu0 %v6980_v58 }
0x1a00   : > { %6984 = vadd.xlane.f32.xlu0 %v6983_v57 }
0x1a78   : > { %v6979_v1 = vpop.xlane.xlu1 %6978 }
0x1a79   : > { %v6987_v49 = vmul.f32 0.03125, %v6979_v1 }
0x1a7a   : > { %v6976_v56 = vpop.xlane.xlu0 %6975 }
0x1a7b   : > { %v6991_v59 = vsub.f32 %v6971_v9, %v6987_v49  ;;  %v6986_v46 = vmul.f32 0.03125, %v6976_v56 }
0x1a7d   : > { %v6990_v2 = vsub.f32 %v6970_v6, %v6986_v46  ;;  %v6995_v50 = vmul.f32 %v6991_v59, %v6991_v59 }
0x1a7f   : > { %v7001_v0 = vsel %vm406_vm0, %v6995_v50, 0.0  ;;  %v6994_v48 = vmul.f32 %v6990_v2, %v6990_v2 }
0x1a80   : > { %7002 = vadd.xlane.f32.xlu1 %v7001_v0  ;;  %v7654_v0 = vld [vmem:[#allocation10 + $0x7] ss:$0 sm:$0xff] }
0x1a81   : > { %v6998_v24 = vsel %vm406_vm0, %v6994_v48, 0.0 }
0x1a82   : > { %6999 = vadd.xlane.f32.xlu0 %v6998_v24 }
0x1a85   : > { %v6982_v3 = vpop.xlane.xlu0 %6981 }
0x1a86   : > { %v6988_v33 = vmul.f32 0.03125, %v6982_v3 }
0x1a88   : > { %v6992_v51 = vsub.f32 %v6972_v23, %v6988_v33 }
0x1a89   : > { %v6985_v32 = vpop.xlane.xlu0 %6984 }
0x1a8a   : > { %v6989_v61 = vmul.f32 0.03125, %v6985_v32  ;;  %v6996_v35 = vmul.f32 %v6992_v51, %v6992_v51 }
0x1a8c   : > { %v6993_v7 = vsub.f32 %v6973_v55, %v6989_v61  ;;  %v7004_v25 = vsel %vm406_vm0, %v6996_v35, 0.0 }
0x1a8d   : > { %7005 = vadd.xlane.f32.xlu0 %v7004_v25 }
0x1a8e   : > { %v6997_v38 = vmul.f32 %v6993_v7, %v6993_v7 }
0x1a90   : > { %v7007_v26 = vsel %vm406_vm0, %v6997_v38, 0.0 }
0x1a91   : > { %7008 = vadd.xlane.f32.xlu1 %v7007_v26 }
0x1b09   : > { %v7003_v13 = vpop.xlane.xlu1 %7002 }
0x1b0a   : > { %v7011_v54 = vmul.f32 0.03125, %v7003_v13 }
0x1b0b   : > { %v7000_v53 = vpop.xlane.xlu0 %6999 }
0x1b0c   : > { %v7015_v31 = vadd.f32 1e-05, %v7011_v54  ;;  %v7010_v36 = vmul.f32 0.03125, %v7000_v53 }
0x1b0e   : > { %8576 = vrsqrt.f32 %v7015_v31  ;;  %v7014_v17 = vadd.f32 1e-05, %v7010_v36 }
0x1b10   : > { %8578 = vrsqrt.f32 %v7014_v17 }
0x1b16   : > { %v7006_v41 = vpop.xlane.xlu0 %7005 }
0x1b17   : > { %v7012_v43 = vmul.f32 0.03125, %v7006_v41 }
0x1b19   : > { %v7016_v45 = vadd.f32 1e-05, %v7012_v43 }
0x1b1a   : > { %v7009_v21 = vpop.xlane.xlu1 %7008 }
0x1b1b   : > { %v8577_v18 = vpop.eup %8576  ;;  %8580 = vrsqrt.f32 %v7016_v45  ;;  %v7013_v19 = vmul.f32 0.03125, %v7009_v21 }
0x1b1c   : > { %v7023_v20 = vmul.f32 %v8577_v18, %v6991_v59 }
0x1b1d   : > { %v8579_v16 = vpop.eup %8578  ;;  %v7017_v22 = vadd.f32 1e-05, %v7013_v19 }
0x1b1e   : > { %v7022_v28 = vmul.f32 %v8579_v16, %v6990_v2  ;;  %v7027_v8 = vmul.f32 %v9896_v29, %v7023_v20 }
0x1b1f   : > { %8582 = vrsqrt.f32 %v7017_v22 }
0x1b20   : > { %v7026_v12 = vmul.f32 %v9896_v29, %v7022_v28  ;;  %v7031_v30 = vadd.f32 %v9903_v14, %v7027_v8 }
0x1b22   : > { %v7030_v15 = vadd.f32 %v9903_v14, %v7026_v12 }
0x1b24   : > { %8332 = vmatprep.mubr.msk.f32.mxu0 %vm406_vm0, %v7030_v15 }
0x1b25   : > { %8333 = vmatmul.mubr.msk.f32.vlgmr.msra.gmra.mxu0 %vm406_vm0, %v7031_v30 }
0x1b28   : > { %v8581_v34 = vpop.eup %8580 }
0x1b29   : > { %v7024_v39 = vmul.f32 %v8581_v34, %v6992_v51 }
0x1b2b   : > { %v7028_v60 = vmul.f32 %v9896_v29, %v7024_v39 }
0x1b2c   : > { %v8583_v62 = vpop.eup %8582 }
0x1b2d   : > { %v7032_v9 = vadd.f32 %v9903_v14, %v7028_v60  ;;  %v7025_v40 = vmul.f32 %v8583_v62, %v6993_v7 }
0x1b2f   : > { %8335 = vmatprep.mubr.msk.f32.mxu0 %vm406_vm0, %v7032_v9  ;;  %v7029_v6 = vmul.f32 %v9896_v29, %v7025_v40 }
0x1b31   : > { %v7033_v10 = vadd.f32 %v9903_v14, %v7029_v6 }
0x1b33   : > { %8336 = vmatmul.mubr.msk.f32.gmra.mxu0 %vm406_vm0, %v7033_v10 }
0x1be5   : > { %v8334_v47 = vpop.f32.mrf.mxu0 }
0x1be6   : > { %v7131_v23 = vadd.f32 %v8334_v47, %v7649_v52 }
0x1be7   : > { %v7125_v58 = vpop.f32.mrf.mxu0 }
0x1be8   : > { %v7126_v55 = vadd.f32 %v7649_v52, %v7125_v58  ;;  %v7145_v1 = vmax.f32 %v7131_v23, 0.0 }
0x1bea   : > { %v7144_v57 = vmax.f32 %v7126_v55, 0.0 }
0x1bec   : > { %8346 = vmatprep.mubr.msk.f32.mxu1 %vm406_vm0, %v7144_v57 }
0x1bed   : > { %8347 = vmatmul.mubr.msk.f32.vlgmr.msra.gmra.mxu1 %vm406_vm0, %v7145_v1 }
0x1bf3   : > { %v8337_v49 = vpop.f32.mrf.mxu0 }
0x1bf4   : > { %v7141_v56 = vadd.f32 %v8337_v49, %v7649_v52 }
0x1bf5   : > { %v7135_v59 = vpop.f32.mrf.mxu0 }
0x1bf6   : > { %v7136_v46 = vadd.f32 %v7649_v52, %v7135_v59  ;;  %v7147_v50 = vmax.f32 %v7141_v56, 0.0 }
0x1bf8   : > { %v7146_v2 = vmax.f32 %v7136_v46, 0.0 }
0x1bfa   : > { %8349 = vmatprep.mubr.msk.f32.mxu1 %vm406_vm0, %v7146_v2 }
0x1bfb   : > { %8350 = vmatmul.mubr.msk.f32.gmra.mxu1 %vm406_vm0, %v7147_v50 }
0x1cad   : > { %v8348_v48 = vpop.f32.mrf.mxu1 }
0x1cae   : > { %v7245_v24 = vadd.f32 %v8348_v48, %v7654_v0 }
0x1caf   : > { %v7239_v3 = vpop.f32.mrf.mxu1 }
0x1cb0   : > { %v7259_v33 = vadd.f32 %v7245_v24, %v7031_v30  ;;  %v7240_v51 = vadd.f32 %v7654_v0, %v7239_v3 }
0x1cb2   : > { %v7258_v32 = vadd.f32 %v7240_v51, %v7030_v15  ;;  %v7265_v61 = vsel %vm406_vm0, %v7259_v33, 0.0 }
0x1cb3   : > { %7266 = vadd.xlane.f32.xlu1 %v7265_v61 }
0x1cb4   : > { %v7262_v35 = vsel %vm406_vm0, %v7258_v32, 0.0 }
0x1cb5   : > { %7263 = vadd.xlane.f32.xlu0 %v7262_v35 }
0x1cbb   : > { %v8351_v7 = vpop.f32.mrf.mxu1 }
0x1cbc   : > { %v7255_v25 = vadd.f32 %v8351_v7, %v7654_v0 }
0x1cbd   : > { %v7249_v38 = vpop.f32.mrf.mxu1 }
0x1cbe   : > { %v7261_v26 = vadd.f32 %v7255_v25, %v7033_v10  ;;  %v7250_v37 = vadd.f32 %v7654_v0, %v7249_v38 }
0x1cc0   : > { %v7260_v4 = vadd.f32 %v7250_v37, %v7032_v9  ;;  %v7271_v5 = vsel %vm406_vm0, %v7261_v26, 0.0 }
0x1cc1   : > { %7272 = vadd.xlane.f32.xlu1 %v7271_v5 }
0x1cc2   : > { %v7268_v11 = vsel %vm406_vm0, %v7260_v4, 0.0 }
0x1cc3   : > { %7269 = vadd.xlane.f32.xlu0 %v7268_v11 }
0x1d3c   : > { %v7267_v13 = vpop.xlane.xlu1 %7266 }
0x1d3d   : > { %v7275_v54 = vmul.f32 0.03125, %v7267_v13 }
0x1d3e   : > { %v7264_v53 = vpop.xlane.xlu0 %7263 }
0x1d3f   : > { %v7279_v31 = vsub.f32 %v7259_v33, %v7275_v54  ;;  %v7274_v36 = vmul.f32 0.03125, %v7264_v53 }
0x1d41   : > { %v7278_v17 = vsub.f32 %v7258_v32, %v7274_v36  ;;  %v7283_v41 = vmul.f32 %v7279_v31, %v7279_v31 }
0x1d43   : > { %v7289_v43 = vsel %vm406_vm0, %v7283_v41, 0.0  ;;  %v7282_v45 = vmul.f32 %v7278_v17, %v7278_v17 }
0x1d44   : > { %7290 = vadd.xlane.f32.xlu1 %v7289_v43 }
0x1d45   : > { %v7286_v21 = vsel %vm406_vm0, %v7282_v45, 0.0 }
0x1d46   : > { %7287 = vadd.xlane.f32.xlu0 %v7286_v21 }
0x1d4a   : > { %v7273_v18 = vpop.xlane.xlu1 %7272 }
0x1d4b   : > { %v7277_v19 = vmul.f32 0.03125, %v7273_v18 }
0x1d4c   : > { %v7270_v20 = vpop.xlane.xlu0 %7269 }
0x1d4d   : > { %v7281_v16 = vsub.f32 %v7261_v26, %v7277_v19  ;;  %v7276_v22 = vmul.f32 0.03125, %v7270_v20 }
0x1d4f   : > { %v7280_v28 = vsub.f32 %v7260_v4, %v7276_v22  ;;  %v7285_v8 = vmul.f32 %v7281_v16, %v7281_v16 }
0x1d51   : > { %v7295_v12 = vsel %vm406_vm0, %v7285_v8, 0.0  ;;  %v7284_v15 = vmul.f32 %v7280_v28, %v7280_v28 }
0x1d52   : > { %7296 = vadd.xlane.f32.xlu1 %v7295_v12 }
0x1d53   : > { %v7292_v30 = vsel %vm406_vm0, %v7284_v15, 0.0 }
0x1d54   : > { %7293 = vadd.xlane.f32.xlu0 %v7292_v30 }
0x1dcd   : > { %v7291_v34 = vpop.xlane.xlu1 %7290 }
0x1dce   : > { %v7299_v39 = vmul.f32 0.03125, %v7291_v34 }
0x1dcf   : > { %v7288_v60 = vpop.xlane.xlu0 %7287 }
0x1dd0   : > { %v7303_v62 = vadd.f32 1e-05, %v7299_v39  ;;  %v7298_v9 = vmul.f32 0.03125, %v7288_v60 }
0x1dd2   : > { %8584 = vrsqrt.f32 %v7303_v62  ;;  %v7302_v40 = vadd.f32 1e-05, %v7298_v9 }
0x1dd4   : > { %8586 = vrsqrt.f32 %v7302_v40 }
0x1ddb   : > { %v7297_v6 = vpop.xlane.xlu1 %7296 }
0x1ddc   : > { %v7301_v10 = vmul.f32 0.03125, %v7297_v6 }
0x1ddd   : > { %v7294_v63 = vpop.xlane.xlu0 %7293 }
0x1dde   : > { %v7305_v27 = vadd.f32 1e-05, %v7301_v10  ;;  %v7300_v44 = vmul.f32 0.03125, %v7294_v63 }
0x1ddf   : > { %v8585_v42 = vpop.eup %8584 }
0x1de0   : > { %v7311_v52 = vmul.f32 %v8585_v42, %v7279_v31  ;;  %8588 = vrsqrt.f32 %v7305_v27  ;;  %v7304_v47 = vadd.f32 1e-05, %v7300_v44 }
0x1de1   : > { %v8587_v23 = vpop.eup %8586 }
0x1de2   : > { %v7315_v58 = vmul.f32 %v9896_v29, %v7311_v52  ;;  %v7310_v55 = vmul.f32 %v8587_v23, %v7278_v17  ;;  %8590 = vrsqrt.f32 %v7304_v47 }
0x1de4   : > { %v7319_v57 = vadd.f32 %v9903_v14, %v7315_v58  ;;  %v7314_v1 = vmul.f32 %v9896_v29, %v7310_v55 }
0x1de6   : > { %v7318_v49 = vadd.f32 %v9903_v14, %v7314_v1  ;;  %7323 = vst.msk [vmem:[%s375_s16 + $0x8] sm:$0xff] %vm406_vm0, %v7319_v57 }
0x1de8   : > { %7322 = vst.msk [vmem:[%s375_s16] sm:$0xff] %vm406_vm0, %v7318_v49 }
0x1ded   : > { %v8589_v56 = vpop.eup %8588 }
0x1dee   : > { %v7313_v59 = vmul.f32 %v8589_v56, %v7281_v16 }
0x1def   : > { %v8591_v46 = vpop.eup %8590 }
0x1df0   : > { %v7317_v2 = vmul.f32 %v9896_v29, %v7313_v59  ;;  %v7312_v50 = vmul.f32 %v8591_v46, %v7280_v28 }
0x1df2   : > { %v7321_v0 = vadd.f32 %v9903_v14, %v7317_v2  ;;  %v7316_v48 = vmul.f32 %v9896_v29, %v7312_v50 }
0x1df4   : > { %v7320_v24 = vadd.f32 %v9903_v14, %v7316_v48  ;;  %7325 = vst.msk [vmem:[%s375_s16 + $0x18] sm:$0xff] %vm406_vm0, %v7321_v0 }
0x1df6   : > { %7324 = vst.msk [vmem:[%s375_s16 + $0x10] sm:$0xff] %vm406_vm0, %v7320_v24 }
0x1df7   : > { %8747 = shalt.err (!%p8744_p5)
}
0x1df8   : > { %s8748_s8 = scalar_lea.hbm %s9941_s29, 512  ;;  %s8752_s13 = scalar_lea.hbm %s10041_s6, 1024 }
0x1df9   : > { %p8749_p12 = scmp.ne.s32.totalorder %s9941_s29, %s8748_s8  ;;  %p8753_p3 = scmp.lt.s32.totalorder %s9941_s29, %s10041_s6 }
0x1dfa   : > { %p8754_p4 = scmp.lt.s32.totalorder %s8752_s13, %s8748_s8 }
0x1dfb   : > { %p8750_p0 = pnand %p8749_p12, %p10042_p13 }
0x1dfc   : > { %p8755_p8 = por %p8754_p4, %p8753_p3 }
0x1dfd   : > { %p8751_p11 = pneg %p8750_p0 }
0x1dff   : > { %p8756_p6 = pnand %p8755_p8, %p8751_p11 }
0x1e01   : > { %8759 = shalt.err (!%p8756_p6)
}
0x1e02   : > { %s8823_s20 = smov 128   ;;  %s8824_s10 = smov 8  }
0x1e03   : > { %8366 = dma.vmem_to_hbm [thread:$0]  (%p10042_p13), %s9943_s15, 512, %s9941_s29, %s7327_s25, %s8823_s20, %s8823_s20, %s8824_s10  }
0x1e04 PF: > { %s10043_s1 = sld [smem:[#allocation16_spill]] }
0x1e05   : > { %s10044_s21 = sld [smem:[#allocation20_spill]] }
0x1e06   : > { %s10045_s24 = sld [smem:[#allocation17_spill]] }
0x1e0a   : > { %s7355_s16 = sand.u32 1, %s10043_s1  }
0x1e0b   : > { %p10046_p2 = scmp.ne.s32.totalorder %s10044_s21, 0  ;;  %s7356_s28 = scalar_lea.sflag [#allocation4], %s7355_s16 }
0x1e0c   : > { %p10047_p7 = scmp.ge.s32.totalorder %s10045_s24, 2 }
0x1e0e   : > { %p8386_p9 = pnand %p10047_p7, %p10046_p2 }
0x1e10   : > { %p8387_p10 = pneg %p8386_p9 }
0x1e12   : > { %8789 = dma.done.wait (%p8387_p10), %s7356_s28, 512  }
0x1e13   : > { %8791 = vsyncadd (%p8387_p10), %s7356_s28, 4294966784  ;;  %s10048_s24 = sld [smem:[#allocation18_spill]]  ;;  %s10050_s21 = smov %s8798_s22 }
0x1e14   : > { %s10049_s17 = sld [smem:[#allocation19_spill]]  ;;  %s10051_s22 = smov %s8802_s23 }
0x1e19   : > { %p23_p1 = scmp.ge.s32.totalorder %s10048_s24, 4  }
0x1e1a   : > { %s10052_s23 = smov %s10049_s17 }
0x1e1b   :  { %25 = sbr.rel (!%p23_p1) target bundleno = 12 (0xc), region = 136 }
0x1e20   :  { %7361 = vsyncpa [#allocation3], 1 }
0x1e21   :  { %7363 = vsyncpa [#allocation3 + $0x1], 1 }
0x1e22   :  { %7364 = vsyncpa [#allocation6], 1 }
0x1e23   :  { %7366 = vsyncpa [#allocation6 + $0x1], 1 }
0x1e24   :  { %7367 = vsyncpa [#allocation9], 1 }
0x1e25   :  { %7368 = vsyncpa [#allocation4], 1 }
0x1e26   :  { %7370 = vsyncpa [#allocation4 + $0x1], 1 }

</bundles_post_ra>
